<compile_context>
chip_gen: v7x
topology: tpu7x:2x2x1
jax: 0.10.0
libtpu: 0.0.40
codegen_flags: <defaults>
</compile_context>

<pallas_src>
import jax
import jax.numpy as jnp
import numpy as np
from jax.experimental import pallas as pl
from jax.experimental.pallas import tpu as pltpu

H = 1024    # fixed by torch.nn.Linear(in_features=1024, ...)
NPAD = 128  # lane width the tiny head projections are zero-padded to


def heads_kernel(x_ref, cls_ref, maskadd_ref, w1_ref, b1_ref, wh_ref, bh_ref,
                 probs_ref, cls_out_ref):
    # x_ref:       (Bb, S, H)  f32  encoder_rep block (cast to bf16 in-kernel)
    # cls_ref:     (Bb, 1, H)  f32  pooled [CLS] representations
    # maskadd_ref: (Bb, 1, S)  f32  additive mask (0.0 real token, -1e30 pad)
    # w1_ref:      (H, H)  bf16, b1_ref: (1, H) f32        encoder_linear
    # wh_ref:      (H, 128) bf16 padded head weights (col0=start, col1=end,
    #                            cols 2:4 = cls, rest zero)
    # bh_ref:      (1, 128) f32 padded head biases
    # probs_ref:   (Bb, 2, S)  f32  [start_prob_seq ; end_prob_seq]
    # cls_out_ref: (Bb, 1, 128) f32 padded cls logits (cols 2:4 are real)
    Bb, S, Hh = x_ref.shape

    # ---- encoder_linear: tanh(x @ W1 + b1) --------------------------------
    x = x_ref[...].reshape(Bb * S, Hh).astype(jnp.bfloat16)
    h = jnp.tanh(
        jnp.dot(x, w1_ref[...], preferred_element_type=jnp.float32) + b1_ref[...]
    )                                                   # (Bb*S, H) f32
    # Dropout is identity in eval mode.
    h_bf = h.astype(jnp.bfloat16)

    # ---- fused head matmul: append (padded) cls rows, one MXU pass --------
    cls_bf = cls_ref[...].reshape(Bb, Hh).astype(jnp.bfloat16)
    cls_rows = ((Bb + 15) // 16) * 16                   # bf16 sublane-pack align
    parts = [h_bf, cls_bf]
    if cls_rows > Bb:
        parts.append(jnp.zeros((cls_rows - Bb, Hh), jnp.bfloat16))
    hh = jnp.concatenate(parts, axis=0)                 # (Bb*S + cls_rows, H) bf16

    logits = (
        jnp.dot(hh, wh_ref[...], preferred_element_type=jnp.float32) + bh_ref[...]
    )                                                   # (Bb*S + cls_rows, 128) f32

    # ---- masked softmax over the sequence (lane axis) per batch element ---
    for b in range(Bb):
        lb = logits[b * S:(b + 1) * S, :]               # (S, 128)
        lt = lb.T                                       # (128, S) XLU transpose
        se = lt[0:2, :]                                 # (2, S) start/end logits
        masked = se + maskadd_ref[b]                    # additive masked_fill_
        m = jnp.max(masked, axis=-1, keepdims=True)     # (2, 1)
        e = jnp.exp(masked - m)                         # (2, S)
        denom = jnp.sum(e, axis=-1, keepdims=True)      # (2, 1)
        probs_ref[b] = e * pl.reciprocal(denom, approx=True)

    # ---- cls logits: rows appended after the Bb*S sequence rows ------------
    cls_out_ref[...] = logits[Bb * S:Bb * S + Bb, :].reshape(Bb, 1, NPAD)


def prepare_params(params):
    """One-time parameter prep (hoisted out of the per-call path)."""
    wh = jnp.zeros((H, NPAD), jnp.float32)
    wh = wh.at[:, 0:2].set(params["wse"]).at[:, 2:4].set(params["wc"])
    bh = jnp.zeros((1, NPAD), jnp.float32)
    bh = bh.at[:, 0:2].set(params["bse"]).at[:, 2:4].set(params["bc"])
    return {
        "w1": params["w1"].astype(jnp.bfloat16),
        "b1": params["b1"].astype(jnp.float32),
        "wh": wh.astype(jnp.bfloat16),
        "bh": bh,
    }


def _pick_bb(B):
    # Keep >= 2 grid steps when possible (v7x has two TensorCores under
    # dimension_semantics=('parallel',)), batch up to 8 elements per step to
    # amortize per-step pipeline overhead on single-TC v5e/v6e.
    if B <= 2:
        return 1
    for bb in (8, 4, 2):
        if B % bb == 0 and B // bb >= 2:
            return bb
    return 1


def model_forward(encoder_rep, cls_rep, input_mask, prep):
    """Inference branch of MyModel.forward given encoder outputs."""
    B, S, Hh = encoder_rep.shape
    assert Hh == H
    Bb = _pick_bb(B)
    assert B % Bb == 0
    grid = (B // Bb,)

    x = encoder_rep.astype(jnp.float32)
    cls3 = cls_rep.reshape(B, 1, Hh).astype(jnp.float32)
    mask_add = jnp.where(
        input_mask == 0.0, jnp.float32(-1e30), jnp.float32(0.0)
    ).reshape(B, 1, S)

    in_specs = [
        pl.BlockSpec((Bb, S, H), lambda i: (i, 0, 0)),       # encoder_rep (f32)
        pl.BlockSpec((Bb, 1, H), lambda i: (i, 0, 0)),       # cls_rep
        pl.BlockSpec((Bb, 1, S), lambda i: (i, 0, 0)),       # additive mask
        pl.BlockSpec((H, H), lambda i: (0, 0)),              # W1 (bf16)
        pl.BlockSpec((1, H), lambda i: (0, 0)),              # b1
        pl.BlockSpec((H, NPAD), lambda i: (0, 0)),           # padded head W (bf16)
        pl.BlockSpec((1, NPAD), lambda i: (0, 0)),           # padded head bias
    ]
    out_specs = [
        pl.BlockSpec((Bb, 2, S), lambda i: (i, 0, 0)),       # [start ; end] probs
        pl.BlockSpec((Bb, 1, NPAD), lambda i: (i, 0, 0)),    # padded cls logits
    ]
    out_shapes = (
        jax.ShapeDtypeStruct((B, 2, S), jnp.float32),
        jax.ShapeDtypeStruct((B, 1, NPAD), jnp.float32),
    )

    probs, cls_pad = pl.pallas_call(
        heads_kernel,
        out_shape=out_shapes,
        grid=grid,
        in_specs=in_specs,
        out_specs=out_specs,
        compiler_params=pltpu.CompilerParams(
            dimension_semantics=("parallel",),
            vmem_limit_bytes=32 * 1024 * 1024,
        ),
    )(x, cls3, mask_add, prep["w1"], prep["b1"], prep["wh"], prep["bh"])

    start_prob_seq = probs[:, 0, :]
    end_prob_seq = probs[:, 1, :]
    cls_logits = cls_pad[:, 0, 2:4]
    return cls_logits, start_prob_seq, end_prob_seq


def reference_forward(encoder_rep, cls_rep, input_mask, params):
    # Pure-JAX reference mirroring the kernel's bf16 matmuls (f32 accumulate).
    x = encoder_rep.astype(jnp.bfloat16)
    w1 = params["w1"].astype(jnp.bfloat16)
    h = jnp.tanh(jnp.dot(x, w1, preferred_element_type=jnp.float32) + params["b1"])
    h_bf = h.astype(jnp.bfloat16)
    wse = params["wse"].astype(jnp.bfloat16)
    wc = params["wc"].astype(jnp.bfloat16)
    logits = jnp.dot(h_bf, wse, preferred_element_type=jnp.float32) + params["bse"]
    start_logits = logits[..., 0]
    end_logits = logits[..., 1]
    neg = jnp.float32(-1e30)
    start_logits = jnp.where(input_mask == 0.0, neg, start_logits)
    end_logits = jnp.where(input_mask == 0.0, neg, end_logits)
    start_prob = jax.nn.softmax(start_logits, axis=1)
    end_prob = jax.nn.softmax(end_logits, axis=1)
    cls_logits = (
        jnp.dot(cls_rep.astype(jnp.bfloat16), wc, preferred_element_type=jnp.float32)
        + params["bc"]
    )
    return cls_logits, start_prob, end_prob


if __name__ == "__main__":
    B, S = 2, 128
    key = jax.random.PRNGKey(0)
    ks = jax.random.split(key, 10)

    # Stand-in encoder outputs (the pretrained BertModel is not reproduced).
    encoder_rep = jax.random.normal(ks[0], (B, S, H), dtype=jnp.float32)
    cls_rep = jax.random.normal(ks[1], (B, H), dtype=jnp.float32)
    # valid lengths: first 100 / 64 tokens are real, rest padded (exact 0/1 mask).
    lengths = jnp.array([100, 64])
    input_mask = (jnp.arange(S)[None, :] < lengths[:, None]).astype(jnp.float32)

    # Deterministic parameter init (shapes from the module's __init__).
    scale = 0.02
    w_start = scale * jax.random.normal(ks[4], (H, 1), dtype=jnp.float32)
    w_end = scale * jax.random.normal(ks[5], (H, 1), dtype=jnp.float32)
    params = {
        "w1": scale * jax.random.normal(ks[2], (H, H), dtype=jnp.float32),
        "b1": scale * jax.random.normal(ks[3], (1, H), dtype=jnp.float32),
        "wse": jnp.concatenate([w_start, w_end], axis=1),            # (H, 2)
        "bse": scale * jax.random.normal(ks[6], (1, 2), dtype=jnp.float32),
        "wc": scale * jax.random.normal(ks[7], (H, 2), dtype=jnp.float32),
        "bc": scale * jax.random.normal(ks[8], (1, 2), dtype=jnp.float32),
    }

    # One-time parameter preparation (hoisted out of the per-call path).
    prep = jax.tree_util.tree_map(jax.block_until_ready, prepare_params(params))

    forward = jax.jit(model_forward)
    cls_logits, start_prob, end_prob = jax.block_until_ready(
        forward(encoder_rep, cls_rep, input_mask, prep)
    )

    # Correctness check against a pure-JAX reference (bf16-matched matmuls;
    # tolerance covers the approximate reciprocal in the softmax).
    ref_cls, ref_sp, ref_ep = reference_forward(encoder_rep, cls_rep, input_mask, params)
    np.testing.assert_allclose(np.asarray(cls_logits), np.asarray(ref_cls), rtol=5e-3, atol=2e-4)
    np.testing.assert_allclose(np.asarray(start_prob), np.asarray(ref_sp), rtol=5e-3, atol=2e-4)
    np.testing.assert_allclose(np.asarray(end_prob), np.asarray(ref_ep), rtol=5e-3, atol=2e-4)

    assert cls_logits.shape == (B, 2)
    assert start_prob.shape == (B, S) and end_prob.shape == (B, S)
    print("KERNEL_OK")
</pallas_src>

<mosaic_0001>
module attributes {stable_mosaic.version = 11 : i64} {
  func.func @heads_kernel(%arg0: i32, %arg1: memref<1x128x1024xf32, #tpu.memory_space<vmem>>, %arg2: memref<1x1x1024xf32, #tpu.memory_space<vmem>>, %arg3: memref<1x1x128xf32, #tpu.memory_space<vmem>>, %arg4: memref<1024x1024xbf16, #tpu.memory_space<vmem>>, %arg5: memref<1x1024xf32, #tpu.memory_space<vmem>>, %arg6: memref<1024x128xbf16, #tpu.memory_space<vmem>>, %arg7: memref<1x128xf32, #tpu.memory_space<vmem>>, %arg8: memref<1x2x128xf32, #tpu.memory_space<vmem>>, %arg9: memref<1x1x128xf32, #tpu.memory_space<vmem>>) attributes {dimension_semantics = [#tpu.dimension_semantics<parallel>], iteration_bounds = array<i64: 2>, scalar_prefetch = 0 : i64, scratch_operands = 0 : i64, tpu.core_type = #tpu.core_type<tc>, window_params = [{transform_indices = @transform_0, window_bounds = array<i64: 1, 128, 1024>}, {transform_indices = @transform_1, window_bounds = array<i64: 1, 1, 1024>}, {transform_indices = @transform_2, window_bounds = array<i64: 1, 1, 128>}, {pipeline_mode = #tpu.pipeline_mode<synchronous>, transform_indices = @transform_3, window_bounds = array<i64: 1024, 1024>}, {pipeline_mode = #tpu.pipeline_mode<synchronous>, transform_indices = @transform_4, window_bounds = array<i64: 1, 1024>}, {pipeline_mode = #tpu.pipeline_mode<synchronous>, transform_indices = @transform_5, window_bounds = array<i64: 1024, 128>}, {pipeline_mode = #tpu.pipeline_mode<synchronous>, transform_indices = @transform_6, window_bounds = array<i64: 1, 128>}, {transform_indices = @transform_7, window_bounds = array<i64: 1, 2, 128>}, {transform_indices = @transform_8, window_bounds = array<i64: 1, 1, 128>}]} {
    %c0 = arith.constant 0 : index
    %c0_0 = arith.constant 0 : index
    %c0_1 = arith.constant 0 : index
    %0 = vector.load %arg1[%c0, %c0_0, %c0_1] : memref<1x128x1024xf32, #tpu.memory_space<vmem>>, vector<1x128x1024xf32>
    %1 = vector.shape_cast %0 : vector<1x128x1024xf32> to vector<128x1024xf32>
    %2 = arith.truncf %1 : vector<128x1024xf32> to vector<128x1024xbf16>
    %c0_2 = arith.constant 0 : index
    %c0_3 = arith.constant 0 : index
    %3 = vector.load %arg4[%c0_2, %c0_3] : memref<1024x1024xbf16, #tpu.memory_space<vmem>>, vector<1024x1024xbf16>
    %cst = arith.constant dense<0.000000e+00> : vector<128x1024xf32>
    %4 = tpu.matmul %2, %3, %cst {dimension_numbers = #tpu.dot_dimension_numbers<[1], [0], [0], [1], [0, 0, 1, 1], [], []>} : vector<128x1024xbf16>, vector<1024x1024xbf16>, vector<128x1024xf32> -> vector<128x1024xf32>
    %c0_4 = arith.constant 0 : index
    %c0_5 = arith.constant 0 : index
    %5 = vector.load %arg5[%c0_4, %c0_5] : memref<1x1024xf32, #tpu.memory_space<vmem>>, vector<1x1024xf32>
    %6 = vector.broadcast %5 : vector<1x1024xf32> to vector<128x1024xf32>
    %7 = arith.addf %4, %6 : vector<128x1024xf32>
    %8 = math.tanh %7 : vector<128x1024xf32>
    %9 = arith.truncf %8 : vector<128x1024xf32> to vector<128x1024xbf16>
    %c0_6 = arith.constant 0 : index
    %c0_7 = arith.constant 0 : index
    %c0_8 = arith.constant 0 : index
    %10 = vector.load %arg2[%c0_6, %c0_7, %c0_8] : memref<1x1x1024xf32, #tpu.memory_space<vmem>>, vector<1x1x1024xf32>
    %11 = vector.shape_cast %10 : vector<1x1x1024xf32> to vector<1x1024xf32>
    %12 = arith.truncf %11 : vector<1x1024xf32> to vector<1x1024xbf16>
    %cst_9 = arith.constant 0.000000e+00 : bf16
    %13 = vector.broadcast %cst_9 : bf16 to vector<15x1024xbf16>
    %14 = tpu.concatenate %9, %12, %13 in 0 : vector<128x1024xbf16>, vector<1x1024xbf16>, vector<15x1024xbf16> -> vector<144x1024xbf16>
    %c0_10 = arith.constant 0 : index
    %c0_11 = arith.constant 0 : index
    %15 = vector.load %arg6[%c0_10, %c0_11] : memref<1024x128xbf16, #tpu.memory_space<vmem>>, vector<1024x128xbf16>
    %cst_12 = arith.constant dense<0.000000e+00> : vector<144x128xf32>
    %16 = tpu.matmul %14, %15, %cst_12 {dimension_numbers = #tpu.dot_dimension_numbers<[1], [0], [0], [1], [0, 0, 1, 1], [], []>} : vector<144x1024xbf16>, vector<1024x128xbf16>, vector<144x128xf32> -> vector<144x128xf32>
    %c0_13 = arith.constant 0 : index
    %c0_14 = arith.constant 0 : index
    %17 = vector.load %arg7[%c0_13, %c0_14] : memref<1x128xf32, #tpu.memory_space<vmem>>, vector<1x128xf32>
    %18 = vector.broadcast %17 : vector<1x128xf32> to vector<144x128xf32>
    %19 = arith.addf %16, %18 : vector<144x128xf32>
    %20 = vector.extract_strided_slice %19 {offsets = [0, 0], sizes = [128, 128], strides = [1, 1]} : vector<144x128xf32> to vector<128x128xf32>
    %21 = tpu.transpose %20, [1, 0] : vector<128x128xf32> -> vector<128x128xf32>
    %22 = vector.extract_strided_slice %21 {offsets = [0, 0], sizes = [2, 128], strides = [1, 1]} : vector<128x128xf32> to vector<2x128xf32>
    %c0_15 = arith.constant 0 : index
    %c0_16 = arith.constant 0 : index
    %c0_17 = arith.constant 0 : index
    %23 = vector.load %arg3[%c0_15, %c0_16, %c0_17] : memref<1x1x128xf32, #tpu.memory_space<vmem>>, vector<1x1x128xf32>
    %24 = vector.shape_cast %23 : vector<1x1x128xf32> to vector<1x128xf32>
    %25 = vector.broadcast %24 : vector<1x128xf32> to vector<2x128xf32>
    %26 = arith.addf %22, %25 : vector<2x128xf32>
    %cst_18 = arith.constant dense<0xFF800000> : vector<2xf32>
    %27 = vector.multi_reduction <maximumf>, %26, %cst_18 [1] : vector<2x128xf32> to vector<2xf32>
    %28 = vector.shape_cast %27 : vector<2xf32> to vector<2x1xf32>
    %29 = vector.broadcast %28 : vector<2x1xf32> to vector<2x128xf32>
    %30 = arith.subf %26, %29 : vector<2x128xf32>
    %31 = math.exp %30 : vector<2x128xf32>
    %cst_19 = arith.constant dense<0.000000e+00> : vector<2xf32>
    %32 = vector.multi_reduction <add>, %31, %cst_19 [1] : vector<2x128xf32> to vector<2xf32>
    %33 = vector.shape_cast %32 : vector<2xf32> to vector<2x1xf32>
    %34 = tpu.reciprocal %33 {approx = true} : vector<2x1xf32> -> vector<2x1xf32>
    %35 = vector.broadcast %34 : vector<2x1xf32> to vector<2x128xf32>
    %36 = arith.mulf %31, %35 : vector<2x128xf32>
    %c0_20 = arith.constant 0 : index
    %c0_21 = arith.constant 0 : index
    %c0_22 = arith.constant 0 : index
    %37 = vector.load %arg8[%c0_20, %c0_21, %c0_22] : memref<1x2x128xf32, #tpu.memory_space<vmem>>, vector<1x2x128xf32>
    %38 = vector.shape_cast %37 : vector<1x2x128xf32> to vector<2x128xf32>
    %39 = vector.shape_cast %36 : vector<2x128xf32> to vector<1x2x128xf32>
    tpu.vector_store %arg8[%c0_20, %c0_21, %c0_22], %39 {strides = array<i32>} : memref<1x2x128xf32, #tpu.memory_space<vmem>>, vector<1x2x128xf32>,
    %40 = vector.extract_strided_slice %19 {offsets = [128, 0], sizes = [1, 128], strides = [1, 1]} : vector<144x128xf32> to vector<1x128xf32>
    %41 = vector.shape_cast %40 : vector<1x128xf32> to vector<1x1x128xf32>
    %c0_23 = arith.constant 0 : index
    %c0_24 = arith.constant 0 : index
    %c0_25 = arith.constant 0 : index
    %42 = vector.load %arg9[%c0_23, %c0_24, %c0_25] : memref<1x1x128xf32, #tpu.memory_space<vmem>>, vector<1x1x128xf32>
    tpu.vector_store %arg9[%c0_23, %c0_24, %c0_25], %41 {strides = array<i32>} : memref<1x1x128xf32, #tpu.memory_space<vmem>>, vector<1x1x128xf32>,
    return
  }
  func.func @transform_0(%arg0: i32) -> (i32, i32, i32) {
    %c0_i32 = arith.constant 0 : i32
    %c0_i32_0 = arith.constant 0 : i32
    %c0_i32_1 = arith.constant 0 : i32
    return %arg0, %c0_i32, %c0_i32_0 : i32, i32, i32
  }
  func.func @transform_1(%arg0: i32) -> (i32, i32, i32) {
    %c0_i32 = arith.constant 0 : i32
    %c0_i32_0 = arith.constant 0 : i32
    %c0_i32_1 = arith.constant 0 : i32
    return %arg0, %c0_i32, %c0_i32_0 : i32, i32, i32
  }
  func.func @transform_2(%arg0: i32) -> (i32, i32, i32) {
    %c0_i32 = arith.constant 0 : i32
    %c0_i32_0 = arith.constant 0 : i32
    %c0_i32_1 = arith.constant 0 : i32
    return %arg0, %c0_i32, %c0_i32_0 : i32, i32, i32
  }
  func.func @transform_3(%arg0: i32) -> (i32, i32) {
    %c0_i32 = arith.constant 0 : i32
    %c0_i32_0 = arith.constant 0 : i32
    %c0_i32_1 = arith.constant 0 : i32
    return %c0_i32, %c0_i32_0 : i32, i32
  }
  func.func @transform_4(%arg0: i32) -> (i32, i32) {
    %c0_i32 = arith.constant 0 : i32
    %c0_i32_0 = arith.constant 0 : i32
    %c0_i32_1 = arith.constant 0 : i32
    return %c0_i32, %c0_i32_0 : i32, i32
  }
  func.func @transform_5(%arg0: i32) -> (i32, i32) {
    %c0_i32 = arith.constant 0 : i32
    %c0_i32_0 = arith.constant 0 : i32
    %c0_i32_1 = arith.constant 0 : i32
    return %c0_i32, %c0_i32_0 : i32, i32
  }
  func.func @transform_6(%arg0: i32) -> (i32, i32) {
    %c0_i32 = arith.constant 0 : i32
    %c0_i32_0 = arith.constant 0 : i32
    %c0_i32_1 = arith.constant 0 : i32
    return %c0_i32, %c0_i32_0 : i32, i32
  }
  func.func @transform_7(%arg0: i32) -> (i32, i32, i32) {
    %c0_i32 = arith.constant 0 : i32
    %c0_i32_0 = arith.constant 0 : i32
    %c0_i32_1 = arith.constant 0 : i32
    return %arg0, %c0_i32, %c0_i32_0 : i32, i32, i32
  }
  func.func @transform_8(%arg0: i32) -> (i32, i32, i32) {
    %c0_i32 = arith.constant 0 : i32
    %c0_i32_0 = arith.constant 0 : i32
    %c0_i32_1 = arith.constant 0 : i32
    return %arg0, %c0_i32, %c0_i32_0 : i32, i32, i32
  }
}

</mosaic_0001>

<bundles_post_ra>
// kernel: model_forward.1
= control target key start
LH: loop header
LB: loop body
LE: loop exit
PB: predicated region body
PF: predicated region fallthrough
CT: control target
= control target key end

     0   :  { %14 = vsyncpa [#allocation3], 0  ;;  %s10439_s0 = inlined_call_operand.hbm [shape: f32[2,128,1024], index: 0, kind: input, shape index: {}]   ;;  %s10440_s1 = inlined_call_operand.vmem [shape: f32[2,1,1024], index: 1, kind: input, shape index: {}]   ;;  %s10441_s2 = inlined_call_operand.vmem [shape: f32[2,1,128], index: 2, kind: input, shape index: {}]   ;;  %s10442_s3 = inlined_call_operand.hbm [shape: bf16[1024,1024], index: 3, kind: input, shape index: {}]   ;;  %s10443_s4 = inlined_call_operand.hbm [shape: f32[1,1024], index: 4, kind: input, shape index: {}]   ;;  %s10444_s5 = inlined_call_operand.hbm [shape: bf16[1024,128], index: 5, kind: input, shape index: {}]   ;;  %s10445_s6 = inlined_call_operand.hbm [shape: f32[1,128], index: 6, kind: input, shape index: {}]   ;;  %s10446_s7 = inlined_call_operand.vmem [shape: f32[2,2,128], index: 7, kind: output, shape index: {0}]   ;;  %s10447_s8 = inlined_call_operand.vmem [shape: f32[2,1,128], index: 8, kind: output, shape index: {1}]  }
   0x1   :  { %16 = vsyncpa [#allocation3 + $0x1], 0 }
   0x2   :  { %17 = vsyncpa [#allocation5], 0 }
   0x3   :  { %18 = vsyncpa [#allocation8], 0  ;;  %s8966_s27 = smov 0   ;;  %s8968_s28 = smov 0  }
   0x4   :  { %s8970_s29 = smov 0   ;;  %s8972_s30 = smov 0  }
   0x5 LB: > { %s8985_s9 = sadd.s32 4294967295, %s8909_s30   ;;  %p44_p0 = scmp.ne.s32.totalorder %s8901_s28, %s8897_s27  ;;  %s8909_s30 = sphi %s8972_s30, %s10632_s30   ;;  %s8905_s29 = sphi %s8970_s29, %s10631_s29   ;;  %s8901_s28 = sphi %s8968_s28, %s10630_s28   ;;  %s8897_s27 = sphi %s8966_s27, %s10629_s27  }
   0x6   : > { %p10448_p1 = scmp.eq.s32.totalorder %s8985_s9, 0  ;;  %p6925_p2 = scmp.ge.s32.totalorder %s8909_s30, 1 }
   0x7   : > { %p243_p3 = scmp.lt.s32.totalorder %s8909_s30, 3  ;;  %s8911_s12 = smov [#allocation4]  }
   0x8   : > { %p8993_p4 = por %p10448_p1, %p44_p0  ;;  %s255_s13 = sshll.u32 %s8911_s12, 4  ;;  %s256_s13 = int_to_ptr.vmem [resolvable:$true] %s255_s13 }
   0x9   : > { %p8997_p5 = pnand %p6925_p2, %p243_p3  ;;  %s8912_s15 = smov [#allocation7]  }
   0xa   : > { %s10513_s10 = scalar_select %p8993_p4, 1, 0 }
   0xb   : > { %s10514_s11 = scalar_select %p8997_p5, 1, 0 }
   0xc   : > { %p8333_p6 = pneg %p8997_p5  ;;  %s279_s16 = sshll.u32 %s8912_s15, 4  ;;  %s9009_s16 = int_to_ptr.vmem [resolvable:$true] %s279_s16 }
   0xd   : > { %s8725_s19 = scalar_lea.hbm %s10442_s3, 65536 }
   0xe   : > { %p9005_p7 = pnand %p8333_p6, %p10448_p1  ;;  %p8726_p8 = scmp.ne.s32.totalorder %s10442_s3, %s8725_s19 }
   0xf   : > { %p8732_p12 = scmp.lt.u32.totalorder %s8725_s19, %s10442_s3 }
  0x10   : > { %p9019_p9 = pneg %p9005_p7 }
  0x12   : > { %p8728_p10 = pnand %p9019_p9, %p8726_p8 }
  0x14   : > { %p8729_p11 = pneg %p8728_p10 }
  0x16   : > { %p8734_p13 = pnand %p8732_p12, %p8729_p11 }
  0x18   : > { %8737 = shalt.err (!%p8734_p13)
}
  0x19   : > { %s8738_s25 = scalar_lea.vmem %s256_s13, 65536  ;;  %p8746_p6 = scmp.lt.s32.totalorder %s256_s13, %s256_s13 }
  0x1a   : > { %p8739_p0 = scmp.ne.s32.totalorder %s256_s13, %s8738_s25  ;;  %p8747_p1 = scmp.lt.s32.totalorder %s8738_s25, %s8738_s25 }
  0x1c   : > { %p8741_p2 = pnand %p8739_p0, %p9019_p9  ;;  %p8748_p4 = por %p8747_p1, %p8746_p6 }
  0x1e   : > { %p8742_p3 = pneg %p8741_p2 }
  0x20   : > { %p8749_p5 = pnand %p8748_p4, %p8742_p3 }
  0x22   : > { %8752 = shalt.err (!%p8749_p5)
}
  0x23   : > { %s8913_s26 = smov 512   ;;  %s8914_s27 = smov 32  }
  0x24   : > { %8336 = dma.hbm_to_vmem [thread:$0]  (!%p9005_p7), %s10442_s3, 65536, %s256_s13, [#allocation5], %s8913_s26, %s8913_s26, %s8914_s27  }
  0x25   : > { %s8753_s19 = scalar_lea.hbm %s10444_s5, 8192 }
  0x26   : > { %p8754_p8 = scmp.ne.s32.totalorder %s10444_s5, %s8753_s19  ;;  %p8760_p5 = scmp.lt.u32.totalorder %s8753_s19, %s10444_s5 }
  0x28   : > { %p8756_p1 = pnand %p8754_p8, %p9019_p9 }
  0x2a   : > { %p8757_p4 = pneg %p8756_p1 }
  0x2c   : > { %p8762_p10 = pnand %p8760_p5, %p8757_p4 }
  0x2e   : > { %8765 = shalt.err (!%p8762_p10)
}
  0x2f   : > { %s8766_s13 = scalar_lea.vmem %s9009_s16, 8192  ;;  %p8774_p0 = scmp.lt.s32.totalorder %s9009_s16, %s9009_s16 }
  0x30   : > { %p8767_p11 = scmp.ne.s32.totalorder %s9009_s16, %s8766_s13  ;;  %p8775_p2 = scmp.lt.s32.totalorder %s8766_s13, %s8766_s13 }
  0x32   : > { %p8769_p12 = pnand %p8767_p11, %p9019_p9  ;;  %p8776_p3 = por %p8775_p2, %p8774_p0 }
  0x34   : > { %p8770_p13 = pneg %p8769_p12 }
  0x36   : > { %p8777_p6 = pnand %p8776_p3, %p8770_p13 }
  0x38   : > { %8780 = shalt.err (!%p8777_p6)
}
  0x39   : > { %s8915_s25 = smov 64   ;;  %s8916_s26 = smov 4  }
  0x3a   : > { %8342 = dma.hbm_to_vmem [thread:$0]  (!%p9005_p7), %s10444_s5, 8192, %s9009_s16, [#allocation8], %s8915_s25, %s8915_s25, %s8916_s26  }
  0x3b   : > { %s8917_s15 = smov [#allocation6]   ;;  %s8918_s18 = smov [#allocation9]  }
  0x3c   : > { %s269_s17 = sshll.u32 %s8917_s15, 4  ;;  %s293_s19 = sshll.u32 %s8918_s18, 4  ;;  %s270_s17 = int_to_ptr.vmem [resolvable:$true] %s269_s17  ;;  %s9060_s19 = int_to_ptr.vmem [resolvable:$true] %s293_s19 }
  0x3d   : > { %s8781_s23 = scalar_lea.hbm %s10443_s4, 128 }
  0x3e   : > { %p8782_p8 = scmp.ne.s32.totalorder %s10443_s4, %s8781_s23  ;;  %p8788_p5 = scmp.lt.u32.totalorder %s8781_s23, %s10443_s4 }
  0x40   : > { %p8784_p1 = pnand %p8782_p8, %p9019_p9 }
  0x42   : > { %p8785_p4 = pneg %p8784_p1 }
  0x44   : > { %p8790_p10 = pnand %p8788_p5, %p8785_p4 }
  0x46   : > { %8793 = shalt.err (!%p8790_p10)
}
  0x47   : > { %s8794_s26 = scalar_lea.vmem %s270_s17, 128  ;;  %p8802_p0 = scmp.lt.s32.totalorder %s270_s17, %s270_s17 }
  0x48   : > { %p8795_p11 = scmp.ne.s32.totalorder %s270_s17, %s8794_s26  ;;  %p8803_p2 = scmp.lt.s32.totalorder %s8794_s26, %s8794_s26 }
  0x4a   : > { %p8797_p12 = pnand %p8795_p11, %p9019_p9  ;;  %p8804_p3 = por %p8803_p2, %p8802_p0 }
  0x4c   : > { %p8798_p13 = pneg %p8797_p12 }
  0x4e   : > { %p8805_p6 = pnand %p8804_p3, %p8798_p13 }
  0x50   : > { %8808 = shalt.err (!%p8805_p6)
}
  0x51   : > { %8339 = dma.hbm_to_vmem [thread:$0]  (!%p9005_p7), %s10443_s4, 128, %s270_s17, [#allocation5]  }
  0x52   : > { %s8809_s21 = scalar_lea.hbm %s10445_s6, 16 }
  0x53   : > { %p8810_p8 = scmp.ne.s32.totalorder %s10445_s6, %s8809_s21  ;;  %p8816_p5 = scmp.lt.u32.totalorder %s8809_s21, %s10445_s6 }
  0x55   : > { %p8812_p1 = pnand %p8810_p8, %p9019_p9 }
  0x57   : > { %p8813_p4 = pneg %p8812_p1 }
  0x59   : > { %p8818_p10 = pnand %p8816_p5, %p8813_p4 }
  0x5b   : > { %8821 = shalt.err (!%p8818_p10)
}
  0x5c   : > { %s8822_s17 = scalar_lea.vmem %s9060_s19, 16  ;;  %s8829_s16 = scalar_lea.vmem %s9060_s19, 32 }
  0x5d   : > { %p8823_p11 = scmp.ne.s32.totalorder %s9060_s19, %s8822_s17  ;;  %p8830_p0 = scmp.lt.s32.totalorder %s9060_s19, %s9060_s19 }
  0x5e   : > { %p8831_p2 = scmp.lt.s32.totalorder %s8829_s16, %s8822_s17 }
  0x5f   : > { %p8825_p12 = pnand %p8823_p11, %p9019_p9 }
  0x60   : > { %p8832_p3 = por %p8831_p2, %p8830_p0 }
  0x61   : > { %p8826_p13 = pneg %p8825_p12 }
  0x63   : > { %p8833_p6 = pnand %p8832_p3, %p8826_p13 }
  0x65   : > { %8836 = shalt.err (!%p8833_p6)
}
  0x66   : > { %8345 = dma.hbm_to_vmem [thread:$0]  (!%p9005_p7), %s10445_s6, 16, %s9060_s19, [#allocation8]  }
  0x67   : > { %s9105_s22 = sadd.s32 1, %s8909_s30   ;;  %s31_s14 = sadd.s32 1, %s8905_s29 }
  0x68   : > { %s28_s15 = ssub.s32 %s8909_s30, %s9105_s22  ;;  %p38_p8 = scmp.ne.s32.totalorder %s8905_s29, %s8901_s28 }
  0x69   : > { %p29_p9 = scmp.eq.s32.totalorder %s28_s15, 0  ;;  %p39_p1 = scmp.eq.s32.totalorder %s8909_s30, 0 }
  0x6a   : > { %p8354_p5 = scmp.lt.s32.totalorder %s8909_s30, 2  ;;  %s304_s20 = sand.u32 1, %s8905_s29  }
  0x6b   : > { %s9114_s18 = scalar_select %p29_p9, %s8905_s29, %s31_s14  }
  0x6c   : > { %p40_p4 = por %p39_p1, %p38_p8  ;;  %s7522_s21 = sshll.u32 %s8909_s30, 14 }
  0x6d   : > { %s6931_s23 = sshll.u32 %s304_s20, 10  ;;  %s9122_s27 = scalar_lea.hbm %s10439_s0, %s7522_s21 }
  0x6e   : > { %s308_s19 = scalar_lea.vmem [#allocation2], %s6931_s23  ;;  %p9124_p7 = pnand %p8354_p5, %p40_p4 }
  0x6f   : > { %s315_s17 = sshll.u32 %s308_s19, 4  ;;  %s9130_s30 = scalar_lea.sflag [#allocation3], %s304_s20  ;;  %s9128_s17 = int_to_ptr.vmem [resolvable:$true] %s315_s17 }
  0x70   : > { %s8837_s26 = scalar_lea.hbm %s9122_s27, 16384  ;;  %p8839_p11 = pneg %p9124_p7 }
  0x71   : > { %p8838_p10 = scmp.ne.s32.totalorder %s9122_s27, %s8837_s26  ;;  %s8842_s14 = scalar_lea.hbm %s10439_s0, 32768 }
  0x72   : > { %p8843_p0 = scmp.lt.u32.totalorder %s9122_s27, %s10439_s0  ;;  %p8844_p2 = scmp.lt.u32.totalorder %s8842_s14, %s8837_s26 }
  0x73   : > { %p8840_p12 = pnand %p8839_p11, %p8838_p10  ;;  %p8846_p6 = scmp.lt.u32.totalorder %s8837_s26, %s9122_s27 }
  0x74   : > { %p8845_p3 = por %p8844_p2, %p8843_p0 }
  0x75   : > { %p8841_p13 = pneg %p8840_p12 }
  0x76   : > { %p8847_p9 = por %p8846_p6, %p8845_p3 }
  0x78   : > { %p8848_p8 = pnand %p8847_p9, %p8841_p13 }
  0x7a   : > { %8851 = shalt.err (!%p8848_p8)
}
  0x7b   : > { %s8852_s20 = scalar_lea.vmem %s9128_s17, 16384  ;;  %s8919_s24 = smov [#allocation2]  }
  0x7c   : > { %p8853_p1 = scmp.ne.s32.totalorder %s9128_s17, %s8852_s20  ;;  %s8857_s13 = sshll.u32 %s8919_s24, 4  ;;  %s8858_s13 = int_to_ptr.vmem [resolvable:$false] %s8857_s13 }
  0x7d   : > { %s8859_s19 = scalar_lea.vmem %s8858_s13, 32768  ;;  %p8860_p10 = scmp.lt.s32.totalorder %s9128_s17, %s8858_s13 }
  0x7e   : > { %p8855_p4 = pnand %p8853_p1, %p8839_p11  ;;  %p8861_p12 = scmp.lt.s32.totalorder %s8859_s19, %s8852_s20 }
  0x80   : > { %p8856_p5 = pneg %p8855_p4  ;;  %p8862_p0 = por %p8861_p12, %p8860_p10 }
  0x82   : > { %p8863_p2 = pnand %p8862_p0, %p8856_p5 }
  0x84   : > { %8866 = shalt.err (!%p8863_p2)
}
  0x85   : > { %s8920_s26 = smov 1024   ;;  %p10518_p11 = scmp.ne.s32.totalorder %s10514_s11, 0 }
  0x86   : > { %8349 = dma.hbm_to_vmem [thread:$0]  (!%p9124_p7), %s9122_s27, 16384, %s9128_s17, %s9130_s30, %s8920_s26, %s8920_s26, %s8915_s25  }
  0x87   : > { %340 = sbr.rel (%p10518_p11) target bundleno = 1570 (0x622), region = 48 }
  0x8e   : > { %s342_s12 = sand.u32 1, %s8901_s28   ;;  %p10519_p13 = scmp.ne.s32.totalorder %s10513_s10, 0 }
  0x8f   : > { %s6935_s15 = sshll.u32 %s342_s12, 10  ;;  %s343_s14 = scalar_lea.sflag [#allocation3], %s342_s12 }
  0x90   : > { %s9162_s21 = scalar_lea.vmem [#allocation2], %s6935_s15 }
  0x91   : > { %8884 = dma.done.wait (%p10519_p13), %s343_s14, 16384  }
  0x92   : > { %8886 = vsyncadd (%p10519_p13), %s343_s14, 4294950912  ;;  %p10520_p3 = scmp.eq.s32.totalorder %s8985_s9, 0 }
  0x94   : > { %8888 = dma.done.wait (%p10520_p3), [#allocation5], 65664   ;;  %p10521_p7 = pmov %p10520_p3 }
  0x95   : > { %p10522_p6 = pmov %p10520_p3 }
  0x96   : > { %8890 = vsyncadd (%p10521_p7), [#allocation5], 4294901632 }
  0x97   : > { %8892 = dma.done.wait (%p10522_p6), [#allocation8], 8208   ;;  %p10523_p9 = pmov %p10520_p3 }
  0x98   : > { %v611_v0 = vld [vmem:[#allocation4] sm:$0xff]  ;;  %v612_v2 = vld [vmem:[#allocation4 + $0x8] sm:$0xff]  ;;  %p404_p8 = scmp.lt.s32.totalorder %s8985_s9, 1  ;;  %vm5775_vm0 = vcmask 1040384   ;;  %vm5776_vm1 = vsmask.f32 256 }
  0x99   : > { %8894 = vsyncadd (%p10523_p9), [#allocation8], 4294959088  ;;  %v615_v1 = vld [vmem:[#allocation4 + $0x20] sm:$0xff]  ;;  %v616_v4 = vld [vmem:[#allocation4 + $0x28] sm:$0xff]  ;;  %vm6761_vm3 = vcmask 1041408  }
  0x9a   : > { %v6943_v3 = vcombine.high %v611_v0, %v615_v1  ;;  %v6942_v5 = vcombine.low %v611_v0, %v615_v1  ;;  %v619_v6 = vld [vmem:[#allocation4 + $0x40] sm:$0xff]  ;;  %v6945_v8 = vcombine.high %v612_v2, %v616_v4  ;;  %v6944_v9 = vcombine.low %v612_v2, %v616_v4  ;;  %v620_v11 = vld [vmem:[#allocation4 + $0x48] sm:$0xff]  ;;  %s10634_s9 = smov (!%p404_p8, %s8985_s9), 1  ;;  %vm10216_vm2 = vmand %vm5775_vm0, %vm5776_vm1 }
  0x9b   : > { %v623_v7 = vld [vmem:[#allocation4 + $0x60] sm:$0xff]  ;;  %v624_v12 = vld [vmem:[#allocation4 + $0x68] sm:$0xff]  ;;  %s6940_s10 = sshll.u32 %s10634_s9, 3  ;;  %s417_s30 = scalar_lea.vmem %s10447_s8, %s10634_s9 }
  0x9c   : > { %v6951_v10 = vcombine.high %v619_v6, %v623_v7  ;;  %v627_v13 = vld [vmem:[#allocation4 + $0x80] sm:$0xff]  ;;  %3725 = vmatprep.subr.bf16.mxu0 %v6943_v3  ;;  %v6953_v14 = vcombine.high %v620_v11, %v624_v12  ;;  %v628_v16 = vld [vmem:[#allocation4 + $0x88] sm:$0xff]  ;;  %4177 = vmatprep.subr.bf16.mxu1 %v6945_v8  ;;  %v6950_v18 = vcombine.low %v619_v6, %v623_v7  ;;  %s407_s27 = scalar_lea.vmem %s10440_s1, %s6940_s10  ;;  %s410_s24 = scalar_lea.vmem %s10441_s2, %s10634_s9 }
  0x9d   : > { %v631_v15 = vld [vmem:[#allocation4 + $0xa0] sm:$0xff]  ;;  %v632_v17 = vld [vmem:[#allocation4 + $0xa8] sm:$0xff]  ;;  %3726 = vmatpush1.bf16.msra.mxu0 %v6942_v5  ;;  %4178 = vmatpush1.bf16.msra.mxu1 %v6944_v9  ;;  %v6952_v19 = vcombine.low %v620_v11, %v624_v12  ;;  %s6941_s13 = sshll.u32 %s10634_s9, 1 }
  0x9e   : > { %3727 = vmatprep.subr.bf16.mxu0 %v6951_v10  ;;  %v6959_v20 = vcombine.high %v627_v13, %v631_v15  ;;  %4179 = vmatprep.subr.bf16.mxu1 %v6953_v14  ;;  %v6961_v21 = vcombine.high %v628_v16, %v632_v17  ;;  %v635_v22 = vld [vmem:[#allocation4 + $0xc0] sm:$0xff]  ;;  %v636_v24 = vld [vmem:[#allocation4 + $0xc8] sm:$0xff]  ;;  %v6958_v26 = vcombine.low %v627_v13, %v631_v15  ;;  %s414_s12 = scalar_lea.vmem %s10446_s7, %s6941_s13 }
  0x9f   : > { %v639_v23 = vld [vmem:[#allocation4 + $0xe0] sm:$0xff]  ;;  %v640_v25 = vld [vmem:[#allocation4 + $0xe8] sm:$0xff]  ;;  %v6960_v27 = vcombine.low %v628_v16, %v632_v17 }
  0xa0   : > { %v6967_v28 = vcombine.high %v635_v22, %v639_v23  ;;  %v6969_v29 = vcombine.high %v636_v24, %v640_v25  ;;  %v643_v30 = vld [vmem:[#allocation4 + $0x100] sm:$0xff]  ;;  %v644_v32 = vld [vmem:[#allocation4 + $0x108] sm:$0xff]  ;;  %v6966_v34 = vcombine.low %v635_v22, %v639_v23  ;;  %v6968_v35 = vcombine.low %v636_v24, %v640_v25 }
  0xa1   : > { %3728 = vmatpush1.bf16.msra.mxu0 %v6950_v18  ;;  %4180 = vmatpush1.bf16.msra.mxu1 %v6952_v19  ;;  %v647_v31 = vld [vmem:[#allocation4 + $0x120] sm:$0xff]  ;;  %v648_v33 = vld [vmem:[#allocation4 + $0x128] sm:$0xff] }
  0xa2   : > { %3729 = vmatprep.subr.bf16.mxu0 %v6959_v20  ;;  %4181 = vmatprep.subr.bf16.mxu1 %v6961_v21  ;;  %v6975_v36 = vcombine.high %v643_v30, %v647_v31  ;;  %v6977_v37 = vcombine.high %v644_v32, %v648_v33  ;;  %v651_v38 = vld [vmem:[#allocation4 + $0x140] sm:$0xff]  ;;  %v652_v40 = vld [vmem:[#allocation4 + $0x148] sm:$0xff]  ;;  %v6974_v42 = vcombine.low %v643_v30, %v647_v31 }
  0xa3   : > { %v655_v39 = vld [vmem:[#allocation4 + $0x160] sm:$0xff]  ;;  %v656_v41 = vld [vmem:[#allocation4 + $0x168] sm:$0xff]  ;;  %v6976_v43 = vcombine.low %v644_v32, %v648_v33 }
  0xa4   : > { %v6983_v44 = vcombine.high %v651_v38, %v655_v39  ;;  %v6985_v45 = vcombine.high %v652_v40, %v656_v41  ;;  %v659_v46 = vld [vmem:[#allocation4 + $0x180] sm:$0xff]  ;;  %v660_v48 = vld [vmem:[#allocation4 + $0x188] sm:$0xff]  ;;  %v6982_v50 = vcombine.low %v651_v38, %v655_v39  ;;  %v6984_v51 = vcombine.low %v652_v40, %v656_v41 }
  0xa5   : > { %3730 = vmatpush1.bf16.msra.mxu0 %v6958_v26  ;;  %4182 = vmatpush1.bf16.msra.mxu1 %v6960_v27  ;;  %v663_v47 = vld [vmem:[#allocation4 + $0x1a0] sm:$0xff]  ;;  %v664_v49 = vld [vmem:[#allocation4 + $0x1a8] sm:$0xff] }
  0xa6   : > { %3731 = vmatprep.subr.bf16.mxu0 %v6967_v28  ;;  %4183 = vmatprep.subr.bf16.mxu1 %v6969_v29  ;;  %v6991_v52 = vcombine.high %v659_v46, %v663_v47  ;;  %v420_v53 = vld [vmem:[%s9162_s21 + $0x8] sm:$0xff]  ;;  %v6993_v55 = vcombine.high %v660_v48, %v664_v49  ;;  %v667_v56 = vld [vmem:[#allocation4 + $0x1c0] sm:$0xff]  ;;  %v6990_v61 = vcombine.low %v659_v46, %v663_v47 }
  0xa7   : > { %v428_v54 = vld [vmem:[%s9162_s21 + $0x48] sm:$0xff]  ;;  %v671_v57 = vld [vmem:[#allocation4 + $0x1e0] sm:$0xff]  ;;  %v6992_v62 = vcombine.low %v660_v48, %v664_v49 }
  0xa8   : > { %v9178_v58 = vpack.c.bf16 %v428_v54, %v420_v53  ;;  %v668_v59 = vld [vmem:[#allocation4 + $0x1c8] sm:$0xff]  ;;  %v6999_v63 = vcombine.high %v667_v56, %v671_v57  ;;  %v675_v1 = vld [vmem:[#allocation4 + $0x200] sm:$0xff]  ;;  %v6998_v5 = vcombine.low %v667_v56, %v671_v57 }
  0xa9   : > { %3732 = vmatpush1.bf16.msra.mxu0 %v6966_v34  ;;  %4184 = vmatpush1.bf16.msra.mxu1 %v6968_v35  ;;  %v672_v60 = vld [vmem:[#allocation4 + $0x1e8] sm:$0xff]  ;;  %v679_v2 = vld [vmem:[#allocation4 + $0x220] sm:$0xff] }
  0xaa   : > { %3733 = vmatprep.subr.bf16.mxu0 %v6975_v36  ;;  %4185 = vmatprep.subr.bf16.mxu1 %v6977_v37  ;;  %v7001_v0 = vcombine.high %v668_v59, %v672_v60  ;;  %v676_v3 = vld [vmem:[#allocation4 + $0x208] sm:$0xff]  ;;  %v7000_v6 = vcombine.low %v668_v59, %v672_v60  ;;  %v7007_v7 = vcombine.high %v675_v1, %v679_v2  ;;  %v683_v9 = vld [vmem:[#allocation4 + $0x240] sm:$0xff] }
  0xab   : > { %3757 = vmatprep.mubr.bf16.mxu0 %v9178_v58  ;;  %4209 = vmatprep.mubr.bf16.mxu1 %v9178_v58  ;;  %v680_v4 = vld [vmem:[#allocation4 + $0x228] sm:$0xff]  ;;  %v687_v10 = vld [vmem:[#allocation4 + $0x260] sm:$0xff]  ;;  %v7006_v13 = vcombine.low %v675_v1, %v679_v2 }
  0xac   : > { %v7009_v8 = vcombine.high %v676_v3, %v680_v4  ;;  %v684_v11 = vld [vmem:[#allocation4 + $0x248] sm:$0xff]  ;;  %v7008_v14 = vcombine.low %v676_v3, %v680_v4  ;;  %v7015_v15 = vcombine.high %v683_v9, %v687_v10  ;;  %v691_v17 = vld [vmem:[#allocation4 + $0x280] sm:$0xff]  ;;  %v7014_v21 = vcombine.low %v683_v9, %v687_v10 }
  0xad   : > { %3734 = vmatpush1.bf16.msra.mxu0 %v6974_v42  ;;  %4186 = vmatpush1.bf16.msra.mxu1 %v6976_v43  ;;  %v688_v12 = vld [vmem:[#allocation4 + $0x268] sm:$0xff]  ;;  %v695_v18 = vld [vmem:[#allocation4 + $0x2a0] sm:$0xff] }
  0xae   : > { %3735 = vmatprep.subr.bf16.mxu0 %v6983_v44  ;;  %4187 = vmatprep.subr.bf16.mxu1 %v6985_v45  ;;  %v7017_v16 = vcombine.high %v684_v11, %v688_v12  ;;  %v692_v19 = vld [vmem:[#allocation4 + $0x288] sm:$0xff]  ;;  %v7016_v22 = vcombine.low %v684_v11, %v688_v12  ;;  %v7023_v23 = vcombine.high %v691_v17, %v695_v18  ;;  %v699_v25 = vld [vmem:[#allocation4 + $0x2c0] sm:$0xff] }
  0xaf   : > { %v696_v20 = vld [vmem:[#allocation4 + $0x2a8] sm:$0xff]  ;;  %v703_v26 = vld [vmem:[#allocation4 + $0x2e0] sm:$0xff]  ;;  %v7022_v29 = vcombine.low %v691_v17, %v695_v18 }
  0xb0   : > { %v7025_v24 = vcombine.high %v692_v19, %v696_v20  ;;  %v700_v27 = vld [vmem:[#allocation4 + $0x2c8] sm:$0xff]  ;;  %v7024_v30 = vcombine.low %v692_v19, %v696_v20  ;;  %v7031_v31 = vcombine.high %v699_v25, %v703_v26  ;;  %v707_v33 = vld [vmem:[#allocation4 + $0x300] sm:$0xff]  ;;  %v7030_v37 = vcombine.low %v699_v25, %v703_v26 }
  0xb1   : > { %3736 = vmatpush1.bf16.msra.mxu0 %v6982_v50  ;;  %4188 = vmatpush1.bf16.msra.mxu1 %v6984_v51  ;;  %v704_v28 = vld [vmem:[#allocation4 + $0x2e8] sm:$0xff]  ;;  %v711_v34 = vld [vmem:[#allocation4 + $0x320] sm:$0xff] }
  0xb2   : > { %3737 = vmatprep.subr.bf16.mxu0 %v6991_v52  ;;  %4189 = vmatprep.subr.bf16.mxu1 %v6993_v55  ;;  %v7033_v32 = vcombine.high %v700_v27, %v704_v28  ;;  %v708_v35 = vld [vmem:[#allocation4 + $0x308] sm:$0xff]  ;;  %v7032_v38 = vcombine.low %v700_v27, %v704_v28  ;;  %v7039_v39 = vcombine.high %v707_v33, %v711_v34  ;;  %v715_v41 = vld [vmem:[#allocation4 + $0x340] sm:$0xff] }
  0xb3   : > { %v712_v36 = vld [vmem:[#allocation4 + $0x328] sm:$0xff]  ;;  %v719_v42 = vld [vmem:[#allocation4 + $0x360] sm:$0xff]  ;;  %v7038_v45 = vcombine.low %v707_v33, %v711_v34 }
  0xb4   : > { %v7041_v40 = vcombine.high %v708_v35, %v712_v36  ;;  %v716_v43 = vld [vmem:[#allocation4 + $0x348] sm:$0xff]  ;;  %v7040_v46 = vcombine.low %v708_v35, %v712_v36  ;;  %v7047_v47 = vcombine.high %v715_v41, %v719_v42  ;;  %v723_v49 = vld [vmem:[#allocation4 + $0x380] sm:$0xff]  ;;  %v7046_v53 = vcombine.low %v715_v41, %v719_v42 }
  0xb5   : > { %3738 = vmatpush1.bf16.msra.mxu0 %v6990_v61  ;;  %4190 = vmatpush1.bf16.msra.mxu1 %v6992_v62  ;;  %v720_v44 = vld [vmem:[#allocation4 + $0x368] sm:$0xff]  ;;  %v727_v50 = vld [vmem:[#allocation4 + $0x3a0] sm:$0xff] }
  0xb6   : > { %3739 = vmatprep.subr.bf16.mxu0 %v6999_v63  ;;  %4191 = vmatprep.subr.bf16.mxu1 %v7001_v0  ;;  %v7049_v48 = vcombine.high %v716_v43, %v720_v44  ;;  %v724_v51 = vld [vmem:[#allocation4 + $0x388] sm:$0xff]  ;;  %v7048_v54 = vcombine.low %v716_v43, %v720_v44  ;;  %v7055_v55 = vcombine.high %v723_v49, %v727_v50  ;;  %v731_v57 = vld [vmem:[#allocation4 + $0x3c0] sm:$0xff] }
  0xb7   : > { %v728_v52 = vld [vmem:[#allocation4 + $0x3a8] sm:$0xff]  ;;  %v735_v59 = vld [vmem:[#allocation4 + $0x3e0] sm:$0xff]  ;;  %v7054_v62 = vcombine.low %v723_v49, %v727_v50 }
  0xb8   : > { %v7057_v56 = vcombine.high %v724_v51, %v728_v52  ;;  %v732_v60 = vld [vmem:[#allocation4 + $0x3c8] sm:$0xff]  ;;  %v7056_v63 = vcombine.low %v724_v51, %v728_v52  ;;  %v7063_v0 = vcombine.high %v731_v57, %v735_v59  ;;  %v739_v2 = vld [vmem:[#allocation4 + $0x400] sm:$0xff] }
  0xb9   : > { %3740 = vmatpush1.bf16.msra.mxu0 %v6998_v5  ;;  %4192 = vmatpush1.bf16.msra.mxu1 %v7000_v6  ;;  %v736_v61 = vld [vmem:[#allocation4 + $0x3e8] sm:$0xff]  ;;  %v743_v3 = vld [vmem:[#allocation4 + $0x420] sm:$0xff]  ;;  %v7062_v6 = vcombine.low %v731_v57, %v735_v59 }
  0xba   : > { %3741 = vmatprep.subr.bf16.mxu0 %v7007_v7  ;;  %4193 = vmatprep.subr.bf16.mxu1 %v7009_v8  ;;  %v7065_v1 = vcombine.high %v732_v60, %v736_v61  ;;  %v740_v4 = vld [vmem:[#allocation4 + $0x408] sm:$0xff]  ;;  %v419_v7 = vld [vmem:[%s9162_s21] sm:$0xff]  ;;  %v7064_v9 = vcombine.low %v732_v60, %v736_v61  ;;  %v7071_v10 = vcombine.high %v739_v2, %v743_v3 }
  0xbb   : > { %v744_v5 = vld [vmem:[#allocation4 + $0x428] sm:$0xff]  ;;  %v427_v8 = vld [vmem:[%s9162_s21 + $0x40] sm:$0xff]  ;;  %v7070_v19 = vcombine.low %v739_v2, %v743_v3 }
  0xbc   : > { %v7073_v11 = vcombine.high %v740_v4, %v744_v5  ;;  %v747_v12 = vld [vmem:[#allocation4 + $0x440] sm:$0xff]  ;;  %v436_v17 = vld [vmem:[%s9162_s21 + $0x88] sm:$0xff]  ;;  %v7072_v20 = vcombine.low %v740_v4, %v744_v5 }
  0xbd   : > { %3742 = vmatpush1.bf16.msra.mxu0 %v7006_v13  ;;  %4194 = vmatpush1.bf16.msra.mxu1 %v7008_v14  ;;  %v751_v13 = vld [vmem:[#allocation4 + $0x460] sm:$0xff]  ;;  %v748_v14 = vld [vmem:[#allocation4 + $0x448] sm:$0xff] }
  0xbe   : > { %3743 = vmatprep.subr.bf16.mxu0 %v7015_v15  ;;  %4195 = vmatprep.subr.bf16.mxu1 %v7017_v16  ;;  %v9184_v15 = vpack.c.bf16 %v427_v8, %v419_v7  ;;  %v752_v16 = vld [vmem:[#allocation4 + $0x468] sm:$0xff]  ;;  %v759_v25 = vld [vmem:[#allocation4 + $0x4a0] sm:$0xff]  ;;  %v7078_v28 = vcombine.low %v747_v12, %v751_v13 }
  0xbf   : > { %v444_v18 = vld [vmem:[%s9162_s21 + $0xc8] sm:$0xff]  ;;  %v763_v34 = vld [vmem:[#allocation4 + $0x4c0] sm:$0xff] }
  0xc0   : > { %v756_v26 = vld [vmem:[#allocation4 + $0x488] sm:$0xff]  ;;  %v767_v35 = vld [vmem:[#allocation4 + $0x4e0] sm:$0xff] }
  0xc1   : > { %3744 = vmatpush1.bf16.msra.mxu0 %v7014_v21  ;;  %4196 = vmatpush1.bf16.msra.mxu1 %v7016_v22  ;;  %v7079_v21 = vcombine.high %v747_v12, %v751_v13  ;;  %v7081_v22 = vcombine.high %v748_v14, %v752_v16  ;;  %v760_v27 = vld [vmem:[#allocation4 + $0x4a8] sm:$0xff]  ;;  %v7095_v43 = vcombine.high %v763_v34, %v767_v35  ;;  %v451_v51 = vld [vmem:[%s9162_s21 + $0x100] sm:$0xff] }
  0xc2   : > { %3745 = vmatprep.subr.bf16.mxu0 %v7023_v23  ;;  %4197 = vmatprep.subr.bf16.mxu1 %v7025_v24  ;;  %v9188_v23 = vpack.c.bf16 %v444_v18, %v436_v17  ;;  %v755_v24 = vld [vmem:[#allocation4 + $0x480] sm:$0xff]  ;;  %v7089_v33 = vcombine.high %v756_v26, %v760_v27  ;;  %v764_v36 = vld [vmem:[#allocation4 + $0x4c8] sm:$0xff]  ;;  %v7088_v42 = vcombine.low %v756_v26, %v760_v27 }
  0xc3   : > { %v7086_v41 = vcombine.low %v755_v24, %v759_v25  ;;  %v776_v49 = vld [vmem:[#allocation4 + $0x528] sm:$0xff]  ;;  %v7094_v50 = vcombine.low %v763_v34, %v767_v35  ;;  %v459_v52 = vld [vmem:[%s9162_s21 + $0x140] sm:$0xff] }
  0xc4   : > { %v783_v57 = vld [vmem:[#allocation4 + $0x560] sm:$0xff]  ;;  %v780_v59 = vld [vmem:[#allocation4 + $0x548] sm:$0xff]  ;;  %v9208_v60 = vpack.c.bf16 %v459_v52, %v451_v51 }
  0xc5   : > { %3746 = vmatpush1.bf16.msra.mxu0 %v7022_v29  ;;  %4198 = vmatpush1.bf16.msra.mxu1 %v7024_v30  ;;  %v435_v29 = vld [vmem:[%s9162_s21 + $0x80] sm:$0xff]  ;;  %v784_v61 = vld [vmem:[#allocation4 + $0x568] sm:$0xff] }
  0xc6   : > { %3747 = vmatprep.subr.bf16.mxu0 %v7031_v31  ;;  %4199 = vmatprep.subr.bf16.mxu1 %v7033_v32  ;;  %v443_v30 = vld [vmem:[%s9162_s21 + $0xc0] sm:$0xff]  ;;  %v7080_v31 = vcombine.low %v748_v14, %v752_v16  ;;  %v7087_v32 = vcombine.high %v755_v24, %v759_v25  ;;  %v7113_v3 = vcombine.high %v780_v59, %v784_v61  ;;  %v788_v7 = vld [vmem:[#allocation4 + $0x588] sm:$0xff] }
  0xc7   : > { %v787_v5 = vld [vmem:[#allocation4 + $0x580] sm:$0xff]  ;;  %v792_v8 = vld [vmem:[#allocation4 + $0x5a8] sm:$0xff]  ;;  %v7112_v12 = vcombine.low %v780_v59, %v784_v61 }
  0xc8   : > { %v7121_v14 = vcombine.high %v788_v7, %v792_v8  ;;  %v795_v16 = vld [vmem:[#allocation4 + $0x5c0] sm:$0xff]  ;;  %v796_v18 = vld [vmem:[#allocation4 + $0x5c8] sm:$0xff]  ;;  %v7120_v25 = vcombine.low %v788_v7, %v792_v8 }
  0xc9   : > { %3748 = vmatpush1.bf16.msra.mxu0 %v7030_v37  ;;  %4200 = vmatpush1.bf16.msra.mxu1 %v7032_v38  ;;  %v9196_v37 = vpack.c.bf16 %v443_v30, %v435_v29  ;;  %v768_v38 = vld [vmem:[#allocation4 + $0x4e8] sm:$0xff]  ;;  %v799_v17 = vld [vmem:[#allocation4 + $0x5e0] sm:$0xff] }
  0xca   : > { %3749 = vmatprep.subr.bf16.mxu0 %v7039_v39  ;;  %4201 = vmatprep.subr.bf16.mxu1 %v7041_v40  ;;  %v452_v39 = vld [vmem:[%s9162_s21 + $0x108] sm:$0xff]  ;;  %v7097_v44 = vcombine.high %v764_v36, %v768_v38  ;;  %v7127_v26 = vcombine.high %v795_v16, %v799_v17  ;;  %v803_v29 = vld [vmem:[#allocation4 + $0x600] sm:$0xff] }
  0xcb   : > { %v460_v40 = vld [vmem:[%s9162_s21 + $0x148] sm:$0xff]  ;;  %v807_v30 = vld [vmem:[#allocation4 + $0x620] sm:$0xff] }
  0xcc   : > { %v483_v34 = vld [vmem:[%s9162_s21 + $0x200] sm:$0xff]  ;;  %v516_v7 = vld [vmem:[%s9162_s21 + $0x308] sm:$0xff] }
  0xcd   : > { %3750 = vmatpush1.bf16.msra.mxu0 %v7038_v45  ;;  %4202 = vmatpush1.bf16.msra.mxu1 %v7040_v46  ;;  %v9200_v45 = vpack.c.bf16 %v460_v40, %v452_v39  ;;  %v771_v46 = vld [vmem:[#allocation4 + $0x500] sm:$0xff]  ;;  %v524_v8 = vld [vmem:[%s9162_s21 + $0x348] sm:$0xff] }
  0xce   : > { %3751 = vmatprep.subr.bf16.mxu0 %v7047_v47  ;;  %4203 = vmatprep.subr.bf16.mxu1 %v7049_v48  ;;  %v775_v47 = vld [vmem:[#allocation4 + $0x520] sm:$0xff]  ;;  %v772_v48 = vld [vmem:[#allocation4 + $0x508] sm:$0xff] }
  0xcf   : > { %v491_v35 = vld [vmem:[%s9162_s21 + $0x240] sm:$0xff] }
  0xd0   : > { %v811_v40 = vld [vmem:[#allocation4 + $0x640] sm:$0xff] }
  0xd1   : > { %3752 = vmatpush1.bf16.msra.mxu0 %v7046_v53  ;;  %4204 = vmatpush1.bf16.msra.mxu1 %v7048_v54  ;;  %v7096_v53 = vcombine.low %v764_v36, %v768_v38  ;;  %v7103_v54 = vcombine.high %v771_v46, %v775_v47  ;;  %v7135_v38 = vcombine.high %v803_v29, %v807_v30  ;;  %v499_v59 = vld [vmem:[%s9162_s21 + $0x280] sm:$0xff] }
  0xd2   : > { %3753 = vmatprep.subr.bf16.mxu0 %v7055_v55  ;;  %4205 = vmatprep.subr.bf16.mxu1 %v7057_v56  ;;  %v7105_v55 = vcombine.high %v772_v48, %v776_v49  ;;  %v779_v56 = vld [vmem:[#allocation4 + $0x540] sm:$0xff] }
  0xd3   : > { %v7111_v2 = vcombine.high %v779_v56, %v783_v57  ;;  %v507_v61 = vld [vmem:[%s9162_s21 + $0x2c0] sm:$0xff] }
  0xd5   : > { %3754 = vmatpush1.bf16.msra.mxu0 %v7054_v62  ;;  %4206 = vmatpush1.bf16.msra.mxu1 %v7056_v63  ;;  %v468_v62 = vld [vmem:[%s9162_s21 + $0x188] sm:$0xff] }
  0xd6   : > { %3755 = vmatprep.subr.bf16.mxu0 %v7063_v0  ;;  %4207 = vmatprep.subr.bf16.mxu1 %v7065_v1  ;;  %v476_v63 = vld [vmem:[%s9162_s21 + $0x1c8] sm:$0xff]  ;;  %v7102_v0 = vcombine.low %v771_v46, %v775_v47  ;;  %v7104_v1 = vcombine.low %v772_v48, %v776_v49  ;;  %v7134_v48 = vcombine.low %v803_v29, %v807_v30 }
  0xd7   : > { %v9212_v4 = vpack.c.bf16 %v476_v63, %v468_v62  ;;  %v500_v46 = vld [vmem:[%s9162_s21 + $0x288] sm:$0xff] }
  0xd8   : > { %v508_v47 = vld [vmem:[%s9162_s21 + $0x2c8] sm:$0xff] }
  0xd9   : > { %3756 = vmatpush1.bf16.msra.mxu0 %v7062_v6  ;;  %4208 = vmatpush1.bf16.msra.mxu1 %v7064_v9  ;;  %v791_v6 = vld [vmem:[#allocation4 + $0x5a0] sm:$0xff]  ;;  %v7110_v9 = vcombine.low %v779_v56, %v783_v57  ;;  %v9236_v52 = vpack.c.bf16 %v508_v47, %v500_v46  ;;  %v824_v56 = vld [vmem:[#allocation4 + $0x6a8] sm:$0xff] }
  0xda   : > { %3838 = vmatprep.subr.bf16.mxu0 %v7071_v10  ;;  %4290 = vmatprep.subr.bf16.mxu1 %v7073_v11  ;;  %v467_v10 = vld [vmem:[%s9162_s21 + $0x180] sm:$0xff]  ;;  %v7119_v13 = vcombine.high %v787_v5, %v791_v6  ;;  %v7118_v24 = vcombine.low %v787_v5, %v791_v6  ;;  %v9244_v5 = vpack.c.bf16 %v507_v61, %v499_v59  ;;  %v832_v6 = vld [vmem:[#allocation4 + $0x6e8] sm:$0xff]  ;;  %v430_v61 = vld [vmem:[%s9162_s21 + $0x58] sm:$0xff] }
  0xdb   : > { %v475_v11 = vld [vmem:[%s9162_s21 + $0x1c0] sm:$0xff]  ;;  %v844_v29 = vld [vmem:[#allocation4 + $0x748] sm:$0xff] }
  0xdc   : > { %3758 = vmatmul.mubr.bf16.vlgmr.msra.gmra.mrb[0].mxu0 %v9184_v15  ;;  %4210 = vmatmul.mubr.bf16.vlgmr.msra.gmra.mrb[0].mxu1 %v9184_v15  ;;  %v848_v30 = vld [vmem:[#allocation4 + $0x768] sm:$0xff]  ;;  %v855_v46 = vld [vmem:[#allocation4 + $0x7a0] sm:$0xff] }
  0xdd   : > { %3839 = vmatpush1.bf16.msra.mxu0 %v7070_v19  ;;  %4291 = vmatpush1.bf16.msra.mxu1 %v7072_v20  ;;  %v9220_v19 = vpack.c.bf16 %v475_v11, %v467_v10  ;;  %v800_v20 = vld [vmem:[#allocation4 + $0x5e8] sm:$0xff] }
  0xde   : > { %3840 = vmatprep.subr.bf16.mxu0 %v7079_v21  ;;  %4292 = vmatprep.subr.bf16.mxu1 %v7081_v22  ;;  %v484_v21 = vld [vmem:[%s9162_s21 + $0x208] sm:$0xff]  ;;  %v7129_v27 = vcombine.high %v796_v18, %v800_v20  ;;  %v7128_v36 = vcombine.low %v796_v18, %v800_v20  ;;  %v523_v18 = vld [vmem:[%s9162_s21 + $0x340] sm:$0xff] }
  0xdf   : > { %3767 = vmatprep.mubr.bf16.mxu0 %v9188_v23  ;;  %4219 = vmatprep.mubr.bf16.mxu1 %v9188_v23  ;;  %v492_v22 = vld [vmem:[%s9162_s21 + $0x248] sm:$0xff] }
  0xe0   : > { %v836_v20 = vld [vmem:[#allocation4 + $0x708] sm:$0xff] }
  0xe1   : > { %3841 = vmatpush1.bf16.msra.mxu0 %v7078_v28  ;;  %4293 = vmatpush1.bf16.msra.mxu1 %v7080_v31  ;;  %v9224_v28 = vpack.c.bf16 %v492_v22, %v484_v21  ;;  %v804_v31 = vld [vmem:[#allocation4 + $0x608] sm:$0xff] }
  0xe2   : > { %3842 = vmatprep.subr.bf16.mxu0 %v7087_v32  ;;  %4294 = vmatprep.subr.bf16.mxu1 %v7089_v33  ;;  %v808_v32 = vld [vmem:[#allocation4 + $0x628] sm:$0xff]  ;;  %v7126_v33 = vcombine.low %v795_v16, %v799_v17  ;;  %v835_v16 = vld [vmem:[#allocation4 + $0x700] sm:$0xff] }
  0xe3   : > { %v7137_v39 = vcombine.high %v804_v31, %v808_v32  ;;  %v7136_v49 = vcombine.low %v804_v31, %v808_v32  ;;  %v839_v17 = vld [vmem:[#allocation4 + $0x720] sm:$0xff]  ;;  %v840_v21 = vld [vmem:[#allocation4 + $0x728] sm:$0xff] }
  0xe4   : > { %3768 = vmatmul.mubr.bf16.gmra.mrb[4].mxu0 %v9196_v37  ;;  %4220 = vmatmul.mubr.bf16.gmra.mrb[4].mxu1 %v9196_v37  ;;  %v532_v31 = vld [vmem:[%s9162_s21 + $0x388] sm:$0xff]  ;;  %v7169_v32 = vcombine.high %v836_v20, %v840_v21 }
  0xe5   : > { %3843 = vmatpush1.bf16.msra.mxu0 %v7086_v41  ;;  %4295 = vmatpush1.bf16.msra.mxu1 %v7088_v42  ;;  %v815_v41 = vld [vmem:[#allocation4 + $0x660] sm:$0xff]  ;;  %v812_v42 = vld [vmem:[#allocation4 + $0x648] sm:$0xff] }
  0xe6   : > { %3844 = vmatprep.subr.bf16.mxu0 %v7095_v43  ;;  %4296 = vmatprep.subr.bf16.mxu1 %v7097_v44  ;;  %v9232_v43 = vpack.c.bf16 %v491_v35, %v483_v34  ;;  %v816_v44 = vld [vmem:[#allocation4 + $0x668] sm:$0xff]  ;;  %v7142_v57 = vcombine.low %v811_v40, %v815_v41  ;;  %v7166_v35 = vcombine.low %v835_v16, %v839_v17 }
  0xe7   : > { %3777 = vmatprep.mubr.bf16.mxu0 %v9200_v45  ;;  %4229 = vmatprep.mubr.bf16.mxu1 %v9200_v45  ;;  %v7145_v51 = vcombine.high %v812_v42, %v816_v44  ;;  %v7144_v62 = vcombine.low %v812_v42, %v816_v44  ;;  %v531_v42 = vld [vmem:[%s9162_s21 + $0x380] sm:$0xff]  ;;  %v852_v47 = vld [vmem:[#allocation4 + $0x788] sm:$0xff] }
  0xe8   : > { %v539_v44 = vld [vmem:[%s9162_s21 + $0x3c0] sm:$0xff] }
  0xe9   : > { %3845 = vmatpush1.bf16.msra.mxu0 %v7094_v50  ;;  %4297 = vmatpush1.bf16.msra.mxu1 %v7096_v53  ;;  %v7143_v50 = vcombine.high %v811_v40, %v815_v41  ;;  %v819_v53 = vld [vmem:[#allocation4 + $0x680] sm:$0xff]  ;;  %v7177_v40 = vcombine.high %v844_v29, %v848_v30 }
  0xea   : > { %3846 = vmatprep.subr.bf16.mxu0 %v7103_v54  ;;  %4298 = vmatprep.subr.bf16.mxu1 %v7105_v55  ;;  %v823_v54 = vld [vmem:[#allocation4 + $0x6a0] sm:$0xff]  ;;  %v820_v55 = vld [vmem:[#allocation4 + $0x688] sm:$0xff] }
  0xeb   : > { %v7151_v63 = vcombine.high %v819_v53, %v823_v54  ;;  %v7152_v10 = vcombine.low %v820_v55, %v824_v56 }
  0xec   : > { %3778 = vmatmul.mubr.bf16.gmra.mrb[8].mxu0 %v9208_v60  ;;  %4230 = vmatmul.mubr.bf16.gmra.mrb[8].mxu1 %v9208_v60 }
  0xed   : > { %3847 = vmatpush1.bf16.msra.mxu0 %v7102_v0  ;;  %4299 = vmatpush1.bf16.msra.mxu1 %v7104_v1  ;;  %v7153_v0 = vcombine.high %v820_v55, %v824_v56  ;;  %v827_v1 = vld [vmem:[#allocation4 + $0x6c0] sm:$0xff]  ;;  %v860_v55 = vld [vmem:[#allocation4 + $0x7c8] sm:$0xff] }
  0xee   : > { %3848 = vmatprep.subr.bf16.mxu0 %v7111_v2  ;;  %4300 = vmatprep.subr.bf16.mxu1 %v7113_v3  ;;  %v831_v2 = vld [vmem:[#allocation4 + $0x6e0] sm:$0xff]  ;;  %v828_v3 = vld [vmem:[#allocation4 + $0x6c8] sm:$0xff] }
  0xef   : > { %3787 = vmatprep.mubr.bf16.mxu0 %v9212_v4  ;;  %4239 = vmatprep.mubr.bf16.mxu1 %v9212_v4  ;;  %v7159_v11 = vcombine.high %v827_v1, %v831_v2  ;;  %v7158_v22 = vcombine.low %v827_v1, %v831_v2  ;;  %v864_v56 = vld [vmem:[#allocation4 + $0x7e8] sm:$0xff]  ;;  %v867_v2 = vld [vmem:[#allocation4 + $0x800] sm:$0xff] }
  0xf1   : > { %3849 = vmatpush1.bf16.msra.mxu0 %v7110_v9  ;;  %4301 = vmatpush1.bf16.msra.mxu1 %v7112_v12  ;;  %v7150_v9 = vcombine.low %v819_v53, %v823_v54  ;;  %v7161_v12 = vcombine.high %v828_v3, %v832_v6  ;;  %v7176_v53 = vcombine.low %v844_v29, %v848_v30 }
  0xf2   : > { %3850 = vmatprep.subr.bf16.mxu0 %v7119_v13  ;;  %4302 = vmatprep.subr.bf16.mxu1 %v7121_v14  ;;  %v9248_v13 = vpack.c.bf16 %v524_v8, %v516_v7  ;;  %v515_v14 = vld [vmem:[%s9162_s21 + $0x300] sm:$0xff]  ;;  %v421_v7 = vld [vmem:[%s9162_s21 + $0x10] sm:$0xff] }
  0xf3   : > { %v9258_v34 = vpack.c.bf16 %v523_v18, %v515_v14  ;;  %v429_v8 = vld [vmem:[%s9162_s21 + $0x50] sm:$0xff]  ;;  %v875_v14 = vld [vmem:[#allocation4 + $0x840] sm:$0xff] }
  0xf4   : > { %3788 = vmatmul.mubr.bf16.gmra.mrb[12].mxu0 %v9220_v19  ;;  %4240 = vmatmul.mubr.bf16.gmra.mrb[12].mxu1 %v9220_v19 }
  0xf5   : > { %3851 = vmatpush1.bf16.msra.mxu0 %v7118_v24  ;;  %4303 = vmatpush1.bf16.msra.mxu1 %v7120_v25  ;;  %v843_v24 = vld [vmem:[#allocation4 + $0x740] sm:$0xff] }
  0xf6   : > { %3852 = vmatprep.subr.bf16.mxu0 %v7127_v26  ;;  %4304 = vmatprep.subr.bf16.mxu1 %v7129_v27  ;;  %v847_v25 = vld [vmem:[#allocation4 + $0x760] sm:$0xff]  ;;  %v7160_v26 = vcombine.low %v828_v3, %v832_v6  ;;  %v7167_v27 = vcombine.high %v835_v16, %v839_v17  ;;  %v7193_v3 = vcombine.high %v860_v55, %v864_v56 }
  0xf7   : > { %3797 = vmatprep.mubr.bf16.mxu0 %v9224_v28  ;;  %4249 = vmatprep.mubr.bf16.mxu1 %v9224_v28  ;;  %v879_v16 = vld [vmem:[#allocation4 + $0x860] sm:$0xff]  ;;  %v7192_v17 = vcombine.low %v860_v55, %v864_v56 }
  0xf8   : > { %v7207_v30 = vcombine.high %v875_v14, %v879_v16 }
  0xf9   : > { %3853 = vmatpush1.bf16.msra.mxu0 %v7126_v33  ;;  %4305 = vmatpush1.bf16.msra.mxu1 %v7128_v36  ;;  %v540_v33 = vld [vmem:[%s9162_s21 + $0x3c8] sm:$0xff]  ;;  %v7168_v36 = vcombine.low %v836_v20, %v840_v21 }
  0xfa   : > { %3854 = vmatprep.subr.bf16.mxu0 %v7135_v38  ;;  %4306 = vmatprep.subr.bf16.mxu1 %v7137_v39  ;;  %v7175_v38 = vcombine.high %v843_v24, %v847_v25  ;;  %v851_v39 = vld [vmem:[#allocation4 + $0x780] sm:$0xff]  ;;  %v9260_v41 = vpack.c.bf16 %v540_v33, %v532_v31  ;;  %v876_v20 = vld [vmem:[#allocation4 + $0x848] sm:$0xff] }
  0xfb   : > { %v7183_v54 = vcombine.high %v851_v39, %v855_v46  ;;  %v880_v21 = vld [vmem:[#allocation4 + $0x868] sm:$0xff]  ;;  %v883_v31 = vld [vmem:[#allocation4 + $0x880] sm:$0xff] }
  0xfc   : > { %3798 = vmatmul.mubr.bf16.gmra.mrb[16].mxu0 %v9232_v43  ;;  %4250 = vmatmul.mubr.bf16.gmra.mrb[16].mxu1 %v9232_v43 }
  0xfd   : > { %3855 = vmatpush1.bf16.msra.mxu0 %v7134_v48  ;;  %4307 = vmatpush1.bf16.msra.mxu1 %v7136_v49  ;;  %v856_v48 = vld [vmem:[#allocation4 + $0x7a8] sm:$0xff]  ;;  %v7174_v49 = vcombine.low %v843_v24, %v847_v25  ;;  %v446_v25 = vld [vmem:[%s9162_s21 + $0xd8] sm:$0xff] }
  0xfe   : > { %3856 = vmatprep.subr.bf16.mxu0 %v7143_v50  ;;  %4308 = vmatprep.subr.bf16.mxu1 %v7145_v51  ;;  %v859_v50 = vld [vmem:[#allocation4 + $0x7c0] sm:$0xff]  ;;  %v7185_v59 = vcombine.high %v852_v47, %v856_v48 }
  0xff   : > { %3807 = vmatprep.mubr.bf16.mxu0 %v9236_v52  ;;  %4259 = vmatprep.mubr.bf16.mxu1 %v9236_v52  ;;  %v863_v51 = vld [vmem:[#allocation4 + $0x7e0] sm:$0xff] }
 0x100   : > { %v7191_v1 = vcombine.high %v859_v50, %v863_v51 }
 0x101   : > { %3857 = vmatpush1.bf16.msra.mxu0 %v7142_v57  ;;  %4309 = vmatpush1.bf16.msra.mxu1 %v7144_v62  ;;  %v422_v57 = vld [vmem:[%s9162_s21 + $0x18] sm:$0xff]  ;;  %v9270_v62 = vpack.c.bf16 %v539_v44, %v531_v42  ;;  %v7206_v42 = vcombine.low %v875_v14, %v879_v16  ;;  %v891_v44 = vld [vmem:[#allocation4 + $0x8c0] sm:$0xff]  ;;  %v908_v16 = vld [vmem:[#allocation4 + $0x948] sm:$0xff] }
 0x102   : > { %3858 = vmatprep.subr.bf16.mxu0 %v7151_v63  ;;  %4310 = vmatprep.subr.bf16.mxu1 %v7153_v0  ;;  %v7182_v63 = vcombine.low %v851_v39, %v855_v46  ;;  %v7184_v0 = vcombine.low %v852_v47, %v856_v48  ;;  %v9272_v6 = vpack.c.bf16 %v430_v61, %v422_v57  ;;  %v884_v39 = vld [vmem:[#allocation4 + $0x888] sm:$0xff]  ;;  %v895_v46 = vld [vmem:[#allocation4 + $0x8e0] sm:$0xff] }
 0x103   : > { %v7208_v47 = vcombine.low %v876_v20, %v880_v21  ;;  %v899_v61 = vld [vmem:[#allocation4 + $0x900] sm:$0xff] }
 0x104   : > { %3808 = vmatmul.mubr.bf16.gmra.mrb[20].mxu0 %v9244_v5  ;;  %4260 = vmatmul.mubr.bf16.gmra.mrb[20].mxu1 %v9244_v5 }
 0x105   : > { %3859 = vmatpush1.bf16.msra.mxu0 %v7150_v9  ;;  %4311 = vmatpush1.bf16.msra.mxu1 %v7152_v10  ;;  %v871_v9 = vld [vmem:[#allocation4 + $0x820] sm:$0xff]  ;;  %v868_v10 = vld [vmem:[#allocation4 + $0x808] sm:$0xff] }
 0x106   : > { %3860 = vmatprep.subr.bf16.mxu0 %v7159_v11  ;;  %4312 = vmatprep.subr.bf16.mxu1 %v7161_v12  ;;  %v872_v11 = vld [vmem:[#allocation4 + $0x828] sm:$0xff]  ;;  %v7190_v12 = vcombine.low %v859_v50, %v863_v51  ;;  %v7199_v18 = vcombine.high %v867_v2, %v871_v9  ;;  %v454_v51 = vld [vmem:[%s9162_s21 + $0x118] sm:$0xff] }
 0x107   : > { %3817 = vmatprep.mubr.bf16.mxu0 %v9248_v13  ;;  %4269 = vmatprep.mubr.bf16.mxu1 %v9248_v13  ;;  %v7201_v24 = vcombine.high %v868_v10, %v872_v11  ;;  %v7200_v29 = vcombine.low %v868_v10, %v872_v11  ;;  %v896_v50 = vld [vmem:[#allocation4 + $0x8e8] sm:$0xff]  ;;  %v907_v10 = vld [vmem:[#allocation4 + $0x940] sm:$0xff] }
 0x108   : > { %v911_v11 = vld [vmem:[#allocation4 + $0x960] sm:$0xff] }
 0x109   : > { %3861 = vmatpush1.bf16.msra.mxu0 %v7158_v22  ;;  %4313 = vmatpush1.bf16.msra.mxu1 %v7160_v26  ;;  %v438_v22 = vld [vmem:[%s9162_s21 + $0x98] sm:$0xff]  ;;  %v9282_v26 = vpack.c.bf16 %v429_v8, %v421_v7  ;;  %v900_v7 = vld [vmem:[#allocation4 + $0x908] sm:$0xff] }
 0x10a   : > { %3862 = vmatprep.subr.bf16.mxu0 %v7167_v27  ;;  %4314 = vmatprep.subr.bf16.mxu1 %v7169_v32  ;;  %v7198_v27 = vcombine.low %v867_v2, %v871_v9  ;;  %v7209_v32 = vcombine.high %v876_v20, %v880_v21  ;;  %v9284_v33 = vpack.c.bf16 %v446_v25, %v438_v22  ;;  %v461_v2 = vld [vmem:[%s9162_s21 + $0x150] sm:$0xff]  ;;  %v904_v8 = vld [vmem:[#allocation4 + $0x928] sm:$0xff]  ;;  %v478_v21 = vld [vmem:[%s9162_s21 + $0x1d8] sm:$0xff] }
 0x10b   : > { %v7222_v9 = vcombine.low %v891_v44, %v895_v46  ;;  %v7233_v20 = vcombine.high %v900_v7, %v904_v8  ;;  %v7232_v25 = vcombine.low %v900_v7, %v904_v8  ;;  %v935_v7 = vld [vmem:[#allocation4 + $0xa20] sm:$0xff]  ;;  %v932_v8 = vld [vmem:[#allocation4 + $0xa08] sm:$0xff] }
 0x10c   : > { %3818 = vmatmul.mubr.bf16.gmra.mrb[24].mxu0 %v9258_v34  ;;  %4270 = vmatmul.mubr.bf16.gmra.mrb[24].mxu1 %v9258_v34 }
 0x10d   : > { %3863 = vmatpush1.bf16.msra.mxu0 %v7166_v35  ;;  %4315 = vmatpush1.bf16.msra.mxu1 %v7168_v36  ;;  %v437_v35 = vld [vmem:[%s9162_s21 + $0x90] sm:$0xff] }
 0x10e   : > { %3864 = vmatprep.subr.bf16.mxu0 %v7175_v38  ;;  %4316 = vmatprep.subr.bf16.mxu1 %v7177_v40  ;;  %v445_v36 = vld [vmem:[%s9162_s21 + $0xd0] sm:$0xff]  ;;  %v887_v38 = vld [vmem:[#allocation4 + $0x8a0] sm:$0xff]  ;;  %v888_v40 = vld [vmem:[#allocation4 + $0x8a8] sm:$0xff] }
 0x10f   : > { %3827 = vmatprep.mubr.bf16.mxu0 %v9260_v41  ;;  %4279 = vmatprep.mubr.bf16.mxu1 %v9260_v41  ;;  %v7215_v48 = vcombine.high %v883_v31, %v887_v38  ;;  %v9294_v55 = vpack.c.bf16 %v445_v36, %v437_v35  ;;  %v7214_v56 = vcombine.low %v883_v31, %v887_v38  ;;  %v477_v35 = vld [vmem:[%s9162_s21 + $0x1d0] sm:$0xff]  ;;  %v919_v36 = vld [vmem:[#allocation4 + $0x9a0] sm:$0xff]  ;;  %v916_v38 = vld [vmem:[#allocation4 + $0x988] sm:$0xff] }
 0x110   : > { %v7216_v57 = vcombine.low %v884_v39, %v888_v40 }
 0x111   : > { %3865 = vmatpush1.bf16.msra.mxu0 %v7174_v49  ;;  %4317 = vmatpush1.bf16.msra.mxu1 %v7176_v53  ;;  %v892_v49 = vld [vmem:[#allocation4 + $0x8c8] sm:$0xff]  ;;  %v7217_v53 = vcombine.high %v884_v39, %v888_v40  ;;  %v7238_v40 = vcombine.low %v907_v10, %v911_v11 }
 0x112   : > { %3866 = vmatprep.subr.bf16.mxu0 %v7183_v54  ;;  %4318 = vmatprep.subr.bf16.mxu1 %v7185_v59  ;;  %v462_v54 = vld [vmem:[%s9162_s21 + $0x158] sm:$0xff]  ;;  %v7223_v59 = vcombine.high %v891_v44, %v895_v46  ;;  %v920_v39 = vld [vmem:[#allocation4 + $0x9a8] sm:$0xff]  ;;  %v927_v44 = vld [vmem:[#allocation4 + $0x9e0] sm:$0xff] }
 0x114   : > { %3828 = vmatmul.mubr.bf16.gmra.mrb[28].mxu0 %v9270_v62  ;;  %4280 = vmatmul.mubr.bf16.gmra.mrb[28].mxu1 %v9270_v62 }
 0x115   : > { %3867 = vmatpush1.bf16.msra.mxu0 %v7182_v63  ;;  %4319 = vmatpush1.bf16.msra.mxu1 %v7184_v0  ;;  %v7225_v63 = vcombine.high %v892_v49, %v896_v50  ;;  %v9296_v0 = vpack.c.bf16 %v462_v54, %v454_v51  ;;  %v7249_v51 = vcombine.high %v916_v38, %v920_v39 }
 0x116   : > { %3868 = vmatprep.subr.bf16.mxu0 %v7191_v1  ;;  %4320 = vmatprep.subr.bf16.mxu1 %v7193_v3  ;;  %v453_v1 = vld [vmem:[%s9162_s21 + $0x110] sm:$0xff]  ;;  %v903_v3 = vld [vmem:[#allocation4 + $0x920] sm:$0xff] }
 0x117   : > { %3870 = vmatprep.mubr.bf16.mxu0 %v9272_v6  ;;  %4322 = vmatprep.mubr.bf16.mxu1 %v9272_v6  ;;  %v7231_v14 = vcombine.high %v899_v61, %v903_v3  ;;  %v9306_v22 = vpack.c.bf16 %v461_v2, %v453_v1  ;;  %v485_v2 = vld [vmem:[%s9162_s21 + $0x210] sm:$0xff] }
 0x119   : > { %3869 = vmatpush1.bf16.msra.mxu0 %v7190_v12  ;;  %4321 = vmatpush1.bf16.msra.mxu1 %v7192_v17  ;;  %v7224_v12 = vcombine.low %v892_v49, %v896_v50  ;;  %v912_v17 = vld [vmem:[#allocation4 + $0x968] sm:$0xff]  ;;  %v486_v50 = vld [vmem:[%s9162_s21 + $0x218] sm:$0xff] }
 0x11a   : > { %3951 = vmatprep.subr.bf16.mxu0 %v7199_v18  ;;  %4403 = vmatprep.subr.bf16.mxu1 %v7201_v24  ;;  %v470_v18 = vld [vmem:[%s9162_s21 + $0x198] sm:$0xff]  ;;  %v7230_v24 = vcombine.low %v899_v61, %v903_v3  ;;  %v7240_v46 = vcombine.low %v908_v16, %v912_v17  ;;  %v928_v49 = vld [vmem:[#allocation4 + $0x9e8] sm:$0xff]  ;;  %v931_v61 = vld [vmem:[#allocation4 + $0xa00] sm:$0xff] }
 0x11b   : > { %v9308_v31 = vpack.c.bf16 %v478_v21, %v470_v18  ;;  %v493_v3 = vld [vmem:[%s9162_s21 + $0x250] sm:$0xff]  ;;  %v944_v18 = vld [vmem:[#allocation4 + $0xa68] sm:$0xff] }
 0x11c   : > { %3871 = vmatmul.mubr.bf16.vlgmr.msra.gmra.mrb[0].mxu0 %v9282_v26  ;;  %4323 = vmatmul.mubr.bf16.vlgmr.msra.gmra.mrb[0].mxu1 %v9282_v26 }
 0x11d   : > { %3952 = vmatpush1.bf16.msra.mxu0 %v7198_v27  ;;  %4404 = vmatpush1.bf16.msra.mxu1 %v7200_v29  ;;  %v7239_v27 = vcombine.high %v907_v10, %v911_v11  ;;  %v915_v29 = vld [vmem:[#allocation4 + $0x980] sm:$0xff] }
 0x11e   : > { %3953 = vmatprep.subr.bf16.mxu0 %v7207_v30  ;;  %4405 = vmatprep.subr.bf16.mxu1 %v7209_v32  ;;  %v7241_v30 = vcombine.high %v908_v16, %v912_v17  ;;  %v469_v32 = vld [vmem:[%s9162_s21 + $0x190] sm:$0xff]  ;;  %v939_v11 = vld [vmem:[#allocation4 + $0xa40] sm:$0xff]  ;;  %v7263_v16 = vcombine.high %v931_v61, %v935_v7  ;;  %v940_v17 = vld [vmem:[#allocation4 + $0xa48] sm:$0xff] }
 0x11f   : > { %3880 = vmatprep.mubr.bf16.mxu0 %v9284_v33  ;;  %4332 = vmatprep.mubr.bf16.mxu1 %v9284_v33  ;;  %v9318_v54 = vpack.c.bf16 %v477_v35, %v469_v32  ;;  %v947_v32 = vld [vmem:[#allocation4 + $0xa80] sm:$0xff]  ;;  %v7273_v35 = vcombine.high %v940_v17, %v944_v18 }
 0x121   : > { %3954 = vmatpush1.bf16.msra.mxu0 %v7206_v42  ;;  %4406 = vmatpush1.bf16.msra.mxu1 %v7208_v47  ;;  %v923_v42 = vld [vmem:[#allocation4 + $0x9c0] sm:$0xff]  ;;  %v7247_v47 = vcombine.high %v915_v29, %v919_v36 }
 0x122   : > { %3955 = vmatprep.subr.bf16.mxu0 %v7215_v48  ;;  %4407 = vmatprep.subr.bf16.mxu1 %v7217_v53  ;;  %v924_v48 = vld [vmem:[#allocation4 + $0x9c8] sm:$0xff]  ;;  %v494_v53 = vld [vmem:[%s9162_s21 + $0x258] sm:$0xff]  ;;  %v7254_v10 = vcombine.low %v923_v42, %v927_v44 }
 0x123   : > { %v9320_v1 = vpack.c.bf16 %v494_v53, %v486_v50  ;;  %v960_v53 = vld [vmem:[#allocation4 + $0xae8] sm:$0xff] }
 0x124   : > { %3881 = vmatmul.mubr.bf16.gmra.mrb[4].mxu0 %v9294_v55  ;;  %4333 = vmatmul.mubr.bf16.gmra.mrb[4].mxu1 %v9294_v55 }
 0x125   : > { %3956 = vmatpush1.bf16.msra.mxu0 %v7214_v56  ;;  %4408 = vmatpush1.bf16.msra.mxu1 %v7216_v57  ;;  %v7246_v56 = vcombine.low %v915_v29, %v919_v36  ;;  %v7248_v57 = vcombine.low %v916_v38, %v920_v39  ;;  %v501_v38 = vld [vmem:[%s9162_s21 + $0x290] sm:$0xff] }
 0x126   : > { %3957 = vmatprep.subr.bf16.mxu0 %v7223_v59  ;;  %4409 = vmatprep.subr.bf16.mxu1 %v7225_v63  ;;  %v7255_v59 = vcombine.high %v923_v42, %v927_v44  ;;  %v7257_v63 = vcombine.high %v924_v48, %v928_v49  ;;  %v509_v39 = vld [vmem:[%s9162_s21 + $0x2d0] sm:$0xff]  ;;  %v948_v42 = vld [vmem:[#allocation4 + $0xa88] sm:$0xff] }
 0x127   : > { %3890 = vmatprep.mubr.bf16.mxu0 %v9296_v0  ;;  %4342 = vmatprep.mubr.bf16.mxu1 %v9296_v0  ;;  %v952_v44 = vld [vmem:[#allocation4 + $0xaa8] sm:$0xff] }
 0x129   : > { %3958 = vmatpush1.bf16.msra.mxu0 %v7222_v9  ;;  %4410 = vmatpush1.bf16.msra.mxu1 %v7224_v12  ;;  %v936_v9 = vld [vmem:[#allocation4 + $0xa28] sm:$0xff]  ;;  %v943_v12 = vld [vmem:[#allocation4 + $0xa60] sm:$0xff] }
 0x12a   : > { %3959 = vmatprep.subr.bf16.mxu0 %v7231_v14  ;;  %4411 = vmatprep.subr.bf16.mxu1 %v7233_v20  ;;  %v7256_v14 = vcombine.low %v924_v48, %v928_v49  ;;  %v502_v20 = vld [vmem:[%s9162_s21 + $0x298] sm:$0xff]  ;;  %v7265_v21 = vcombine.high %v932_v8, %v936_v9  ;;  %v7264_v29 = vcombine.low %v932_v8, %v936_v9  ;;  %v959_v48 = vld [vmem:[#allocation4 + $0xae0] sm:$0xff] }
 0x12b   : > { %v7272_v49 = vcombine.low %v940_v17, %v944_v18  ;;  %v971_v18 = vld [vmem:[#allocation4 + $0xb40] sm:$0xff] }
 0x12c   : > { %3891 = vmatmul.mubr.bf16.gmra.mrb[8].mxu0 %v9306_v22  ;;  %4343 = vmatmul.mubr.bf16.gmra.mrb[8].mxu1 %v9306_v22 }
 0x12d   : > { %3960 = vmatpush1.bf16.msra.mxu0 %v7230_v24  ;;  %4412 = vmatpush1.bf16.msra.mxu1 %v7232_v25  ;;  %v510_v24 = vld [vmem:[%s9162_s21 + $0x2d8] sm:$0xff]  ;;  %v9330_v25 = vpack.c.bf16 %v493_v3, %v485_v2  ;;  %v7280_v2 = vcombine.low %v948_v42, %v952_v44 }
 0x12e   : > { %3961 = vmatprep.subr.bf16.mxu0 %v7239_v27  ;;  %4413 = vmatprep.subr.bf16.mxu1 %v7241_v30  ;;  %v7262_v27 = vcombine.low %v931_v61, %v935_v7  ;;  %v7271_v30 = vcombine.high %v939_v11, %v943_v12  ;;  %v9332_v36 = vpack.c.bf16 %v510_v24, %v502_v20  ;;  %v963_v7 = vld [vmem:[#allocation4 + $0xb00] sm:$0xff] }
 0x12f   : > { %3900 = vmatprep.mubr.bf16.mxu0 %v9308_v31  ;;  %4352 = vmatprep.mubr.bf16.mxu1 %v9308_v31  ;;  %v9342_v61 = vpack.c.bf16 %v509_v39, %v501_v38  ;;  %v975_v20 = vld [vmem:[#allocation4 + $0xb60] sm:$0xff] }
 0x131   : > { %3962 = vmatpush1.bf16.msra.mxu0 %v7238_v40  ;;  %4414 = vmatpush1.bf16.msra.mxu1 %v7240_v46  ;;  %v951_v40 = vld [vmem:[#allocation4 + $0xaa0] sm:$0xff]  ;;  %v7270_v46 = vcombine.low %v939_v11, %v943_v12  ;;  %v525_v11 = vld [vmem:[%s9162_s21 + $0x350] sm:$0xff] }
 0x132   : > { %3963 = vmatprep.subr.bf16.mxu0 %v7247_v47  ;;  %4415 = vmatprep.subr.bf16.mxu1 %v7249_v51  ;;  %v955_v47 = vld [vmem:[#allocation4 + $0xac0] sm:$0xff]  ;;  %v7279_v50 = vcombine.high %v947_v32, %v951_v40  ;;  %v956_v51 = vld [vmem:[#allocation4 + $0xac8] sm:$0xff] }
 0x133   : > { %v7287_v3 = vcombine.high %v955_v47, %v959_v48  ;;  %v7289_v8 = vcombine.high %v956_v51, %v960_v53  ;;  %v967_v12 = vld [vmem:[#allocation4 + $0xb20] sm:$0xff]  ;;  %v7286_v17 = vcombine.low %v955_v47, %v959_v48  ;;  %v533_v48 = vld [vmem:[%s9162_s21 + $0x390] sm:$0xff] }
 0x134   : > { %3901 = vmatmul.mubr.bf16.gmra.mrb[12].mxu0 %v9318_v54  ;;  %4353 = vmatmul.mubr.bf16.gmra.mrb[12].mxu1 %v9318_v54  ;;  %v7295_v24 = vcombine.high %v963_v7, %v967_v12  ;;  %v7294_v39 = vcombine.low %v963_v7, %v967_v12  ;;  %v992_v7 = vld [vmem:[#allocation4 + $0xbe8] sm:$0xff] }
 0x135   : > { %3964 = vmatpush1.bf16.msra.mxu0 %v7246_v56  ;;  %4416 = vmatpush1.bf16.msra.mxu1 %v7248_v57  ;;  %v518_v56 = vld [vmem:[%s9162_s21 + $0x318] sm:$0xff]  ;;  %v7281_v57 = vcombine.high %v948_v42, %v952_v44  ;;  %v7303_v42 = vcombine.high %v971_v18, %v975_v20  ;;  %v979_v44 = vld [vmem:[#allocation4 + $0xb80] sm:$0xff] }
 0x136   : > { %3965 = vmatprep.subr.bf16.mxu0 %v7255_v59  ;;  %4417 = vmatprep.subr.bf16.mxu1 %v7257_v63  ;;  %v526_v59 = vld [vmem:[%s9162_s21 + $0x358] sm:$0xff]  ;;  %v7278_v63 = vcombine.low %v947_v32, %v951_v40 }
 0x137   : > { %3910 = vmatprep.mubr.bf16.mxu0 %v9320_v1  ;;  %4362 = vmatprep.mubr.bf16.mxu1 %v9320_v1  ;;  %v9344_v9 = vpack.c.bf16 %v526_v59, %v518_v56  ;;  %v7302_v56 = vcombine.low %v971_v18, %v975_v20  ;;  %v991_v59 = vld [vmem:[#allocation4 + $0xbe0] sm:$0xff] }
 0x138   : > { %v995_v18 = vld [vmem:[#allocation4 + $0xc00] sm:$0xff] }
 0x139   : > { %3966 = vmatpush1.bf16.msra.mxu0 %v7254_v10  ;;  %4418 = vmatpush1.bf16.msra.mxu1 %v7256_v14  ;;  %v517_v10 = vld [vmem:[%s9162_s21 + $0x310] sm:$0xff]  ;;  %v964_v14 = vld [vmem:[#allocation4 + $0xb08] sm:$0xff] }
 0x13a   : > { %3967 = vmatprep.subr.bf16.mxu0 %v7263_v16  ;;  %4419 = vmatprep.subr.bf16.mxu1 %v7265_v21  ;;  %v968_v16 = vld [vmem:[#allocation4 + $0xb28] sm:$0xff]  ;;  %v7288_v21 = vcombine.low %v956_v51, %v960_v53  ;;  %v9354_v38 = vpack.c.bf16 %v525_v11, %v517_v10 }
 0x13b   : > { %v7297_v32 = vcombine.high %v964_v14, %v968_v16  ;;  %v7296_v40 = vcombine.low %v964_v14, %v968_v16  ;;  %v980_v51 = vld [vmem:[#allocation4 + $0xb88] sm:$0xff] }
 0x13c   : > { %3911 = vmatmul.mubr.bf16.gmra.mrb[16].mxu0 %v9330_v25  ;;  %4363 = vmatmul.mubr.bf16.gmra.mrb[16].mxu1 %v9330_v25  ;;  %v984_v53 = vld [vmem:[#allocation4 + $0xba8] sm:$0xff] }
 0x13d   : > { %3968 = vmatpush1.bf16.msra.mxu0 %v7262_v27  ;;  %4420 = vmatpush1.bf16.msra.mxu1 %v7264_v29  ;;  %v972_v27 = vld [vmem:[#allocation4 + $0xb48] sm:$0xff]  ;;  %v7313_v10 = vcombine.high %v980_v51, %v984_v53  ;;  %v7312_v16 = vcombine.low %v980_v51, %v984_v53 }
 0x13e   : > { %3969 = vmatprep.subr.bf16.mxu0 %v7271_v30  ;;  %4421 = vmatprep.subr.bf16.mxu1 %v7273_v35  ;;  %v976_v29 = vld [vmem:[#allocation4 + $0xb68] sm:$0xff]  ;;  %v534_v30 = vld [vmem:[%s9162_s21 + $0x398] sm:$0xff] }
 0x13f   : > { %3920 = vmatprep.mubr.bf16.mxu0 %v9332_v36  ;;  %4372 = vmatprep.mubr.bf16.mxu1 %v9332_v36  ;;  %v542_v35 = vld [vmem:[%s9162_s21 + $0x3d8] sm:$0xff]  ;;  %v432_v11 = vld [vmem:[%s9162_s21 + $0x68] sm:$0xff] }
 0x140   : > { %v9356_v47 = vpack.c.bf16 %v542_v35, %v534_v30  ;;  %v996_v30 = vld [vmem:[#allocation4 + $0xc08] sm:$0xff] }
 0x141   : > { %3970 = vmatpush1.bf16.msra.mxu0 %v7270_v46  ;;  %4422 = vmatpush1.bf16.msra.mxu1 %v7272_v49  ;;  %v7305_v46 = vcombine.high %v972_v27, %v976_v29  ;;  %v541_v49 = vld [vmem:[%s9162_s21 + $0x3d0] sm:$0xff]  ;;  %v448_v51 = vld [vmem:[%s9162_s21 + $0xe8] sm:$0xff] }
 0x142   : > { %3971 = vmatprep.subr.bf16.mxu0 %v7279_v50  ;;  %4423 = vmatprep.subr.bf16.mxu1 %v7281_v57  ;;  %v983_v50 = vld [vmem:[#allocation4 + $0xba0] sm:$0xff]  ;;  %v9366_v12 = vpack.c.bf16 %v541_v49, %v533_v48  ;;  %v1008_v48 = vld [vmem:[#allocation4 + $0xc68] sm:$0xff] }
 0x143   : > { %v987_v57 = vld [vmem:[#allocation4 + $0xbc0] sm:$0xff]  ;;  %v7310_v14 = vcombine.low %v979_v44, %v983_v50  ;;  %v440_v49 = vld [vmem:[%s9162_s21 + $0xa8] sm:$0xff] }
 0x144   : > { %3921 = vmatmul.mubr.bf16.gmra.mrb[20].mxu0 %v9342_v61  ;;  %4373 = vmatmul.mubr.bf16.gmra.mrb[20].mxu1 %v9342_v61  ;;  %v7318_v35 = vcombine.low %v987_v57, %v991_v59 }
 0x145   : > { %3972 = vmatpush1.bf16.msra.mxu0 %v7278_v63  ;;  %4424 = vmatpush1.bf16.msra.mxu1 %v7280_v2  ;;  %v7304_v63 = vcombine.low %v972_v27, %v976_v29  ;;  %v7311_v2 = vcombine.high %v979_v44, %v983_v50  ;;  %v431_v27 = vld [vmem:[%s9162_s21 + $0x60] sm:$0xff] }
 0x146   : > { %3973 = vmatprep.subr.bf16.mxu0 %v7287_v3  ;;  %4425 = vmatprep.subr.bf16.mxu1 %v7289_v8  ;;  %v988_v3 = vld [vmem:[#allocation4 + $0xbc8] sm:$0xff]  ;;  %v999_v29 = vld [vmem:[#allocation4 + $0xc20] sm:$0xff] }
 0x147   : > { %3930 = vmatprep.mubr.bf16.mxu0 %v9344_v9  ;;  %4382 = vmatprep.mubr.bf16.mxu1 %v9344_v9  ;;  %v424_v8 = vld [vmem:[%s9162_s21 + $0x28] sm:$0xff]  ;;  %v7321_v20 = vcombine.high %v988_v3, %v992_v7  ;;  %v7327_v44 = vcombine.high %v995_v18, %v999_v29 }
 0x149   : > { %3974 = vmatpush1.bf16.msra.mxu0 %v7286_v17  ;;  %4426 = vmatpush1.bf16.msra.mxu1 %v7288_v21  ;;  %v7319_v17 = vcombine.high %v987_v57, %v991_v59  ;;  %v9368_v21 = vpack.c.bf16 %v432_v11, %v424_v8  ;;  %v1012_v8 = vld [vmem:[#allocation4 + $0xc88] sm:$0xff] }
 0x14a   : > { %3975 = vmatprep.subr.bf16.mxu0 %v7295_v24  ;;  %4427 = vmatprep.subr.bf16.mxu1 %v7297_v32  ;;  %v423_v24 = vld [vmem:[%s9162_s21 + $0x20] sm:$0xff]  ;;  %v1000_v32 = vld [vmem:[#allocation4 + $0xc28] sm:$0xff] }
 0x14b   : > { %v7329_v50 = vcombine.high %v996_v30, %v1000_v32  ;;  %v9378_v53 = vpack.c.bf16 %v431_v27, %v423_v24  ;;  %v7328_v57 = vcombine.low %v996_v30, %v1000_v32  ;;  %v1019_v24 = vld [vmem:[#allocation4 + $0xcc0] sm:$0xff]  ;;  %v1024_v32 = vld [vmem:[#allocation4 + $0xce8] sm:$0xff] }
 0x14c   : > { %3931 = vmatmul.mubr.bf16.gmra.mrb[24].mxu0 %v9354_v38  ;;  %4383 = vmatmul.mubr.bf16.gmra.mrb[24].mxu1 %v9354_v38  ;;  %v1023_v27 = vld [vmem:[#allocation4 + $0xce0] sm:$0xff] }
 0x14d   : > { %3976 = vmatpush1.bf16.msra.mxu0 %v7294_v39  ;;  %4428 = vmatpush1.bf16.msra.mxu1 %v7296_v40  ;;  %v1003_v39 = vld [vmem:[#allocation4 + $0xc40] sm:$0xff] }
 0x14e   : > { %3977 = vmatprep.subr.bf16.mxu0 %v7303_v42  ;;  %4429 = vmatprep.subr.bf16.mxu1 %v7305_v46  ;;  %v1007_v40 = vld [vmem:[#allocation4 + $0xc60] sm:$0xff]  ;;  %v7320_v42 = vcombine.low %v988_v3, %v992_v7  ;;  %v1004_v46 = vld [vmem:[#allocation4 + $0xc48] sm:$0xff] }
 0x14f   : > { %3940 = vmatprep.mubr.bf16.mxu0 %v9356_v47  ;;  %4392 = vmatprep.mubr.bf16.mxu1 %v9356_v47  ;;  %v7335_v59 = vcombine.high %v1003_v39, %v1007_v40  ;;  %v1011_v3 = vld [vmem:[#allocation4 + $0xc80] sm:$0xff]  ;;  %v7334_v11 = vcombine.low %v1003_v39, %v1007_v40  ;;  %v464_v39 = vld [vmem:[%s9162_s21 + $0x168] sm:$0xff] }
 0x150   : > { %v1015_v7 = vld [vmem:[#allocation4 + $0xca0] sm:$0xff] }
 0x151   : > { %3978 = vmatpush1.bf16.msra.mxu0 %v7302_v56  ;;  %4430 = vmatpush1.bf16.msra.mxu1 %v7304_v63  ;;  %v7326_v56 = vcombine.low %v995_v18, %v999_v29  ;;  %v7337_v63 = vcombine.high %v1004_v46, %v1008_v48  ;;  %v7343_v18 = vcombine.high %v1011_v3, %v1015_v7  ;;  %v1020_v29 = vld [vmem:[#allocation4 + $0xcc8] sm:$0xff] }
 0x152   : > { %3979 = vmatprep.subr.bf16.mxu0 %v7311_v2  ;;  %4431 = vmatprep.subr.bf16.mxu1 %v7313_v10  ;;  %v9380_v2 = vpack.c.bf16 %v448_v51, %v440_v49  ;;  %v1016_v10 = vld [vmem:[#allocation4 + $0xca8] sm:$0xff]  ;;  %v7342_v40 = vcombine.low %v1011_v3, %v1015_v7  ;;  %v1027_v49 = vld [vmem:[#allocation4 + $0xd00] sm:$0xff]  ;;  %v7352_v3 = vcombine.low %v1020_v29, %v1024_v32 }
 0x153   : > { %v1028_v51 = vld [vmem:[#allocation4 + $0xd08] sm:$0xff] }
 0x154   : > { %3941 = vmatmul.mubr.bf16.gmra.mrb[28].mxu0 %v9366_v12  ;;  %4393 = vmatmul.mubr.bf16.gmra.mrb[28].mxu1 %v9366_v12 }
 0x155   : > { %3980 = vmatpush1.bf16.msra.mxu0 %v7310_v14  ;;  %4432 = vmatpush1.bf16.msra.mxu1 %v7312_v16  ;;  %v439_v14 = vld [vmem:[%s9162_s21 + $0xa0] sm:$0xff] }
 0x156   : > { %3981 = vmatprep.subr.bf16.mxu0 %v7319_v17  ;;  %4433 = vmatprep.subr.bf16.mxu1 %v7321_v20  ;;  %v447_v16 = vld [vmem:[%s9162_s21 + $0xe0] sm:$0xff]  ;;  %v7336_v17 = vcombine.low %v1004_v46, %v1008_v48  ;;  %v7345_v20 = vcombine.high %v1012_v8, %v1016_v10  ;;  %v7353_v46 = vcombine.high %v1020_v29, %v1024_v32 }
 0x157   : > { %3983 = vmatprep.mubr.bf16.mxu0 %v9368_v21  ;;  %4435 = vmatprep.mubr.bf16.mxu1 %v9368_v21  ;;  %v9388_v30 = vpack.c.bf16 %v447_v16, %v439_v14  ;;  %v1036_v14 = vld [vmem:[#allocation4 + $0xd48] sm:$0xff] }
 0x159   : > { %3982 = vmatpush1.bf16.msra.mxu0 %v7318_v35  ;;  %4434 = vmatpush1.bf16.msra.mxu1 %v7320_v42  ;;  %v456_v35 = vld [vmem:[%s9162_s21 + $0x128] sm:$0xff]  ;;  %v7344_v42 = vcombine.low %v1012_v8, %v1016_v10  ;;  %v1035_v10 = vld [vmem:[#allocation4 + $0xd40] sm:$0xff] }
 0x15a   : > { %4064 = vmatprep.subr.bf16.mxu0 %v7327_v44  ;;  %4516 = vmatprep.subr.bf16.mxu1 %v7329_v50  ;;  %v7351_v44 = vcombine.high %v1019_v24, %v1023_v27  ;;  %v9392_v48 = vpack.c.bf16 %v464_v39, %v456_v35  ;;  %v1031_v50 = vld [vmem:[#allocation4 + $0xd20] sm:$0xff] }
 0x15b   : > { %v7359_v7 = vcombine.high %v1027_v49, %v1031_v50  ;;  %v1043_v39 = vld [vmem:[#allocation4 + $0xd80] sm:$0xff] }
 0x15c   : > { %3984 = vmatmul.mubr.bf16.vlgmr.msra.gmra.mrb[0].mxu0 %v9378_v53  ;;  %4436 = vmatmul.mubr.bf16.vlgmr.msra.gmra.mrb[0].mxu1 %v9378_v53 }
 0x15d   : > { %4065 = vmatpush1.bf16.msra.mxu0 %v7326_v56  ;;  %4517 = vmatpush1.bf16.msra.mxu1 %v7328_v57  ;;  %v1032_v56 = vld [vmem:[#allocation4 + $0xd28] sm:$0xff]  ;;  %v7350_v57 = vcombine.low %v1019_v24, %v1023_v27  ;;  %v7358_v24 = vcombine.low %v1027_v49, %v1031_v50  ;;  %v471_v49 = vld [vmem:[%s9162_s21 + $0x1a0] sm:$0xff] }
 0x15e   : > { %4066 = vmatprep.subr.bf16.mxu0 %v7335_v59  ;;  %4518 = vmatprep.subr.bf16.mxu1 %v7337_v63  ;;  %v455_v59 = vld [vmem:[%s9162_s21 + $0x120] sm:$0xff]  ;;  %v7361_v8 = vcombine.high %v1028_v51, %v1032_v56  ;;  %v7360_v27 = vcombine.low %v1028_v51, %v1032_v56 }
 0x15f   : > { %3993 = vmatprep.mubr.bf16.mxu0 %v9380_v2  ;;  %4445 = vmatprep.mubr.bf16.mxu1 %v9380_v2  ;;  %v463_v63 = vld [vmem:[%s9162_s21 + $0x160] sm:$0xff] }
 0x160   : > { %v9400_v16 = vpack.c.bf16 %v463_v63, %v455_v59  ;;  %v479_v50 = vld [vmem:[%s9162_s21 + $0x1e0] sm:$0xff] }
 0x161   : > { %4067 = vmatpush1.bf16.msra.mxu0 %v7334_v11  ;;  %4519 = vmatpush1.bf16.msra.mxu1 %v7336_v17  ;;  %v1039_v11 = vld [vmem:[#allocation4 + $0xd60] sm:$0xff]  ;;  %v1040_v17 = vld [vmem:[#allocation4 + $0xd68] sm:$0xff] }
 0x162   : > { %4068 = vmatprep.subr.bf16.mxu0 %v7343_v18  ;;  %4520 = vmatprep.subr.bf16.mxu1 %v7345_v20  ;;  %v472_v18 = vld [vmem:[%s9162_s21 + $0x1a8] sm:$0xff]  ;;  %v7367_v29 = vcombine.high %v1035_v10, %v1039_v11  ;;  %v7369_v32 = vcombine.high %v1036_v14, %v1040_v17  ;;  %v7368_v51 = vcombine.low %v1036_v14, %v1040_v17  ;;  %v1051_v59 = vld [vmem:[#allocation4 + $0xdc0] sm:$0xff] }
 0x163   : > { %v480_v20 = vld [vmem:[%s9162_s21 + $0x1e8] sm:$0xff]  ;;  %v1055_v63 = vld [vmem:[#allocation4 + $0xde0] sm:$0xff] }
 0x164   : > { %3994 = vmatmul.mubr.bf16.gmra.mrb[4].mxu0 %v9388_v30  ;;  %4446 = vmatmul.mubr.bf16.gmra.mrb[4].mxu1 %v9388_v30  ;;  %v9404_v35 = vpack.c.bf16 %v480_v20, %v472_v18  ;;  %v7383_v17 = vcombine.high %v1051_v59, %v1055_v63 }
 0x165   : > { %4069 = vmatpush1.bf16.msra.mxu0 %v7342_v40  ;;  %4521 = vmatpush1.bf16.msra.mxu1 %v7344_v42  ;;  %v1047_v40 = vld [vmem:[#allocation4 + $0xda0] sm:$0xff]  ;;  %v1044_v42 = vld [vmem:[#allocation4 + $0xd88] sm:$0xff] }
 0x166   : > { %4070 = vmatprep.subr.bf16.mxu0 %v7351_v44  ;;  %4522 = vmatprep.subr.bf16.mxu1 %v7353_v46  ;;  %v1048_v44 = vld [vmem:[#allocation4 + $0xda8] sm:$0xff]  ;;  %v7366_v46 = vcombine.low %v1035_v10, %v1039_v11  ;;  %v7375_v56 = vcombine.high %v1043_v39, %v1047_v40  ;;  %v7374_v18 = vcombine.low %v1043_v39, %v1047_v40  ;;  %v487_v40 = vld [vmem:[%s9162_s21 + $0x220] sm:$0xff] }
 0x167   : > { %4003 = vmatprep.mubr.bf16.mxu0 %v9392_v48  ;;  %4455 = vmatprep.mubr.bf16.mxu1 %v9392_v48  ;;  %v488_v10 = vld [vmem:[%s9162_s21 + $0x228] sm:$0xff]  ;;  %v7376_v14 = vcombine.low %v1044_v42, %v1048_v44  ;;  %v7382_v39 = vcombine.low %v1051_v59, %v1055_v63 }
 0x168   : > { %v496_v11 = vld [vmem:[%s9162_s21 + $0x268] sm:$0xff] }
 0x169   : > { %4071 = vmatpush1.bf16.msra.mxu0 %v7350_v57  ;;  %4523 = vmatpush1.bf16.msra.mxu1 %v7352_v3  ;;  %v7377_v57 = vcombine.high %v1044_v42, %v1048_v44  ;;  %v1052_v3 = vld [vmem:[#allocation4 + $0xdc8] sm:$0xff] }
 0x16a   : > { %4072 = vmatprep.subr.bf16.mxu0 %v7359_v7  ;;  %4524 = vmatprep.subr.bf16.mxu1 %v7361_v8  ;;  %v9412_v7 = vpack.c.bf16 %v479_v50, %v471_v49  ;;  %v1056_v8 = vld [vmem:[#allocation4 + $0xde8] sm:$0xff] }
 0x16b   : > { %v7385_v20 = vcombine.high %v1052_v3, %v1056_v8  ;;  %v1064_v49 = vld [vmem:[#allocation4 + $0xe28] sm:$0xff]  ;;  %v7384_v42 = vcombine.low %v1052_v3, %v1056_v8 }
 0x16c   : > { %4004 = vmatmul.mubr.bf16.gmra.mrb[8].mxu0 %v9400_v16  ;;  %4456 = vmatmul.mubr.bf16.gmra.mrb[8].mxu1 %v9400_v16  ;;  %10524 = vst [vmem:[#allocation13_spill] sm:$0xff] %v9412_v7  ;;  %v1072_v59 = vld [vmem:[#allocation4 + $0xe68] sm:$0xff] }
 0x16d   : > { %4073 = vmatpush1.bf16.msra.mxu0 %v7358_v24  ;;  %4525 = vmatpush1.bf16.msra.mxu1 %v7360_v27  ;;  %v9416_v24 = vpack.c.bf16 %v496_v11, %v488_v10  ;;  %v1059_v27 = vld [vmem:[#allocation4 + $0xe00] sm:$0xff]  ;;  %v504_v63 = vld [vmem:[%s9162_s21 + $0x2a8] sm:$0xff] }
 0x16e   : > { %4074 = vmatprep.subr.bf16.mxu0 %v7367_v29  ;;  %4526 = vmatprep.subr.bf16.mxu1 %v7369_v32  ;;  %v1063_v29 = vld [vmem:[#allocation4 + $0xe20] sm:$0xff]  ;;  %v1060_v32 = vld [vmem:[#allocation4 + $0xe08] sm:$0xff] }
 0x16f   : > { %4013 = vmatprep.mubr.bf16.mxu0 %v9404_v35  ;;  %4465 = vmatprep.mubr.bf16.mxu1 %v9404_v35  ;;  %10525 = vst [vmem:[#allocation14_spill] sm:$0xff] %v9416_v24  ;;  %v7391_v44 = vcombine.high %v1059_v27, %v1063_v29  ;;  %v7393_v50 = vcombine.high %v1060_v32, %v1064_v49  ;;  %v512_v11 = vld [vmem:[%s9162_s21 + $0x2e8] sm:$0xff] }
 0x170   : > { %v7392_v3 = vcombine.low %v1060_v32, %v1064_v49 }
 0x171   : > { %4075 = vmatpush1.bf16.msra.mxu0 %v7366_v46  ;;  %4527 = vmatpush1.bf16.msra.mxu1 %v7368_v51  ;;  %v495_v46 = vld [vmem:[%s9162_s21 + $0x260] sm:$0xff] }
 0x172   : > { %4076 = vmatprep.subr.bf16.mxu0 %v7375_v56  ;;  %4528 = vmatprep.subr.bf16.mxu1 %v7377_v57  ;;  %v1067_v51 = vld [vmem:[#allocation4 + $0xe40] sm:$0xff]  ;;  %v1068_v57 = vld [vmem:[#allocation4 + $0xe48] sm:$0xff]  ;;  %v9424_v10 = vpack.c.bf16 %v495_v46, %v487_v40 }
 0x173   : > { %v1071_v56 = vld [vmem:[#allocation4 + $0xe60] sm:$0xff]  ;;  %v1076_v40 = vld [vmem:[#allocation4 + $0xe88] sm:$0xff]  ;;  %v7400_v32 = vcombine.low %v1068_v57, %v1072_v59 }
 0x174   : > { %4014 = vmatmul.mubr.bf16.gmra.mrb[12].mxu0 %v9412_v7  ;;  %4466 = vmatmul.mubr.bf16.gmra.mrb[12].mxu1 %v9412_v7  ;;  %10526 = vst [vmem:[#allocation15_spill] sm:$0xff] %v9424_v10  ;;  %v7399_v8 = vcombine.high %v1067_v51, %v1071_v56  ;;  %v1079_v7 = vld [vmem:[#allocation4 + $0xea0] sm:$0xff]  ;;  %v1080_v46 = vld [vmem:[#allocation4 + $0xea8] sm:$0xff] }
 0x175   : > { %4077 = vmatpush1.bf16.msra.mxu0 %v7374_v18  ;;  %4529 = vmatpush1.bf16.msra.mxu1 %v7376_v14  ;;  %v7390_v18 = vcombine.low %v1059_v27, %v1063_v29  ;;  %v7401_v14 = vcombine.high %v1068_v57, %v1072_v59  ;;  %v7398_v27 = vcombine.low %v1067_v51, %v1071_v56  ;;  %v503_v29 = vld [vmem:[%s9162_s21 + $0x2a0] sm:$0xff]  ;;  %v1088_v51 = vld [vmem:[#allocation4 + $0xee8] sm:$0xff] }
 0x176   : > { %4078 = vmatprep.subr.bf16.mxu0 %v7383_v17  ;;  %4530 = vmatprep.subr.bf16.mxu1 %v7385_v20  ;;  %v9428_v17 = vpack.c.bf16 %v512_v11, %v504_v63  ;;  %v1075_v20 = vld [vmem:[#allocation4 + $0xe80] sm:$0xff]  ;;  %v1084_v63 = vld [vmem:[#allocation4 + $0xec8] sm:$0xff]  ;;  %v7408_v57 = vcombine.low %v1076_v40, %v1080_v46 }
 0x177   : > { %4023 = vmatprep.mubr.bf16.mxu0 %v9416_v24  ;;  %4475 = vmatprep.mubr.bf16.mxu1 %v9416_v24  ;;  %v7407_v49 = vcombine.high %v1075_v20, %v1079_v7  ;;  %v520_v56 = vld [vmem:[%s9162_s21 + $0x328] sm:$0xff]  ;;  %v1095_v24 = vld [vmem:[#allocation4 + $0xf20] sm:$0xff] }
 0x178   : > { %10527 = vst [vmem:[#allocation16_spill] sm:$0xff] %v9428_v17 }
 0x179   : > { %4079 = vmatpush1.bf16.msra.mxu0 %v7382_v39  ;;  %4531 = vmatpush1.bf16.msra.mxu1 %v7384_v42  ;;  %v511_v39 = vld [vmem:[%s9162_s21 + $0x2e0] sm:$0xff]  ;;  %v7409_v42 = vcombine.high %v1076_v40, %v1080_v46  ;;  %v7416_v40 = vcombine.low %v1084_v63, %v1088_v51 }
 0x17a   : > { %4080 = vmatprep.subr.bf16.mxu0 %v7391_v44  ;;  %4532 = vmatprep.subr.bf16.mxu1 %v7393_v50  ;;  %v1083_v44 = vld [vmem:[#allocation4 + $0xec0] sm:$0xff]  ;;  %v9436_v11 = vpack.c.bf16 %v511_v39, %v503_v29  ;;  %v1092_v29 = vld [vmem:[#allocation4 + $0xf08] sm:$0xff] }
 0x17b   : > { %v1087_v50 = vld [vmem:[#allocation4 + $0xee0] sm:$0xff]  ;;  %v1096_v39 = vld [vmem:[#allocation4 + $0xf28] sm:$0xff] }
 0x17c   : > { %4024 = vmatmul.mubr.bf16.gmra.mrb[16].mxu0 %v9424_v10  ;;  %4476 = vmatmul.mubr.bf16.gmra.mrb[16].mxu1 %v9424_v10  ;;  %10528 = vst [vmem:[#allocation17_spill] sm:$0xff] %v9436_v11  ;;  %v7406_v10 = vcombine.low %v1075_v20, %v1079_v7  ;;  %v7415_v59 = vcombine.high %v1083_v44, %v1087_v50  ;;  %v519_v20 = vld [vmem:[%s9162_s21 + $0x320] sm:$0xff] }
 0x17d   : > { %4081 = vmatpush1.bf16.msra.mxu0 %v7390_v18  ;;  %4533 = vmatpush1.bf16.msra.mxu1 %v7392_v3  ;;  %v528_v18 = vld [vmem:[%s9162_s21 + $0x368] sm:$0xff]  ;;  %v7417_v3 = vcombine.high %v1084_v63, %v1088_v51  ;;  %v7414_v7 = vcombine.low %v1083_v44, %v1087_v50  ;;  %v7424_v63 = vcombine.low %v1092_v29, %v1096_v39 }
 0x17e   : > { %4082 = vmatprep.subr.bf16.mxu0 %v7399_v8  ;;  %4534 = vmatprep.subr.bf16.mxu1 %v7401_v14  ;;  %v9440_v8 = vpack.c.bf16 %v528_v18, %v520_v56  ;;  %v1091_v14 = vld [vmem:[#allocation4 + $0xf00] sm:$0xff]  ;;  %v1100_v56 = vld [vmem:[#allocation4 + $0xf48] sm:$0xff] }
 0x17f   : > { %4033 = vmatprep.mubr.bf16.mxu0 %v9428_v17  ;;  %4485 = vmatprep.mubr.bf16.mxu1 %v9428_v17  ;;  %v7423_v46 = vcombine.high %v1091_v14, %v1095_v24  ;;  %v536_v44 = vld [vmem:[%s9162_s21 + $0x3a8] sm:$0xff]  ;;  %v1111_v17 = vld [vmem:[#allocation4 + $0xfa0] sm:$0xff] }
 0x180   : > { %10529 = vst [vmem:[#allocation18_spill] sm:$0xff] %v9440_v8  ;;  %v544_v50 = vld [vmem:[%s9162_s21 + $0x3e8] sm:$0xff] }
 0x181   : > { %4083 = vmatpush1.bf16.msra.mxu0 %v7398_v27  ;;  %4535 = vmatpush1.bf16.msra.mxu1 %v7400_v32  ;;  %v527_v27 = vld [vmem:[%s9162_s21 + $0x360] sm:$0xff]  ;;  %v7425_v32 = vcombine.high %v1092_v29, %v1096_v39 }
 0x182   : > { %4084 = vmatprep.subr.bf16.mxu0 %v7407_v49  ;;  %4536 = vmatprep.subr.bf16.mxu1 %v7409_v42  ;;  %v1099_v49 = vld [vmem:[#allocation4 + $0xf40] sm:$0xff]  ;;  %v9448_v18 = vpack.c.bf16 %v527_v27, %v519_v20  ;;  %v1108_v20 = vld [vmem:[#allocation4 + $0xf88] sm:$0xff] }
 0x183   : > { %v1103_v42 = vld [vmem:[#allocation4 + $0xf60] sm:$0xff]  ;;  %v1112_v27 = vld [vmem:[#allocation4 + $0xfa8] sm:$0xff] }
 0x184   : > { %4034 = vmatmul.mubr.bf16.gmra.mrb[20].mxu0 %v9436_v11  ;;  %4486 = vmatmul.mubr.bf16.gmra.mrb[20].mxu1 %v9436_v11  ;;  %10530 = vst [vmem:[#allocation19_spill] sm:$0xff] %v9448_v18  ;;  %v7422_v11 = vcombine.low %v1091_v14, %v1095_v24  ;;  %v7431_v51 = vcombine.high %v1099_v49, %v1103_v42  ;;  %v535_v14 = vld [vmem:[%s9162_s21 + $0x3a0] sm:$0xff] }
 0x185   : > { %4085 = vmatpush1.bf16.msra.mxu0 %v7406_v10  ;;  %4537 = vmatpush1.bf16.msra.mxu1 %v7408_v57  ;;  %v1104_v10 = vld [vmem:[#allocation4 + $0xf68] sm:$0xff]  ;;  %v7430_v24 = vcombine.low %v1099_v49, %v1103_v42  ;;  %v426_v49 = vld [vmem:[%s9162_s21 + $0x38] sm:$0xff] }
 0x186   : > { %4086 = vmatprep.subr.bf16.mxu0 %v7415_v59  ;;  %4538 = vmatprep.subr.bf16.mxu1 %v7417_v3  ;;  %v7433_v57 = vcombine.high %v1100_v56, %v1104_v10  ;;  %v9452_v59 = vpack.c.bf16 %v544_v50, %v536_v44  ;;  %v1107_v3 = vld [vmem:[#allocation4 + $0xf80] sm:$0xff]  ;;  %v7432_v29 = vcombine.low %v1100_v56, %v1104_v10  ;;  %v1116_v44 = vld [vmem:[#allocation4 + $0xfc8] sm:$0xff]  ;;  %v434_v42 = vld [vmem:[%s9162_s21 + $0x78] sm:$0xff] }
 0x187   : > { %4043 = vmatprep.mubr.bf16.mxu0 %v9440_v8  ;;  %4495 = vmatprep.mubr.bf16.mxu1 %v9440_v8  ;;  %v7439_v39 = vcombine.high %v1107_v3, %v1111_v17  ;;  %v7440_v56 = vcombine.low %v1108_v20, %v1112_v27  ;;  %v617_v8 = vld [vmem:[#allocation4 + $0x30] sm:$0xff] }
 0x188   : > { %10531 = vst [vmem:[#allocation20_spill] sm:$0xff] %v9452_v59 }
 0x189   : > { %4087 = vmatpush1.bf16.msra.mxu0 %v7414_v7  ;;  %4539 = vmatpush1.bf16.msra.mxu1 %v7416_v40  ;;  %v543_v7 = vld [vmem:[%s9162_s21 + $0x3e0] sm:$0xff]  ;;  %v7441_v40 = vcombine.high %v1108_v20, %v1112_v27 }
 0x18a   : > { %4088 = vmatprep.subr.bf16.mxu0 %v7423_v46  ;;  %4540 = vmatprep.subr.bf16.mxu1 %v7425_v32  ;;  %v1115_v46 = vld [vmem:[#allocation4 + $0xfc0] sm:$0xff]  ;;  %v9460_v50 = vpack.c.bf16 %v543_v7, %v535_v14  ;;  %v614_v14 = vld [vmem:[#allocation4 + $0x18] sm:$0xff] }
 0x18b   : > { %v1119_v32 = vld [vmem:[#allocation4 + $0xfe0] sm:$0xff]  ;;  %v618_v7 = vld [vmem:[#allocation4 + $0x38] sm:$0xff] }
 0x18c   : > { %4044 = vmatmul.mubr.bf16.gmra.mrb[24].mxu0 %v9448_v18  ;;  %4496 = vmatmul.mubr.bf16.gmra.mrb[24].mxu1 %v9448_v18  ;;  %10532 = vst [vmem:[#allocation21_spill] sm:$0xff] %v9460_v50  ;;  %v7438_v18 = vcombine.low %v1107_v3, %v1111_v17  ;;  %v7447_v10 = vcombine.high %v1115_v46, %v1119_v32  ;;  %v425_v3 = vld [vmem:[%s9162_s21 + $0x30] sm:$0xff] }
 0x18d   : > { %4089 = vmatpush1.bf16.msra.mxu0 %v7422_v11  ;;  %4541 = vmatpush1.bf16.msra.mxu1 %v7424_v63  ;;  %v1120_v11 = vld [vmem:[#allocation4 + $0xfe8] sm:$0xff]  ;;  %v7446_v17 = vcombine.low %v1115_v46, %v1119_v32  ;;  %v442_v46 = vld [vmem:[%s9162_s21 + $0xb8] sm:$0xff] }
 0x18e   : > { %4090 = vmatprep.subr.bf16.mxu0 %v7431_v51  ;;  %4542 = vmatprep.subr.bf16.mxu1 %v7433_v57  ;;  %v7449_v63 = vcombine.high %v1116_v44, %v1120_v11  ;;  %v9464_v51 = vpack.c.bf16 %v434_v42, %v426_v49  ;;  %v613_v57 = vld [vmem:[#allocation4 + $0x10] sm:$0xff]  ;;  %v7448_v20 = vcombine.low %v1116_v44, %v1120_v11  ;;  %v622_v49 = vld [vmem:[#allocation4 + $0x58] sm:$0xff] }
 0x18f   : > { %4053 = vmatprep.mubr.bf16.mxu0 %v9452_v59  ;;  %4505 = vmatprep.mubr.bf16.mxu1 %v9452_v59  ;;  %v6947_v27 = vcombine.high %v613_v57, %v617_v8  ;;  %v450_v32 = vld [vmem:[%s9162_s21 + $0xf8] sm:$0xff]  ;;  %v6948_v44 = vcombine.low %v614_v14, %v618_v7  ;;  %v633_v59 = vld [vmem:[#allocation4 + $0xb0] sm:$0xff] }
 0x190   : > { %10533 = vst [vmem:[#allocation22_spill] sm:$0xff] %v9464_v51 }
 0x191   : > { %4091 = vmatpush1.bf16.msra.mxu0 %v7430_v24  ;;  %4543 = vmatpush1.bf16.msra.mxu1 %v7432_v29  ;;  %v433_v24 = vld [vmem:[%s9162_s21 + $0x70] sm:$0xff]  ;;  %v6949_v29 = vcombine.high %v614_v14, %v618_v7 }
 0x192   : > { %4092 = vmatprep.subr.bf16.mxu0 %v7439_v39  ;;  %4544 = vmatprep.subr.bf16.mxu1 %v7441_v40  ;;  %v621_v39 = vld [vmem:[#allocation4 + $0x50] sm:$0xff]  ;;  %v9472_v42 = vpack.c.bf16 %v433_v24, %v425_v3  ;;  %v630_v3 = vld [vmem:[#allocation4 + $0x98] sm:$0xff] }
 0x193   : > { %v625_v40 = vld [vmem:[#allocation4 + $0x70] sm:$0xff]  ;;  %v634_v24 = vld [vmem:[#allocation4 + $0xb8] sm:$0xff] }
 0x194   : > { %4054 = vmatmul.mubr.bf16.gmra.mrb[28].mxu0 %v9460_v50  ;;  %4506 = vmatmul.mubr.bf16.gmra.mrb[28].mxu1 %v9460_v50  ;;  %10534 = vst [vmem:[#allocation23_spill] sm:$0xff] %v9472_v42  ;;  %v6946_v50 = vcombine.low %v613_v57, %v617_v8  ;;  %v6955_v11 = vcombine.high %v621_v39, %v625_v40  ;;  %v441_v57 = vld [vmem:[%s9162_s21 + $0xb0] sm:$0xff] }
 0x195   : > { %4093 = vmatpush1.bf16.msra.mxu0 %v7438_v18  ;;  %4545 = vmatpush1.bf16.msra.mxu1 %v7440_v56  ;;  %v626_v18 = vld [vmem:[#allocation4 + $0x78] sm:$0xff]  ;;  %v6954_v8 = vcombine.low %v621_v39, %v625_v40 }
 0x196   : > { %4094 = vmatprep.subr.bf16.mxu0 %v7447_v10  ;;  %4546 = vmatprep.subr.bf16.mxu1 %v7449_v63  ;;  %v6957_v56 = vcombine.high %v622_v49, %v626_v18  ;;  %v9476_v10 = vpack.c.bf16 %v450_v32, %v442_v46  ;;  %v629_v63 = vld [vmem:[#allocation4 + $0x90] sm:$0xff]  ;;  %v6956_v14 = vcombine.low %v622_v49, %v626_v18  ;;  %v638_v46 = vld [vmem:[#allocation4 + $0xd8] sm:$0xff] }
 0x197   : > { %4096 = vmatprep.mubr.bf16.mxu0 %v9464_v51  ;;  %4548 = vmatprep.mubr.bf16.mxu1 %v9464_v51  ;;  %v6963_v7 = vcombine.high %v629_v63, %v633_v59  ;;  %v458_v39 = vld [vmem:[%s9162_s21 + $0x138] sm:$0xff]  ;;  %v6964_v49 = vcombine.low %v630_v3, %v634_v24  ;;  %v649_v51 = vld [vmem:[#allocation4 + $0x130] sm:$0xff] }
 0x198   : > { %10535 = vst [vmem:[#allocation24_spill] sm:$0xff] %v9476_v10  ;;  %v466_v40 = vld [vmem:[%s9162_s21 + $0x178] sm:$0xff] }
 0x199   : > { %4095 = vmatpush1.bf16.msra.mxu0 %v7446_v17  ;;  %4547 = vmatpush1.bf16.msra.mxu1 %v7448_v20  ;;  %v449_v17 = vld [vmem:[%s9162_s21 + $0xf0] sm:$0xff]  ;;  %v6965_v20 = vcombine.high %v630_v3, %v634_v24 }
 0x19a   : > { %4629 = vmatprep.subr.bf16.mxu0 %v6947_v27  ;;  %5081 = vmatprep.subr.bf16.mxu1 %v6949_v29  ;;  %v637_v27 = vld [vmem:[#allocation4 + $0xd0] sm:$0xff]  ;;  %v9484_v32 = vpack.c.bf16 %v449_v17, %v441_v57  ;;  %v646_v57 = vld [vmem:[#allocation4 + $0x118] sm:$0xff] }
 0x19b   : > { %v641_v29 = vld [vmem:[#allocation4 + $0xf0] sm:$0xff]  ;;  %v650_v17 = vld [vmem:[#allocation4 + $0x138] sm:$0xff] }
 0x19c   : > { %4097 = vmatmul.mubr.bf16.vlgmr.msra.gmra.mrb[0].mxu0 %v9472_v42  ;;  %4549 = vmatmul.mubr.bf16.vlgmr.msra.gmra.mrb[0].mxu1 %v9472_v42  ;;  %10536 = vst [vmem:[#allocation25_spill] sm:$0xff] %v9484_v32  ;;  %v6962_v42 = vcombine.low %v629_v63, %v633_v59  ;;  %v6971_v18 = vcombine.high %v637_v27, %v641_v29  ;;  %v457_v63 = vld [vmem:[%s9162_s21 + $0x130] sm:$0xff] }
 0x19d   : > { %4630 = vmatpush1.bf16.msra.mxu0 %v6946_v50  ;;  %5082 = vmatpush1.bf16.msra.mxu1 %v6948_v44  ;;  %v642_v50 = vld [vmem:[#allocation4 + $0xf8] sm:$0xff]  ;;  %v6970_v59 = vcombine.low %v637_v27, %v641_v29 }
 0x19e   : > { %4631 = vmatprep.subr.bf16.mxu0 %v6955_v11  ;;  %5083 = vmatprep.subr.bf16.mxu1 %v6957_v56  ;;  %v6973_v44 = vcombine.high %v638_v46, %v642_v50  ;;  %v9488_v11 = vpack.c.bf16 %v466_v40, %v458_v39  ;;  %v645_v56 = vld [vmem:[#allocation4 + $0x110] sm:$0xff]  ;;  %v6972_v3 = vcombine.low %v638_v46, %v642_v50  ;;  %v654_v39 = vld [vmem:[#allocation4 + $0x158] sm:$0xff] }
 0x19f   : > { %4106 = vmatprep.mubr.bf16.mxu0 %v9476_v10  ;;  %4558 = vmatprep.mubr.bf16.mxu1 %v9476_v10  ;;  %v6979_v24 = vcombine.high %v645_v56, %v649_v51  ;;  %v474_v27 = vld [vmem:[%s9162_s21 + $0x1b8] sm:$0xff]  ;;  %v6980_v46 = vcombine.low %v646_v57, %v650_v17  ;;  %v665_v10 = vld [vmem:[#allocation4 + $0x1b0] sm:$0xff] }
 0x1a0   : > { %10537 = vst [vmem:[#allocation26_spill] sm:$0xff] %v9488_v11  ;;  %v482_v29 = vld [vmem:[%s9162_s21 + $0x1f8] sm:$0xff] }
 0x1a1   : > { %4632 = vmatpush1.bf16.msra.mxu0 %v6954_v8  ;;  %5084 = vmatpush1.bf16.msra.mxu1 %v6956_v14  ;;  %v465_v8 = vld [vmem:[%s9162_s21 + $0x170] sm:$0xff]  ;;  %v6981_v14 = vcombine.high %v646_v57, %v650_v17 }
 0x1a2   : > { %4633 = vmatprep.subr.bf16.mxu0 %v6963_v7  ;;  %5085 = vmatprep.subr.bf16.mxu1 %v6965_v20  ;;  %v653_v7 = vld [vmem:[#allocation4 + $0x150] sm:$0xff]  ;;  %v9496_v40 = vpack.c.bf16 %v465_v8, %v457_v63  ;;  %v662_v63 = vld [vmem:[#allocation4 + $0x198] sm:$0xff] }
 0x1a3   : > { %v657_v20 = vld [vmem:[#allocation4 + $0x170] sm:$0xff]  ;;  %v666_v8 = vld [vmem:[#allocation4 + $0x1b8] sm:$0xff] }
 0x1a4   : > { %4107 = vmatmul.mubr.bf16.gmra.mrb[4].mxu0 %v9484_v32  ;;  %4559 = vmatmul.mubr.bf16.gmra.mrb[4].mxu1 %v9484_v32  ;;  %10538 = vst [vmem:[#allocation27_spill] sm:$0xff] %v9496_v40  ;;  %v6978_v32 = vcombine.low %v645_v56, %v649_v51  ;;  %v6987_v50 = vcombine.high %v653_v7, %v657_v20  ;;  %v473_v56 = vld [vmem:[%s9162_s21 + $0x1b0] sm:$0xff] }
 0x1a5   : > { %4634 = vmatpush1.bf16.msra.mxu0 %v6962_v42  ;;  %5086 = vmatpush1.bf16.msra.mxu1 %v6964_v49  ;;  %v658_v42 = vld [vmem:[#allocation4 + $0x178] sm:$0xff]  ;;  %v6986_v51 = vcombine.low %v653_v7, %v657_v20 }
 0x1a6   : > { %4635 = vmatprep.subr.bf16.mxu0 %v6971_v18  ;;  %5087 = vmatprep.subr.bf16.mxu1 %v6973_v44  ;;  %v6989_v49 = vcombine.high %v654_v39, %v658_v42  ;;  %v9500_v18 = vpack.c.bf16 %v482_v29, %v474_v27  ;;  %v661_v44 = vld [vmem:[#allocation4 + $0x190] sm:$0xff]  ;;  %v6988_v57 = vcombine.low %v654_v39, %v658_v42  ;;  %v670_v27 = vld [vmem:[#allocation4 + $0x1d8] sm:$0xff] }
 0x1a7   : > { %4116 = vmatprep.mubr.bf16.mxu0 %v9488_v11  ;;  %4568 = vmatprep.mubr.bf16.mxu1 %v9488_v11  ;;  %v6995_v17 = vcombine.high %v661_v44, %v665_v10  ;;  %v490_v7 = vld [vmem:[%s9162_s21 + $0x238] sm:$0xff]  ;;  %v6996_v39 = vcombine.low %v662_v63, %v666_v8  ;;  %v681_v11 = vld [vmem:[#allocation4 + $0x230] sm:$0xff] }
 0x1a8   : > { %10539 = vst [vmem:[#allocation28_spill] sm:$0xff] %v9500_v18  ;;  %v498_v20 = vld [vmem:[%s9162_s21 + $0x278] sm:$0xff] }
 0x1a9   : > { %4636 = vmatpush1.bf16.msra.mxu0 %v6970_v59  ;;  %5088 = vmatpush1.bf16.msra.mxu1 %v6972_v3  ;;  %v481_v59 = vld [vmem:[%s9162_s21 + $0x1f0] sm:$0xff]  ;;  %v6997_v3 = vcombine.high %v662_v63, %v666_v8 }
 0x1aa   : > { %4637 = vmatprep.subr.bf16.mxu0 %v6979_v24  ;;  %5089 = vmatprep.subr.bf16.mxu1 %v6981_v14  ;;  %v669_v24 = vld [vmem:[#allocation4 + $0x1d0] sm:$0xff]  ;;  %v9508_v29 = vpack.c.bf16 %v481_v59, %v473_v56  ;;  %v678_v56 = vld [vmem:[#allocation4 + $0x218] sm:$0xff] }
 0x1ab   : > { %v673_v14 = vld [vmem:[#allocation4 + $0x1f0] sm:$0xff]  ;;  %v682_v59 = vld [vmem:[#allocation4 + $0x238] sm:$0xff] }
 0x1ac   : > { %4117 = vmatmul.mubr.bf16.gmra.mrb[8].mxu0 %v9496_v40  ;;  %4569 = vmatmul.mubr.bf16.gmra.mrb[8].mxu1 %v9496_v40  ;;  %10540 = vst [vmem:[#allocation29_spill] sm:$0xff] %v9508_v29  ;;  %v6994_v40 = vcombine.low %v661_v44, %v665_v10  ;;  %v7003_v42 = vcombine.high %v669_v24, %v673_v14  ;;  %v489_v44 = vld [vmem:[%s9162_s21 + $0x230] sm:$0xff] }
 0x1ad   : > { %4638 = vmatpush1.bf16.msra.mxu0 %v6978_v32  ;;  %5090 = vmatpush1.bf16.msra.mxu1 %v6980_v46  ;;  %v674_v32 = vld [vmem:[#allocation4 + $0x1f8] sm:$0xff]  ;;  %v7002_v10 = vcombine.low %v669_v24, %v673_v14 }
 0x1ae   : > { %4639 = vmatprep.subr.bf16.mxu0 %v6987_v50  ;;  %5091 = vmatprep.subr.bf16.mxu1 %v6989_v49  ;;  %v7005_v46 = vcombine.high %v670_v27, %v674_v32  ;;  %v9512_v50 = vpack.c.bf16 %v498_v20, %v490_v7  ;;  %v677_v49 = vld [vmem:[#allocation4 + $0x210] sm:$0xff]  ;;  %v7004_v63 = vcombine.low %v670_v27, %v674_v32  ;;  %v686_v7 = vld [vmem:[#allocation4 + $0x258] sm:$0xff] }
 0x1af   : > { %4126 = vmatprep.mubr.bf16.mxu0 %v9500_v18  ;;  %4578 = vmatprep.mubr.bf16.mxu1 %v9500_v18  ;;  %v7011_v8 = vcombine.high %v677_v49, %v681_v11  ;;  %v506_v24 = vld [vmem:[%s9162_s21 + $0x2b8] sm:$0xff]  ;;  %v7012_v27 = vcombine.low %v678_v56, %v682_v59  ;;  %v697_v18 = vld [vmem:[#allocation4 + $0x2b0] sm:$0xff] }
 0x1b0   : > { %10541 = vst [vmem:[#allocation30_spill] sm:$0xff] %v9512_v50  ;;  %v514_v14 = vld [vmem:[%s9162_s21 + $0x2f8] sm:$0xff] }
 0x1b1   : > { %4640 = vmatpush1.bf16.msra.mxu0 %v6986_v51  ;;  %5092 = vmatpush1.bf16.msra.mxu1 %v6988_v57  ;;  %v497_v51 = vld [vmem:[%s9162_s21 + $0x270] sm:$0xff]  ;;  %v7013_v57 = vcombine.high %v678_v56, %v682_v59 }
 0x1b2   : > { %4641 = vmatprep.subr.bf16.mxu0 %v6995_v17  ;;  %5093 = vmatprep.subr.bf16.mxu1 %v6997_v3  ;;  %v685_v17 = vld [vmem:[#allocation4 + $0x250] sm:$0xff]  ;;  %v9520_v20 = vpack.c.bf16 %v497_v51, %v489_v44  ;;  %v694_v44 = vld [vmem:[#allocation4 + $0x298] sm:$0xff] }
 0x1b3   : > { %v689_v3 = vld [vmem:[#allocation4 + $0x270] sm:$0xff]  ;;  %v698_v51 = vld [vmem:[#allocation4 + $0x2b8] sm:$0xff] }
 0x1b4   : > { %4127 = vmatmul.mubr.bf16.gmra.mrb[12].mxu0 %v9508_v29  ;;  %4579 = vmatmul.mubr.bf16.gmra.mrb[12].mxu1 %v9508_v29  ;;  %10542 = vst [vmem:[#allocation31_spill] sm:$0xff] %v9520_v20  ;;  %v7010_v29 = vcombine.low %v677_v49, %v681_v11  ;;  %v7019_v32 = vcombine.high %v685_v17, %v689_v3  ;;  %v505_v49 = vld [vmem:[%s9162_s21 + $0x2b0] sm:$0xff] }
 0x1b5   : > { %4642 = vmatpush1.bf16.msra.mxu0 %v6994_v40  ;;  %5094 = vmatpush1.bf16.msra.mxu1 %v6996_v39  ;;  %v690_v40 = vld [vmem:[#allocation4 + $0x278] sm:$0xff]  ;;  %v7018_v11 = vcombine.low %v685_v17, %v689_v3 }
 0x1b6   : > { %4643 = vmatprep.subr.bf16.mxu0 %v7003_v42  ;;  %5095 = vmatprep.subr.bf16.mxu1 %v7005_v46  ;;  %v7021_v39 = vcombine.high %v686_v7, %v690_v40  ;;  %v9524_v42 = vpack.c.bf16 %v514_v14, %v506_v24  ;;  %v693_v46 = vld [vmem:[#allocation4 + $0x290] sm:$0xff]  ;;  %v7020_v56 = vcombine.low %v686_v7, %v690_v40  ;;  %v702_v24 = vld [vmem:[#allocation4 + $0x2d8] sm:$0xff] }
 0x1b7   : > { %4136 = vmatprep.mubr.bf16.mxu0 %v9512_v50  ;;  %4588 = vmatprep.mubr.bf16.mxu1 %v9512_v50  ;;  %v7027_v59 = vcombine.high %v693_v46, %v697_v18  ;;  %v522_v17 = vld [vmem:[%s9162_s21 + $0x338] sm:$0xff]  ;;  %v7028_v7 = vcombine.low %v694_v44, %v698_v51  ;;  %v713_v50 = vld [vmem:[#allocation4 + $0x330] sm:$0xff] }
 0x1b8   : > { %10543 = vst [vmem:[#allocation32_spill] sm:$0xff] %v9524_v42  ;;  %v530_v3 = vld [vmem:[%s9162_s21 + $0x378] sm:$0xff] }
 0x1b9   : > { %4644 = vmatpush1.bf16.msra.mxu0 %v7002_v10  ;;  %5096 = vmatpush1.bf16.msra.mxu1 %v7004_v63  ;;  %v513_v10 = vld [vmem:[%s9162_s21 + $0x2f0] sm:$0xff]  ;;  %v7029_v63 = vcombine.high %v694_v44, %v698_v51 }
 0x1ba   : > { %4645 = vmatprep.subr.bf16.mxu0 %v7011_v8  ;;  %5097 = vmatprep.subr.bf16.mxu1 %v7013_v57  ;;  %v701_v8 = vld [vmem:[#allocation4 + $0x2d0] sm:$0xff]  ;;  %v9532_v14 = vpack.c.bf16 %v513_v10, %v505_v49  ;;  %v710_v49 = vld [vmem:[#allocation4 + $0x318] sm:$0xff] }
 0x1bb   : > { %v705_v57 = vld [vmem:[#allocation4 + $0x2f0] sm:$0xff]  ;;  %v714_v10 = vld [vmem:[#allocation4 + $0x338] sm:$0xff] }
 0x1bc   : > { %4137 = vmatmul.mubr.bf16.gmra.mrb[16].mxu0 %v9520_v20  ;;  %4589 = vmatmul.mubr.bf16.gmra.mrb[16].mxu1 %v9520_v20  ;;  %10544 = vst [vmem:[#allocation33_spill] sm:$0xff] %v9532_v14  ;;  %v7026_v20 = vcombine.low %v693_v46, %v697_v18  ;;  %v7035_v40 = vcombine.high %v701_v8, %v705_v57  ;;  %v521_v46 = vld [vmem:[%s9162_s21 + $0x330] sm:$0xff] }
 0x1bd   : > { %4646 = vmatpush1.bf16.msra.mxu0 %v7010_v29  ;;  %5098 = vmatpush1.bf16.msra.mxu1 %v7012_v27  ;;  %v706_v29 = vld [vmem:[#allocation4 + $0x2f8] sm:$0xff]  ;;  %v7034_v18 = vcombine.low %v701_v8, %v705_v57 }
 0x1be   : > { %4647 = vmatprep.subr.bf16.mxu0 %v7019_v32  ;;  %5099 = vmatprep.subr.bf16.mxu1 %v7021_v39  ;;  %v7037_v27 = vcombine.high %v702_v24, %v706_v29  ;;  %v9536_v32 = vpack.c.bf16 %v530_v3, %v522_v17  ;;  %v709_v39 = vld [vmem:[#allocation4 + $0x310] sm:$0xff]  ;;  %v7036_v44 = vcombine.low %v702_v24, %v706_v29  ;;  %v718_v17 = vld [vmem:[#allocation4 + $0x358] sm:$0xff] }
 0x1bf   : > { %4146 = vmatprep.mubr.bf16.mxu0 %v9524_v42  ;;  %4598 = vmatprep.mubr.bf16.mxu1 %v9524_v42  ;;  %v7043_v51 = vcombine.high %v709_v39, %v713_v50  ;;  %v538_v8 = vld [vmem:[%s9162_s21 + $0x3b8] sm:$0xff]  ;;  %v7044_v24 = vcombine.low %v710_v49, %v714_v10  ;;  %v729_v42 = vld [vmem:[#allocation4 + $0x3b0] sm:$0xff] }
 0x1c0   : > { %v546_v57 = vld [vmem:[%s9162_s21 + $0x3f8] sm:$0xff] }
 0x1c1   : > { %4648 = vmatpush1.bf16.msra.mxu0 %v7018_v11  ;;  %5100 = vmatpush1.bf16.msra.mxu1 %v7020_v56  ;;  %v529_v11 = vld [vmem:[%s9162_s21 + $0x370] sm:$0xff]  ;;  %v7045_v56 = vcombine.high %v710_v49, %v714_v10 }
 0x1c2   : > { %4649 = vmatprep.subr.bf16.mxu0 %v7027_v59  ;;  %5101 = vmatprep.subr.bf16.mxu1 %v7029_v63  ;;  %v717_v59 = vld [vmem:[#allocation4 + $0x350] sm:$0xff]  ;;  %v9544_v3 = vpack.c.bf16 %v529_v11, %v521_v46  ;;  %v726_v46 = vld [vmem:[#allocation4 + $0x398] sm:$0xff] }
 0x1c3   : > { %v721_v63 = vld [vmem:[#allocation4 + $0x370] sm:$0xff]  ;;  %v730_v11 = vld [vmem:[#allocation4 + $0x3b8] sm:$0xff] }
 0x1c4   : > { %4147 = vmatmul.mubr.bf16.gmra.mrb[20].mxu0 %v9532_v14  ;;  %4599 = vmatmul.mubr.bf16.gmra.mrb[20].mxu1 %v9532_v14  ;;  %10545 = vst [vmem:[#allocation34_spill] sm:$0xff] %v9544_v3  ;;  %v7042_v14 = vcombine.low %v709_v39, %v713_v50  ;;  %v7051_v29 = vcombine.high %v717_v59, %v721_v63  ;;  %v537_v39 = vld [vmem:[%s9162_s21 + $0x3b0] sm:$0xff] }
 0x1c5   : > { %4650 = vmatpush1.bf16.msra.mxu0 %v7026_v20  ;;  %5102 = vmatpush1.bf16.msra.mxu1 %v7028_v7  ;;  %v722_v20 = vld [vmem:[#allocation4 + $0x378] sm:$0xff]  ;;  %v7050_v50 = vcombine.low %v717_v59, %v721_v63  ;;  %v7060_v59 = vcombine.low %v726_v46, %v730_v11 }
 0x1c6   : > { %4651 = vmatprep.subr.bf16.mxu0 %v7035_v40  ;;  %5103 = vmatprep.subr.bf16.mxu1 %v7037_v27  ;;  %v7053_v7 = vcombine.high %v718_v17, %v722_v20  ;;  %v9548_v40 = vpack.c.bf16 %v546_v57, %v538_v8  ;;  %v725_v27 = vld [vmem:[#allocation4 + $0x390] sm:$0xff]  ;;  %v7052_v49 = vcombine.low %v718_v17, %v722_v20  ;;  %v734_v57 = vld [vmem:[#allocation4 + $0x3d8] sm:$0xff] }
 0x1c7   : > { %4156 = vmatprep.mubr.bf16.mxu0 %v9536_v32  ;;  %4608 = vmatprep.mubr.bf16.mxu1 %v9536_v32  ;;  %v7059_v10 = vcombine.high %v725_v27, %v729_v42  ;;  %v741_v20 = vld [vmem:[#allocation4 + $0x410] sm:$0xff] }
 0x1c9   : > { %4652 = vmatpush1.bf16.msra.mxu0 %v7034_v18  ;;  %5104 = vmatpush1.bf16.msra.mxu1 %v7036_v44  ;;  %v545_v18 = vld [vmem:[%s9162_s21 + $0x3f0] sm:$0xff]  ;;  %v7061_v44 = vcombine.high %v726_v46, %v730_v11 }
 0x1ca   : > { %4653 = vmatprep.subr.bf16.mxu0 %v7043_v51  ;;  %5105 = vmatprep.subr.bf16.mxu1 %v7045_v56  ;;  %v733_v51 = vld [vmem:[#allocation4 + $0x3d0] sm:$0xff]  ;;  %v9556_v8 = vpack.c.bf16 %v545_v18, %v537_v39  ;;  %v750_v18 = vld [vmem:[#allocation4 + $0x458] sm:$0xff] }
 0x1cb   : > { %v737_v56 = vld [vmem:[#allocation4 + $0x3f0] sm:$0xff] }
 0x1cc   : > { %4157 = vmatmul.mubr.bf16.gmra.mrb[24].mxu0 %v9544_v3  ;;  %4609 = vmatmul.mubr.bf16.gmra.mrb[24].mxu1 %v9544_v3  ;;  %v738_v3 = vld [vmem:[#allocation4 + $0x3f8] sm:$0xff]  ;;  %v7067_v63 = vcombine.high %v733_v51, %v737_v56  ;;  %v7066_v39 = vcombine.low %v733_v51, %v737_v56  ;;  %v749_v46 = vld [vmem:[#allocation4 + $0x450] sm:$0xff] }
 0x1cd   : > { %4654 = vmatpush1.bf16.msra.mxu0 %v7042_v14  ;;  %5106 = vmatpush1.bf16.msra.mxu1 %v7044_v24  ;;  %v7058_v14 = vcombine.low %v725_v27, %v729_v42  ;;  %v7069_v17 = vcombine.high %v734_v57, %v738_v3  ;;  %v745_v24 = vld [vmem:[#allocation4 + $0x430] sm:$0xff] }
 0x1ce   : > { %4655 = vmatprep.subr.bf16.mxu0 %v7051_v29  ;;  %5107 = vmatprep.subr.bf16.mxu1 %v7053_v7  ;;  %v742_v29 = vld [vmem:[#allocation4 + $0x418] sm:$0xff]  ;;  %v7075_v42 = vcombine.high %v741_v20, %v745_v24  ;;  %v753_v11 = vld [vmem:[#allocation4 + $0x470] sm:$0xff] }
 0x1cf   : > { %4166 = vmatprep.mubr.bf16.mxu0 %v9548_v40  ;;  %4618 = vmatprep.mubr.bf16.mxu1 %v9548_v40  ;;  %v746_v7 = vld [vmem:[#allocation4 + $0x438] sm:$0xff]  ;;  %v7083_v51 = vcombine.high %v749_v46, %v753_v11 }
 0x1d0   : > { %v7077_v27 = vcombine.high %v742_v29, %v746_v7 }
 0x1d1   : > { %4656 = vmatpush1.bf16.msra.mxu0 %v7050_v50  ;;  %5108 = vmatpush1.bf16.msra.mxu1 %v7052_v49  ;;  %v7068_v50 = vcombine.low %v734_v57, %v738_v3  ;;  %v754_v49 = vld [vmem:[#allocation4 + $0x478] sm:$0xff]  ;;  %v757_v3 = vld [vmem:[#allocation4 + $0x490] sm:$0xff] }
 0x1d2   : > { %4657 = vmatprep.subr.bf16.mxu0 %v7059_v10  ;;  %5109 = vmatprep.subr.bf16.mxu1 %v7061_v44  ;;  %v7074_v10 = vcombine.low %v741_v20, %v745_v24  ;;  %v7076_v44 = vcombine.low %v742_v29, %v746_v7  ;;  %v7085_v56 = vcombine.high %v750_v18, %v754_v49  ;;  %v761_v57 = vld [vmem:[#allocation4 + $0x4b0] sm:$0xff]  ;;  %v766_v7 = vld [vmem:[#allocation4 + $0x4d8] sm:$0xff] }
 0x1d3   : > { %v765_v24 = vld [vmem:[#allocation4 + $0x4d0] sm:$0xff] }
 0x1d4   : > { %4167 = vmatmul.mubr.bf16.gmra.mrb[28].mxu0 %v9556_v8  ;;  %4619 = vmatmul.mubr.bf16.gmra.mrb[28].mxu1 %v9556_v8  ;;  %v769_v29 = vld [vmem:[#allocation4 + $0x4f0] sm:$0xff] }
 0x1d5   : > { %4658 = vmatpush1.bf16.msra.mxu0 %v7058_v14  ;;  %5110 = vmatpush1.bf16.msra.mxu1 %v7060_v59  ;;  %v758_v14 = vld [vmem:[#allocation4 + $0x498] sm:$0xff] }
 0x1d6   : > { %4659 = vmatprep.subr.bf16.mxu0 %v7067_v63  ;;  %5111 = vmatprep.subr.bf16.mxu1 %v7069_v17  ;;  %v762_v59 = vld [vmem:[#allocation4 + $0x4b8] sm:$0xff]  ;;  %v7084_v63 = vcombine.low %v750_v18, %v754_v49  ;;  %v7091_v17 = vcombine.high %v757_v3, %v761_v57 }
 0x1d7   : > { %4661 = vmatprep.mubr.bf16.mxu0 %v9178_v58  ;;  %5113 = vmatprep.mubr.bf16.mxu1 %v9178_v58  ;;  %v7082_v58 = vcombine.low %v749_v46, %v753_v11  ;;  %v7093_v20 = vcombine.high %v758_v14, %v762_v59  ;;  %v773_v46 = vld [vmem:[#allocation4 + $0x510] sm:$0xff]  ;;  %v774_v18 = vld [vmem:[#allocation4 + $0x518] sm:$0xff] }
 0x1d8   : > { %v777_v11 = vld [vmem:[#allocation4 + $0x530] sm:$0xff]  ;;  %v778_v49 = vld [vmem:[#allocation4 + $0x538] sm:$0xff] }
 0x1d9   : > { %4660 = vmatpush1.bf16.msra.mxu0 %v7066_v39  ;;  %5112 = vmatpush1.bf16.msra.mxu1 %v7068_v50  ;;  %v770_v39 = vld [vmem:[#allocation4 + $0x4f8] sm:$0xff]  ;;  %v7090_v50 = vcombine.low %v757_v3, %v761_v57  ;;  %v785_v3 = vld [vmem:[#allocation4 + $0x570] sm:$0xff] }
 0x1da   : > { %4742 = vmatprep.subr.bf16.mxu0 %v7075_v42  ;;  %5194 = vmatprep.subr.bf16.mxu1 %v7077_v27  ;;  %v7099_v42 = vcombine.high %v765_v24, %v769_v29  ;;  %v7101_v27 = vcombine.high %v766_v7, %v770_v39  ;;  %v782_v57 = vld [vmem:[#allocation4 + $0x558] sm:$0xff] }
 0x1dc   : > { %4662 = vmatmul.mubr.bf16.vlgmr.msra.gmra.mrb[32].mxu0 %v9184_v15  ;;  %5114 = vmatmul.mubr.bf16.vlgmr.msra.gmra.mrb[32].mxu1 %v9184_v15  ;;  %v7092_v15 = vcombine.low %v758_v14, %v762_v59  ;;  %v786_v14 = vld [vmem:[#allocation4 + $0x578] sm:$0xff]  ;;  %v7106_v59 = vcombine.low %v773_v46, %v777_v11 }
 0x1dd   : > { %4743 = vmatpush1.bf16.msra.mxu0 %v7074_v10  ;;  %5195 = vmatpush1.bf16.msra.mxu1 %v7076_v44  ;;  %v7100_v10 = vcombine.low %v766_v7, %v770_v39  ;;  %v7107_v44 = vcombine.high %v773_v46, %v777_v11  ;;  %v7116_v7 = vcombine.low %v782_v57, %v786_v14  ;;  %v802_v46 = vld [vmem:[#allocation4 + $0x5f8] sm:$0xff] }
 0x1de   : > { %4744 = vmatprep.subr.bf16.mxu0 %v7083_v51  ;;  %5196 = vmatprep.subr.bf16.mxu1 %v7085_v56  ;;  %v7109_v51 = vcombine.high %v774_v18, %v778_v49  ;;  %v781_v56 = vld [vmem:[#allocation4 + $0x550] sm:$0xff] }
 0x1df   : > { %4671 = vmatprep.mubr.bf16.mxu0 %v9188_v23  ;;  %5123 = vmatprep.mubr.bf16.mxu1 %v9188_v23  ;;  %v7098_v23 = vcombine.low %v765_v24, %v769_v29  ;;  %v790_v24 = vld [vmem:[#allocation4 + $0x598] sm:$0xff] }
 0x1e0   : > { %v794_v29 = vld [vmem:[#allocation4 + $0x5b8] sm:$0xff] }
 0x1e1   : > { %4745 = vmatpush1.bf16.msra.mxu0 %v7082_v58  ;;  %5197 = vmatpush1.bf16.msra.mxu1 %v7084_v63  ;;  %v7115_v58 = vcombine.high %v781_v56, %v785_v3  ;;  %v7117_v63 = vcombine.high %v782_v57, %v786_v14  ;;  %v813_v14 = vld [vmem:[#allocation4 + $0x650] sm:$0xff] }
 0x1e2   : > { %4746 = vmatprep.subr.bf16.mxu0 %v7091_v17  ;;  %5198 = vmatprep.subr.bf16.mxu1 %v7093_v20  ;;  %v789_v17 = vld [vmem:[#allocation4 + $0x590] sm:$0xff] }
 0x1e3   : > { %v793_v20 = vld [vmem:[#allocation4 + $0x5b0] sm:$0xff] }
 0x1e4   : > { %4672 = vmatmul.mubr.bf16.gmra.mrb[36].mxu0 %v9196_v37  ;;  %5124 = vmatmul.mubr.bf16.gmra.mrb[36].mxu1 %v9196_v37  ;;  %v7108_v37 = vcombine.low %v774_v18, %v778_v49  ;;  %v7123_v39 = vcombine.high %v789_v17, %v793_v20  ;;  %v7122_v11 = vcombine.low %v789_v17, %v793_v20 }
 0x1e5   : > { %4747 = vmatpush1.bf16.msra.mxu0 %v7090_v50  ;;  %5199 = vmatpush1.bf16.msra.mxu1 %v7092_v15  ;;  %v7125_v50 = vcombine.high %v790_v24, %v794_v29  ;;  %v797_v15 = vld [vmem:[#allocation4 + $0x5d0] sm:$0xff] }
 0x1e6   : > { %4748 = vmatprep.subr.bf16.mxu0 %v7099_v42  ;;  %5200 = vmatprep.subr.bf16.mxu1 %v7101_v27  ;;  %v801_v42 = vld [vmem:[#allocation4 + $0x5f0] sm:$0xff]  ;;  %v798_v27 = vld [vmem:[#allocation4 + $0x5d8] sm:$0xff] }
 0x1e7   : > { %4681 = vmatprep.mubr.bf16.mxu0 %v9200_v45  ;;  %5133 = vmatprep.mubr.bf16.mxu1 %v9200_v45  ;;  %v7114_v45 = vcombine.low %v781_v56, %v785_v3  ;;  %v7131_v18 = vcombine.high %v797_v15, %v801_v42  ;;  %v7133_v49 = vcombine.high %v798_v27, %v802_v46 }
 0x1e8   : > { %v7132_v56 = vcombine.low %v798_v27, %v802_v46  ;;  %v833_v27 = vld [vmem:[#allocation4 + $0x6f0] sm:$0xff]  ;;  %v830_v46 = vld [vmem:[#allocation4 + $0x6d8] sm:$0xff] }
 0x1e9   : > { %4749 = vmatpush1.bf16.msra.mxu0 %v7098_v23  ;;  %5201 = vmatpush1.bf16.msra.mxu1 %v7100_v10  ;;  %v805_v23 = vld [vmem:[#allocation4 + $0x610] sm:$0xff] }
 0x1ea   : > { %4750 = vmatprep.subr.bf16.mxu0 %v7107_v44  ;;  %5202 = vmatprep.subr.bf16.mxu1 %v7109_v51  ;;  %v809_v10 = vld [vmem:[#allocation4 + $0x630] sm:$0xff]  ;;  %v806_v44 = vld [vmem:[#allocation4 + $0x618] sm:$0xff] }
 0x1eb   : > { %v810_v51 = vld [vmem:[#allocation4 + $0x638] sm:$0xff]  ;;  %v7139_v3 = vcombine.high %v805_v23, %v809_v10 }
 0x1ec   : > { %4682 = vmatmul.mubr.bf16.gmra.mrb[40].mxu0 %v9208_v60  ;;  %5134 = vmatmul.mubr.bf16.gmra.mrb[40].mxu1 %v9208_v60  ;;  %v7124_v60 = vcombine.low %v790_v24, %v794_v29  ;;  %v7141_v57 = vcombine.high %v806_v44, %v810_v51  ;;  %v821_v24 = vld [vmem:[#allocation4 + $0x690] sm:$0xff] }
 0x1ed   : > { %4751 = vmatpush1.bf16.msra.mxu0 %v7106_v59  ;;  %5203 = vmatpush1.bf16.msra.mxu1 %v7108_v37  ;;  %v817_v59 = vld [vmem:[#allocation4 + $0x670] sm:$0xff]  ;;  %v814_v37 = vld [vmem:[#allocation4 + $0x658] sm:$0xff] }
 0x1ee   : > { %4752 = vmatprep.subr.bf16.mxu0 %v7115_v58  ;;  %5204 = vmatprep.subr.bf16.mxu1 %v7117_v63  ;;  %v818_v58 = vld [vmem:[#allocation4 + $0x678] sm:$0xff]  ;;  %v7138_v63 = vcombine.low %v805_v23, %v809_v10  ;;  %v7147_v17 = vcombine.high %v813_v14, %v817_v59  ;;  %v825_v29 = vld [vmem:[#allocation4 + $0x6b0] sm:$0xff] }
 0x1ef   : > { %4691 = vmatprep.mubr.bf16.mxu0 %v9212_v4  ;;  %5143 = vmatprep.mubr.bf16.mxu1 %v9212_v4  ;;  %v7130_v4 = vcombine.low %v797_v15, %v801_v42  ;;  %v7149_v20 = vcombine.high %v814_v37, %v818_v58  ;;  %v829_v42 = vld [vmem:[#allocation4 + $0x6d0] sm:$0xff] }
 0x1f0   : > { %v837_v23 = vld [vmem:[#allocation4 + $0x710] sm:$0xff] }
 0x1f1   : > { %4753 = vmatpush1.bf16.msra.mxu0 %v7114_v45  ;;  %5205 = vmatpush1.bf16.msra.mxu1 %v7116_v7  ;;  %v822_v45 = vld [vmem:[#allocation4 + $0x698] sm:$0xff]  ;;  %v841_v10 = vld [vmem:[#allocation4 + $0x730] sm:$0xff] }
 0x1f2   : > { %4754 = vmatprep.subr.bf16.mxu0 %v7123_v39  ;;  %5206 = vmatprep.subr.bf16.mxu1 %v7125_v50  ;;  %v826_v7 = vld [vmem:[#allocation4 + $0x6b8] sm:$0xff]  ;;  %v7148_v39 = vcombine.low %v814_v37, %v818_v58  ;;  %v7155_v50 = vcombine.high %v821_v24, %v825_v29  ;;  %v7170_v58 = vcombine.low %v837_v23, %v841_v10 }
 0x1f3   : > { %v7157_v15 = vcombine.high %v822_v45, %v826_v7  ;;  %v850_v37 = vld [vmem:[#allocation4 + $0x778] sm:$0xff] }
 0x1f4   : > { %4692 = vmatmul.mubr.bf16.gmra.mrb[44].mxu0 %v9220_v19  ;;  %5144 = vmatmul.mubr.bf16.gmra.mrb[44].mxu1 %v9220_v19  ;;  %v7140_v19 = vcombine.low %v806_v44, %v810_v51  ;;  %v838_v44 = vld [vmem:[#allocation4 + $0x718] sm:$0xff] }
 0x1f5   : > { %4755 = vmatpush1.bf16.msra.mxu0 %v7122_v11  ;;  %5207 = vmatpush1.bf16.msra.mxu1 %v7124_v60  ;;  %v834_v11 = vld [vmem:[#allocation4 + $0x6f8] sm:$0xff]  ;;  %v7154_v60 = vcombine.low %v821_v24, %v825_v29 }
 0x1f6   : > { %4756 = vmatprep.subr.bf16.mxu0 %v7131_v18  ;;  %5208 = vmatprep.subr.bf16.mxu1 %v7133_v49  ;;  %v7163_v18 = vcombine.high %v829_v42, %v833_v27  ;;  %v7165_v49 = vcombine.high %v830_v46, %v834_v11  ;;  %v842_v51 = vld [vmem:[#allocation4 + $0x738] sm:$0xff] }
 0x1f7   : > { %4701 = vmatprep.mubr.bf16.mxu0 %v9224_v28  ;;  %5153 = vmatprep.mubr.bf16.mxu1 %v9224_v28  ;;  %v7146_v28 = vcombine.low %v813_v14, %v817_v59  ;;  %v849_v14 = vld [vmem:[#allocation4 + $0x770] sm:$0xff]  ;;  %v846_v59 = vld [vmem:[#allocation4 + $0x758] sm:$0xff] }
 0x1f8   : > { %v854_v24 = vld [vmem:[#allocation4 + $0x798] sm:$0xff] }
 0x1f9   : > { %4757 = vmatpush1.bf16.msra.mxu0 %v7130_v4  ;;  %5209 = vmatpush1.bf16.msra.mxu1 %v7132_v56  ;;  %v7164_v4 = vcombine.low %v830_v46, %v834_v11  ;;  %v7171_v56 = vcombine.high %v837_v23, %v841_v10  ;;  %v858_v29 = vld [vmem:[#allocation4 + $0x7b8] sm:$0xff] }
 0x1fa   : > { %4758 = vmatprep.subr.bf16.mxu0 %v7139_v3  ;;  %5210 = vmatprep.subr.bf16.mxu1 %v7141_v57  ;;  %v7173_v3 = vcombine.high %v838_v44, %v842_v51  ;;  %v845_v57 = vld [vmem:[#allocation4 + $0x750] sm:$0xff] }
 0x1fc   : > { %4702 = vmatmul.mubr.bf16.gmra.mrb[48].mxu0 %v9232_v43  ;;  %5154 = vmatmul.mubr.bf16.gmra.mrb[48].mxu1 %v9232_v43  ;;  %v7156_v43 = vcombine.low %v822_v45, %v826_v7  ;;  %v7180_v45 = vcombine.low %v846_v59, %v850_v37 }
 0x1fd   : > { %4759 = vmatpush1.bf16.msra.mxu0 %v7138_v63  ;;  %5211 = vmatpush1.bf16.msra.mxu1 %v7140_v19  ;;  %v7179_v63 = vcombine.high %v845_v57, %v849_v14  ;;  %v7181_v19 = vcombine.high %v846_v59, %v850_v37  ;;  %v885_v59 = vld [vmem:[#allocation4 + $0x890] sm:$0xff] }
 0x1fe   : > { %4760 = vmatprep.subr.bf16.mxu0 %v7147_v17  ;;  %5212 = vmatprep.subr.bf16.mxu1 %v7149_v20  ;;  %v853_v17 = vld [vmem:[#allocation4 + $0x790] sm:$0xff] }
 0x1ff   : > { %4711 = vmatprep.mubr.bf16.mxu0 %v9236_v52  ;;  %5163 = vmatprep.mubr.bf16.mxu1 %v9236_v52  ;;  %v7162_v52 = vcombine.low %v829_v42, %v833_v27  ;;  %v857_v20 = vld [vmem:[#allocation4 + $0x7b0] sm:$0xff]  ;;  %v866_v42 = vld [vmem:[#allocation4 + $0x7f8] sm:$0xff] }
 0x200   : > { %v7187_v7 = vcombine.high %v853_v17, %v857_v20  ;;  %v7186_v27 = vcombine.low %v853_v17, %v857_v20  ;;  %v889_v37 = vld [vmem:[#allocation4 + $0x8b0] sm:$0xff] }
 0x201   : > { %4761 = vmatpush1.bf16.msra.mxu0 %v7146_v28  ;;  %5213 = vmatpush1.bf16.msra.mxu1 %v7148_v39  ;;  %v7189_v28 = vcombine.high %v854_v24, %v858_v29  ;;  %v861_v39 = vld [vmem:[#allocation4 + $0x7d0] sm:$0xff] }
 0x202   : > { %4762 = vmatprep.subr.bf16.mxu0 %v7155_v50  ;;  %5214 = vmatprep.subr.bf16.mxu1 %v7157_v15  ;;  %v865_v50 = vld [vmem:[#allocation4 + $0x7f0] sm:$0xff]  ;;  %v862_v15 = vld [vmem:[#allocation4 + $0x7d8] sm:$0xff] }
 0x203   : > { %v7195_v46 = vcombine.high %v861_v39, %v865_v50  ;;  %v7197_v11 = vcombine.high %v862_v15, %v866_v42  ;;  %v7196_v23 = vcombine.low %v862_v15, %v866_v42  ;;  %v893_v20 = vld [vmem:[#allocation4 + $0x8d0] sm:$0xff]  ;;  %v902_v15 = vld [vmem:[#allocation4 + $0x918] sm:$0xff] }
 0x204   : > { %4712 = vmatmul.mubr.bf16.gmra.mrb[52].mxu0 %v9244_v5  ;;  %5164 = vmatmul.mubr.bf16.gmra.mrb[52].mxu1 %v9244_v5  ;;  %v7172_v5 = vcombine.low %v838_v44, %v842_v51  ;;  %v877_v51 = vld [vmem:[#allocation4 + $0x850] sm:$0xff]  ;;  %v906_v42 = vld [vmem:[#allocation4 + $0x938] sm:$0xff] }
 0x205   : > { %4763 = vmatpush1.bf16.msra.mxu0 %v7154_v60  ;;  %5215 = vmatpush1.bf16.msra.mxu1 %v7156_v43  ;;  %v869_v60 = vld [vmem:[#allocation4 + $0x810] sm:$0xff] }
 0x206   : > { %4764 = vmatprep.subr.bf16.mxu0 %v7163_v18  ;;  %5216 = vmatprep.subr.bf16.mxu1 %v7165_v49  ;;  %v873_v43 = vld [vmem:[#allocation4 + $0x830] sm:$0xff]  ;;  %v870_v18 = vld [vmem:[#allocation4 + $0x818] sm:$0xff] }
 0x207   : > { %4721 = vmatprep.mubr.bf16.mxu0 %v9248_v13  ;;  %5173 = vmatprep.mubr.bf16.mxu1 %v9248_v13  ;;  %v7178_v13 = vcombine.low %v845_v57, %v849_v14  ;;  %v874_v49 = vld [vmem:[#allocation4 + $0x838] sm:$0xff]  ;;  %v7203_v10 = vcombine.high %v869_v60, %v873_v43 }
 0x208   : > { %v7205_v44 = vcombine.high %v870_v18, %v874_v49 }
 0x209   : > { %4765 = vmatpush1.bf16.msra.mxu0 %v7162_v52  ;;  %5217 = vmatpush1.bf16.msra.mxu1 %v7164_v4  ;;  %v881_v52 = vld [vmem:[#allocation4 + $0x870] sm:$0xff]  ;;  %v878_v4 = vld [vmem:[#allocation4 + $0x858] sm:$0xff] }
 0x20a   : > { %4766 = vmatprep.subr.bf16.mxu0 %v7171_v56  ;;  %5218 = vmatprep.subr.bf16.mxu1 %v7173_v3  ;;  %v882_v56 = vld [vmem:[#allocation4 + $0x878] sm:$0xff]  ;;  %v7202_v3 = vcombine.low %v869_v60, %v873_v43  ;;  %v7211_v57 = vcombine.high %v877_v51, %v881_v52  ;;  %v913_v60 = vld [vmem:[#allocation4 + $0x970] sm:$0xff] }
 0x20b   : > { %v7213_v14 = vcombine.high %v878_v4, %v882_v56  ;;  %v910_v43 = vld [vmem:[#allocation4 + $0x958] sm:$0xff] }
 0x20c   : > { %4722 = vmatmul.mubr.bf16.gmra.mrb[56].mxu0 %v9258_v34  ;;  %5174 = vmatmul.mubr.bf16.gmra.mrb[56].mxu1 %v9258_v34  ;;  %v7188_v34 = vcombine.low %v854_v24, %v858_v29  ;;  %v897_v24 = vld [vmem:[#allocation4 + $0x8f0] sm:$0xff]  ;;  %v894_v29 = vld [vmem:[#allocation4 + $0x8d8] sm:$0xff] }
 0x20d   : > { %4767 = vmatpush1.bf16.msra.mxu0 %v7170_v58  ;;  %5219 = vmatpush1.bf16.msra.mxu1 %v7172_v5  ;;  %v886_v58 = vld [vmem:[#allocation4 + $0x898] sm:$0xff] }
 0x20e   : > { %4768 = vmatprep.subr.bf16.mxu0 %v7179_v63  ;;  %5220 = vmatprep.subr.bf16.mxu1 %v7181_v19  ;;  %v890_v5 = vld [vmem:[#allocation4 + $0x8b8] sm:$0xff]  ;;  %v7212_v63 = vcombine.low %v878_v4, %v882_v56  ;;  %v7219_v19 = vcombine.high %v885_v59, %v889_v37 }
 0x20f   : > { %4731 = vmatprep.mubr.bf16.mxu0 %v9260_v41  ;;  %5183 = vmatprep.mubr.bf16.mxu1 %v9260_v41  ;;  %v7194_v41 = vcombine.low %v861_v39, %v865_v50  ;;  %v7221_v17 = vcombine.high %v886_v58, %v890_v5  ;;  %v901_v39 = vld [vmem:[#allocation4 + $0x910] sm:$0xff] }
 0x210   : > { %v905_v50 = vld [vmem:[#allocation4 + $0x930] sm:$0xff] }
 0x211   : > { %4769 = vmatpush1.bf16.msra.mxu0 %v7178_v13  ;;  %5221 = vmatpush1.bf16.msra.mxu1 %v7180_v45  ;;  %v898_v13 = vld [vmem:[#allocation4 + $0x8f8] sm:$0xff]  ;;  %v7218_v45 = vcombine.low %v885_v59, %v889_v37 }
 0x212   : > { %4770 = vmatprep.subr.bf16.mxu0 %v7187_v7  ;;  %5222 = vmatprep.subr.bf16.mxu1 %v7189_v28  ;;  %v7227_v7 = vcombine.high %v893_v20, %v897_v24  ;;  %v7229_v28 = vcombine.high %v894_v29, %v898_v13  ;;  %v930_v59 = vld [vmem:[#allocation4 + $0x9f8] sm:$0xff] }
 0x214   : > { %4732 = vmatmul.mubr.bf16.gmra.mrb[60].mxu0 %v9270_v62  ;;  %5184 = vmatmul.mubr.bf16.gmra.mrb[60].mxu1 %v9270_v62  ;;  %v7204_v62 = vcombine.low %v870_v18, %v874_v49  ;;  %v914_v18 = vld [vmem:[#allocation4 + $0x978] sm:$0xff]  ;;  %v7234_v49 = vcombine.low %v901_v39, %v905_v50 }
 0x215   : > { %4771 = vmatpush1.bf16.msra.mxu0 %v7186_v27  ;;  %5223 = vmatpush1.bf16.msra.mxu1 %v7188_v34  ;;  %v7228_v27 = vcombine.low %v894_v29, %v898_v13  ;;  %v7235_v34 = vcombine.high %v901_v39, %v905_v50  ;;  %v7244_v4 = vcombine.low %v910_v43, %v914_v18  ;;  %v941_v13 = vld [vmem:[#allocation4 + $0xa50] sm:$0xff] }
 0x216   : > { %4772 = vmatprep.subr.bf16.mxu0 %v7195_v46  ;;  %5224 = vmatprep.subr.bf16.mxu1 %v7197_v11  ;;  %v7237_v46 = vcombine.high %v902_v15, %v906_v42  ;;  %v909_v11 = vld [vmem:[#allocation4 + $0x950] sm:$0xff] }
 0x217   : > { %4774 = vmatprep.mubr.bf16.mxu0 %v9272_v6  ;;  %5226 = vmatprep.mubr.bf16.mxu1 %v9272_v6  ;;  %v7210_v6 = vcombine.low %v877_v51, %v881_v52  ;;  %v918_v51 = vld [vmem:[#allocation4 + $0x998] sm:$0xff] }
 0x218   : > { %v922_v52 = vld [vmem:[#allocation4 + $0x9b8] sm:$0xff] }
 0x219   : > { %4773 = vmatpush1.bf16.msra.mxu0 %v7194_v41  ;;  %5225 = vmatpush1.bf16.msra.mxu1 %v7196_v23  ;;  %v7243_v41 = vcombine.high %v909_v11, %v913_v60  ;;  %v7245_v23 = vcombine.high %v910_v43, %v914_v18  ;;  %v961_v43 = vld [vmem:[#allocation4 + $0xaf0] sm:$0xff]  ;;  %v958_v18 = vld [vmem:[#allocation4 + $0xad8] sm:$0xff] }
 0x21a   : > { %4855 = vmatprep.subr.bf16.mxu0 %v7203_v10  ;;  %5307 = vmatprep.subr.bf16.mxu1 %v7205_v44  ;;  %v917_v10 = vld [vmem:[#allocation4 + $0x990] sm:$0xff] }
 0x21b   : > { %v921_v44 = vld [vmem:[#allocation4 + $0x9b0] sm:$0xff] }
 0x21c   : > { %4775 = vmatmul.mubr.bf16.vlgmr.msra.gmra.mrb[32].mxu0 %v9282_v26  ;;  %5227 = vmatmul.mubr.bf16.vlgmr.msra.gmra.mrb[32].mxu1 %v9282_v26  ;;  %v7220_v26 = vcombine.low %v886_v58, %v890_v5  ;;  %v7251_v56 = vcombine.high %v917_v10, %v921_v44  ;;  %v7250_v37 = vcombine.low %v917_v10, %v921_v44  ;;  %v965_v10 = vld [vmem:[#allocation4 + $0xb10] sm:$0xff] }
 0x21d   : > { %4856 = vmatpush1.bf16.msra.mxu0 %v7202_v3  ;;  %5308 = vmatpush1.bf16.msra.mxu1 %v7204_v62  ;;  %v7253_v3 = vcombine.high %v918_v51, %v922_v52  ;;  %v925_v62 = vld [vmem:[#allocation4 + $0x9d0] sm:$0xff] }
 0x21e   : > { %4857 = vmatprep.subr.bf16.mxu0 %v7211_v57  ;;  %5309 = vmatprep.subr.bf16.mxu1 %v7213_v14  ;;  %v929_v57 = vld [vmem:[#allocation4 + $0x9f0] sm:$0xff]  ;;  %v926_v14 = vld [vmem:[#allocation4 + $0x9d8] sm:$0xff] }
 0x21f   : > { %4784 = vmatprep.mubr.bf16.mxu0 %v9284_v33  ;;  %5236 = vmatprep.mubr.bf16.mxu1 %v9284_v33  ;;  %v7226_v33 = vcombine.low %v893_v20, %v897_v24  ;;  %v7259_v58 = vcombine.high %v925_v62, %v929_v57  ;;  %v7261_v5 = vcombine.high %v926_v14, %v930_v59  ;;  %v969_v44 = vld [vmem:[#allocation4 + $0xb30] sm:$0xff] }
 0x220   : > { %v7260_v20 = vcombine.low %v926_v14, %v930_v59  ;;  %v978_v14 = vld [vmem:[#allocation4 + $0xb78] sm:$0xff]  ;;  %v7298_v59 = vcombine.low %v965_v10, %v969_v44 }
 0x221   : > { %4858 = vmatpush1.bf16.msra.mxu0 %v7210_v6  ;;  %5310 = vmatpush1.bf16.msra.mxu1 %v7212_v63  ;;  %v933_v6 = vld [vmem:[#allocation4 + $0xa10] sm:$0xff] }
 0x222   : > { %4859 = vmatprep.subr.bf16.mxu0 %v7219_v19  ;;  %5311 = vmatprep.subr.bf16.mxu1 %v7221_v17  ;;  %v937_v63 = vld [vmem:[#allocation4 + $0xa30] sm:$0xff]  ;;  %v934_v19 = vld [vmem:[#allocation4 + $0xa18] sm:$0xff] }
 0x223   : > { %v938_v17 = vld [vmem:[#allocation4 + $0xa38] sm:$0xff]  ;;  %v7267_v24 = vcombine.high %v933_v6, %v937_v63 }
 0x224   : > { %4785 = vmatmul.mubr.bf16.gmra.mrb[36].mxu0 %v9294_v55  ;;  %5237 = vmatmul.mubr.bf16.gmra.mrb[36].mxu1 %v9294_v55  ;;  %v7236_v55 = vcombine.low %v902_v15, %v906_v42  ;;  %v7269_v29 = vcombine.high %v934_v19, %v938_v17  ;;  %v949_v15 = vld [vmem:[#allocation4 + $0xa90] sm:$0xff] }
 0x225   : > { %4860 = vmatpush1.bf16.msra.mxu0 %v7218_v45  ;;  %5312 = vmatpush1.bf16.msra.mxu1 %v7220_v26  ;;  %v945_v45 = vld [vmem:[#allocation4 + $0xa70] sm:$0xff]  ;;  %v942_v26 = vld [vmem:[#allocation4 + $0xa58] sm:$0xff] }
 0x226   : > { %4861 = vmatprep.subr.bf16.mxu0 %v7227_v7  ;;  %5313 = vmatprep.subr.bf16.mxu1 %v7229_v28  ;;  %v946_v7 = vld [vmem:[#allocation4 + $0xa78] sm:$0xff]  ;;  %v7266_v28 = vcombine.low %v933_v6, %v937_v63  ;;  %v7275_v39 = vcombine.high %v941_v13, %v945_v45  ;;  %v953_v42 = vld [vmem:[#allocation4 + $0xab0] sm:$0xff] }
 0x227   : > { %4794 = vmatprep.mubr.bf16.mxu0 %v9296_v0  ;;  %5246 = vmatprep.mubr.bf16.mxu1 %v9296_v0  ;;  %v7242_v0 = vcombine.low %v909_v11, %v913_v60  ;;  %v7277_v50 = vcombine.high %v942_v26, %v946_v7  ;;  %v957_v60 = vld [vmem:[#allocation4 + $0xad0] sm:$0xff]  ;;  %v982_v6 = vld [vmem:[#allocation4 + $0xb98] sm:$0xff] }
 0x228   : > { %v986_v63 = vld [vmem:[#allocation4 + $0xbb8] sm:$0xff] }
 0x229   : > { %4862 = vmatpush1.bf16.msra.mxu0 %v7226_v33  ;;  %5314 = vmatpush1.bf16.msra.mxu1 %v7228_v27  ;;  %v950_v33 = vld [vmem:[#allocation4 + $0xa98] sm:$0xff] }
 0x22a   : > { %4863 = vmatprep.subr.bf16.mxu0 %v7235_v34  ;;  %5315 = vmatprep.subr.bf16.mxu1 %v7237_v46  ;;  %v954_v27 = vld [vmem:[#allocation4 + $0xab8] sm:$0xff]  ;;  %v7276_v34 = vcombine.low %v942_v26, %v946_v7  ;;  %v7283_v46 = vcombine.high %v949_v15, %v953_v42 }
 0x22b   : > { %v7285_v11 = vcombine.high %v950_v33, %v954_v27 }
 0x22c   : > { %4795 = vmatmul.mubr.bf16.gmra.mrb[40].mxu0 %v9306_v22  ;;  %5247 = vmatmul.mubr.bf16.gmra.mrb[40].mxu1 %v9306_v22  ;;  %v7252_v22 = vcombine.low %v918_v51, %v922_v52  ;;  %v966_v51 = vld [vmem:[#allocation4 + $0xb18] sm:$0xff] }
 0x22d   : > { %4864 = vmatpush1.bf16.msra.mxu0 %v7234_v49  ;;  %5316 = vmatpush1.bf16.msra.mxu1 %v7236_v55  ;;  %v962_v49 = vld [vmem:[#allocation4 + $0xaf8] sm:$0xff]  ;;  %v7282_v55 = vcombine.low %v949_v15, %v953_v42 }
 0x22e   : > { %4865 = vmatprep.subr.bf16.mxu0 %v7243_v41  ;;  %5317 = vmatprep.subr.bf16.mxu1 %v7245_v23  ;;  %v7291_v41 = vcombine.high %v957_v60, %v961_v43  ;;  %v7293_v23 = vcombine.high %v958_v18, %v962_v49  ;;  %v970_v52 = vld [vmem:[#allocation4 + $0xb38] sm:$0xff] }
 0x22f   : > { %4804 = vmatprep.mubr.bf16.mxu0 %v9308_v31  ;;  %5256 = vmatprep.mubr.bf16.mxu1 %v9308_v31  ;;  %v7258_v31 = vcombine.low %v925_v62, %v929_v57  ;;  %v977_v62 = vld [vmem:[#allocation4 + $0xb70] sm:$0xff]  ;;  %v974_v57 = vld [vmem:[#allocation4 + $0xb58] sm:$0xff] }
 0x231   : > { %4866 = vmatpush1.bf16.msra.mxu0 %v7242_v0  ;;  %5318 = vmatpush1.bf16.msra.mxu1 %v7244_v4  ;;  %v7292_v0 = vcombine.low %v958_v18, %v962_v49  ;;  %v7299_v4 = vcombine.high %v965_v10, %v969_v44  ;;  %v1013_v18 = vld [vmem:[#allocation4 + $0xc90] sm:$0xff] }
 0x232   : > { %4867 = vmatprep.subr.bf16.mxu0 %v7251_v56  ;;  %5319 = vmatprep.subr.bf16.mxu1 %v7253_v3  ;;  %v7301_v56 = vcombine.high %v966_v51, %v970_v52  ;;  %v973_v3 = vld [vmem:[#allocation4 + $0xb50] sm:$0xff] }
 0x233   : > { %v1017_v49 = vld [vmem:[#allocation4 + $0xcb0] sm:$0xff] }
 0x234   : > { %4805 = vmatmul.mubr.bf16.gmra.mrb[44].mxu0 %v9318_v54  ;;  %5257 = vmatmul.mubr.bf16.gmra.mrb[44].mxu1 %v9318_v54  ;;  %v7268_v54 = vcombine.low %v934_v19, %v938_v17  ;;  %v7308_v19 = vcombine.low %v974_v57, %v978_v14  ;;  %v1021_v44 = vld [vmem:[#allocation4 + $0xcd0] sm:$0xff] }
 0x235   : > { %4868 = vmatpush1.bf16.msra.mxu0 %v7250_v37  ;;  %5320 = vmatpush1.bf16.msra.mxu1 %v7252_v22  ;;  %v7307_v37 = vcombine.high %v973_v3, %v977_v62  ;;  %v7309_v22 = vcombine.high %v974_v57, %v978_v14  ;;  %v1033_v57 = vld [vmem:[#allocation4 + $0xd30] sm:$0xff]  ;;  %v1030_v14 = vld [vmem:[#allocation4 + $0xd18] sm:$0xff] }
 0x236   : > { %4869 = vmatprep.subr.bf16.mxu0 %v7259_v58  ;;  %5321 = vmatprep.subr.bf16.mxu1 %v7261_v5  ;;  %v981_v58 = vld [vmem:[#allocation4 + $0xb90] sm:$0xff] }
 0x237   : > { %4814 = vmatprep.mubr.bf16.mxu0 %v9320_v1  ;;  %5266 = vmatprep.mubr.bf16.mxu1 %v9320_v1  ;;  %v7274_v1 = vcombine.low %v941_v13, %v945_v45  ;;  %v985_v5 = vld [vmem:[#allocation4 + $0xbb0] sm:$0xff]  ;;  %v994_v13 = vld [vmem:[#allocation4 + $0xbf8] sm:$0xff] }
 0x238   : > { %v7315_v17 = vcombine.high %v981_v58, %v985_v5  ;;  %v7314_v45 = vcombine.low %v981_v58, %v985_v5  ;;  %v1037_v5 = vld [vmem:[#allocation4 + $0xd50] sm:$0xff] }
 0x239   : > { %4870 = vmatpush1.bf16.msra.mxu0 %v7258_v31  ;;  %5322 = vmatpush1.bf16.msra.mxu1 %v7260_v20  ;;  %v7317_v31 = vcombine.high %v982_v6, %v986_v63  ;;  %v989_v20 = vld [vmem:[#allocation4 + $0xbd0] sm:$0xff] }
 0x23a   : > { %4871 = vmatprep.subr.bf16.mxu0 %v7267_v24  ;;  %5323 = vmatprep.subr.bf16.mxu1 %v7269_v29  ;;  %v993_v24 = vld [vmem:[#allocation4 + $0xbf0] sm:$0xff]  ;;  %v990_v29 = vld [vmem:[#allocation4 + $0xbd8] sm:$0xff] }
 0x23b   : > { %v7323_v26 = vcombine.high %v989_v20, %v993_v24  ;;  %v7325_v7 = vcombine.high %v990_v29, %v994_v13  ;;  %v7324_v15 = vcombine.low %v990_v29, %v994_v13 }
 0x23c   : > { %4815 = vmatmul.mubr.bf16.gmra.mrb[48].mxu0 %v9330_v25  ;;  %5267 = vmatmul.mubr.bf16.gmra.mrb[48].mxu1 %v9330_v25  ;;  %v7284_v25 = vcombine.low %v950_v33, %v954_v27  ;;  %v1005_v27 = vld [vmem:[#allocation4 + $0xc50] sm:$0xff] }
 0x23d   : > { %4872 = vmatpush1.bf16.msra.mxu0 %v7266_v28  ;;  %5324 = vmatpush1.bf16.msra.mxu1 %v7268_v54  ;;  %v997_v28 = vld [vmem:[#allocation4 + $0xc10] sm:$0xff] }
 0x23e   : > { %4873 = vmatprep.subr.bf16.mxu0 %v7275_v39  ;;  %5325 = vmatprep.subr.bf16.mxu1 %v7277_v50  ;;  %v1001_v54 = vld [vmem:[#allocation4 + $0xc30] sm:$0xff]  ;;  %v998_v39 = vld [vmem:[#allocation4 + $0xc18] sm:$0xff] }
 0x23f   : > { %4824 = vmatprep.mubr.bf16.mxu0 %v9332_v36  ;;  %5276 = vmatprep.mubr.bf16.mxu1 %v9332_v36  ;;  %v7290_v36 = vcombine.low %v957_v60, %v961_v43  ;;  %v1002_v50 = vld [vmem:[#allocation4 + $0xc38] sm:$0xff]  ;;  %v7331_v42 = vcombine.high %v997_v28, %v1001_v54 }
 0x240   : > { %v7333_v33 = vcombine.high %v998_v39, %v1002_v50 }
 0x241   : > { %4874 = vmatpush1.bf16.msra.mxu0 %v7274_v1  ;;  %5326 = vmatpush1.bf16.msra.mxu1 %v7276_v34  ;;  %v1009_v1 = vld [vmem:[#allocation4 + $0xc70] sm:$0xff]  ;;  %v1006_v34 = vld [vmem:[#allocation4 + $0xc58] sm:$0xff] }
 0x242   : > { %4875 = vmatprep.subr.bf16.mxu0 %v7283_v46  ;;  %5327 = vmatprep.subr.bf16.mxu1 %v7285_v11  ;;  %v1010_v46 = vld [vmem:[#allocation4 + $0xc78] sm:$0xff]  ;;  %v7330_v11 = vcombine.low %v997_v28, %v1001_v54  ;;  %v7339_v60 = vcombine.high %v1005_v27, %v1009_v1 }
 0x243   : > { %v7341_v43 = vcombine.high %v1006_v34, %v1010_v46  ;;  %v1050_v28 = vld [vmem:[#allocation4 + $0xdb8] sm:$0xff] }
 0x244   : > { %4825 = vmatmul.mubr.bf16.gmra.mrb[52].mxu0 %v9342_v61  ;;  %5277 = vmatmul.mubr.bf16.gmra.mrb[52].mxu1 %v9342_v61  ;;  %v7300_v61 = vcombine.low %v966_v51, %v970_v52  ;;  %v1025_v51 = vld [vmem:[#allocation4 + $0xcf0] sm:$0xff]  ;;  %v1022_v52 = vld [vmem:[#allocation4 + $0xcd8] sm:$0xff] }
 0x245   : > { %4876 = vmatpush1.bf16.msra.mxu0 %v7282_v55  ;;  %5328 = vmatpush1.bf16.msra.mxu1 %v7284_v25  ;;  %v1014_v55 = vld [vmem:[#allocation4 + $0xc98] sm:$0xff] }
 0x246   : > { %4877 = vmatprep.subr.bf16.mxu0 %v7291_v41  ;;  %5329 = vmatprep.subr.bf16.mxu1 %v7293_v23  ;;  %v1018_v25 = vld [vmem:[#allocation4 + $0xcb8] sm:$0xff]  ;;  %v7340_v41 = vcombine.low %v1006_v34, %v1010_v46  ;;  %v7347_v23 = vcombine.high %v1013_v18, %v1017_v49 }
 0x247   : > { %4834 = vmatprep.mubr.bf16.mxu0 %v9344_v9  ;;  %5286 = vmatprep.mubr.bf16.mxu1 %v9344_v9  ;;  %v7306_v9 = vcombine.low %v973_v3, %v977_v62  ;;  %v7349_v10 = vcombine.high %v1014_v55, %v1018_v25  ;;  %v1029_v62 = vld [vmem:[#allocation4 + $0xd10] sm:$0xff] }
 0x249   : > { %4878 = vmatpush1.bf16.msra.mxu0 %v7290_v36  ;;  %5330 = vmatpush1.bf16.msra.mxu1 %v7292_v0  ;;  %v1026_v36 = vld [vmem:[#allocation4 + $0xcf8] sm:$0xff]  ;;  %v1125_v0 = vlaneseq }
 0x24a   : > { %4879 = vmatprep.subr.bf16.mxu0 %v7299_v4  ;;  %5331 = vmatprep.subr.bf16.mxu1 %v7301_v56  ;;  %v7346_v4 = vcombine.low %v1013_v18, %v1017_v49  ;;  %v7355_v56 = vcombine.high %v1021_v44, %v1025_v51  ;;  %v7357_v3 = vcombine.high %v1022_v52, %v1026_v36 }
 0x24c   : > { %4835 = vmatmul.mubr.bf16.gmra.mrb[56].mxu0 %v9354_v38  ;;  %5287 = vmatmul.mubr.bf16.gmra.mrb[56].mxu1 %v9354_v38  ;;  %v7316_v38 = vcombine.low %v982_v6, %v986_v63  ;;  %v1041_v6 = vld [vmem:[#allocation4 + $0xd70] sm:$0xff] }
 0x24d   : > { %4880 = vmatpush1.bf16.msra.mxu0 %v7298_v59  ;;  %5332 = vmatpush1.bf16.msra.mxu1 %v7300_v61  ;;  %v1034_v59 = vld [vmem:[#allocation4 + $0xd38] sm:$0xff]  ;;  %v9631_v61 = vshrl.u32 %v1125_v0, 7  ;;  %v7371_v13 = vcombine.high %v1037_v5, %v1041_v6  ;;  %v9678_v0 = vld [vmem:[#allocation4 + $0xe10] sm:$0xff] }
 0x24e   : > { %4881 = vmatprep.subr.bf16.mxu0 %v7307_v37  ;;  %5333 = vmatprep.subr.bf16.mxu1 %v7309_v22  ;;  %v7356_v37 = vcombine.low %v1022_v52, %v1026_v36  ;;  %v7363_v22 = vcombine.high %v1029_v62, %v1033_v57  ;;  %v7365_v58 = vcombine.high %v1030_v14, %v1034_v59 }
 0x24f   : > { %4844 = vmatprep.mubr.bf16.mxu0 %v9356_v47  ;;  %5296 = vmatprep.mubr.bf16.mxu1 %v9356_v47  ;;  %v7322_v47 = vcombine.low %v989_v20, %v993_v24  ;;  %10546 = vst [vmem:[#allocation35_spill] sm:$0xff] %v9631_v61  ;;  %v10496_v63 = vsub.s32 0, %v9631_v61  ;;  %v10498_v20 = vsub.s32 1, %v9631_v61  ;;  %v7364_v24 = vcombine.low %v1030_v14, %v1034_v59 }
 0x250   : > { %v10497_v29 = vsub.s32 3, %v9631_v61 }
 0x251   : > { %4882 = vmatpush1.bf16.msra.mxu0 %v7306_v9  ;;  %5334 = vmatpush1.bf16.msra.mxu1 %v7308_v19  ;;  %v1038_v9 = vld [vmem:[#allocation4 + $0xd58] sm:$0xff] }
 0x252   : > { %4883 = vmatprep.subr.bf16.mxu0 %v7315_v17  ;;  %5335 = vmatprep.subr.bf16.mxu1 %v7317_v31  ;;  %v1042_v19 = vld [vmem:[#allocation4 + $0xd78] sm:$0xff]  ;;  %v1123_v17 = vld [vmem:[#allocation6] sm:$0xff]  ;;  %v10495_v31 = vsub.s32 2, %v9631_v61 }
 0x254   : > { %4845 = vmatmul.mubr.bf16.gmra.mrb[60].mxu0 %v9366_v12  ;;  %5297 = vmatmul.mubr.bf16.gmra.mrb[60].mxu1 %v9366_v12  ;;  %v7332_v12 = vcombine.low %v998_v39, %v1002_v50  ;;  %v9648_v54 = vrot.slane %v1123_v17, %v10495_v31  ;;  %v9652_v39 = vrot.slane %v1123_v17, %v10498_v20 }
 0x255   : > { %4884 = vmatpush1.bf16.msra.mxu0 %v7314_v45  ;;  %5336 = vmatpush1.bf16.msra.mxu1 %v7316_v38  ;;  %v7373_v45 = vcombine.high %v1038_v9, %v1042_v19  ;;  %v1049_v38 = vld [vmem:[#allocation4 + $0xdb0] sm:$0xff]  ;;  %v7370_v50 = vcombine.low %v1037_v5, %v1041_v6 }
 0x256   : > { %4885 = vmatprep.subr.bf16.mxu0 %v7323_v26  ;;  %5337 = vmatprep.subr.bf16.mxu1 %v7325_v7  ;;  %v9643_v26 = vrot.slane %v1123_v17, %v10496_v63  ;;  %v1046_v7 = vld [vmem:[#allocation4 + $0xd98] sm:$0xff]  ;;  %v9699_v5 = vld [vmem:[#allocation4 + $0xe50] sm:$0xff] }
 0x257   : > { %4887 = vmatprep.mubr.bf16.mxu0 %v9368_v21  ;;  %5339 = vmatprep.mubr.bf16.mxu1 %v9368_v21  ;;  %v7338_v21 = vcombine.low %v1005_v27, %v1009_v1  ;;  %v9659_v27 = vld [vmem:[#allocation4 + $0xdd0] sm:$0xff] }
 0x258   : > { %v9661_v1 = vld [vmem:[#allocation4 + $0xdf0] sm:$0xff] }
 0x259   : > { %4886 = vmatpush1.bf16.msra.mxu0 %v7322_v47  ;;  %5338 = vmatpush1.bf16.msra.mxu1 %v7324_v15  ;;  %v9656_v47 = vrot.slane %v1123_v17, %v10497_v29  ;;  %v7372_v15 = vcombine.low %v1038_v9, %v1042_v19  ;;  %v7386_v14 = vcombine.low %v9659_v27, %v9661_v1  ;;  %v9701_v6 = vld [vmem:[#allocation4 + $0xe70] sm:$0xff] }
 0x25a   : > { %4968 = vmatprep.subr.bf16.mxu0 %v7331_v42  ;;  %5420 = vmatprep.subr.bf16.mxu1 %v7333_v33 }
 0x25c   : > { %4888 = vmatmul.mubr.bf16.vlgmr.msra.gmra.mrb[32].mxu0 %v9378_v53  ;;  %5340 = vmatmul.mubr.bf16.vlgmr.msra.gmra.mrb[32].mxu1 %v9378_v53  ;;  %v7348_v53 = vcombine.low %v1014_v55, %v1018_v25 }
 0x25d   : > { %4969 = vmatpush1.bf16.msra.mxu0 %v7330_v11  ;;  %5421 = vmatpush1.bf16.msra.mxu1 %v7332_v12  ;;  %v9665_v12 = vld [vmem:[#allocation4 + $0xdd8] sm:$0xff] }
 0x25e   : > { %4970 = vmatprep.subr.bf16.mxu0 %v7339_v60  ;;  %5422 = vmatprep.subr.bf16.mxu1 %v7341_v43  ;;  %v9667_v60 = vld [vmem:[#allocation4 + $0xdf8] sm:$0xff] }
 0x25f   : > { %4897 = vmatprep.mubr.bf16.mxu0 %v9380_v2  ;;  %5349 = vmatprep.mubr.bf16.mxu1 %v9380_v2  ;;  %v7354_v2 = vcombine.low %v1021_v44, %v1025_v51  ;;  %v7387_v44 = vcombine.high %v9659_v27, %v9661_v1  ;;  %v7389_v36 = vcombine.high %v9665_v12, %v9667_v60 }
 0x260   : > { %v7388_v59 = vcombine.low %v9665_v12, %v9667_v60 }
 0x261   : > { %4971 = vmatpush1.bf16.msra.mxu0 %v7338_v21  ;;  %5423 = vmatpush1.bf16.msra.mxu1 %v7340_v41  ;;  %v7380_v21 = vcombine.low %v1046_v7, %v1050_v28 }
 0x262   : > { %4972 = vmatprep.subr.bf16.mxu0 %v7347_v23  ;;  %5424 = vmatprep.subr.bf16.mxu1 %v7349_v10 }
 0x264   : > { %4898 = vmatmul.mubr.bf16.gmra.mrb[36].mxu0 %v9388_v30  ;;  %5350 = vmatmul.mubr.bf16.gmra.mrb[36].mxu1 %v9388_v30  ;;  %v7362_v30 = vcombine.low %v1029_v62, %v1033_v57  ;;  %v9686_v62 = vld [vmem:[#allocation4 + $0xe38] sm:$0xff] }
 0x265   : > { %4973 = vmatpush1.bf16.msra.mxu0 %v7346_v4  ;;  %5425 = vmatpush1.bf16.msra.mxu1 %v7348_v53  ;;  %v9680_v4 = vld [vmem:[#allocation4 + $0xe30] sm:$0xff] }
 0x266   : > { %4974 = vmatprep.subr.bf16.mxu0 %v7355_v56  ;;  %5426 = vmatprep.subr.bf16.mxu1 %v7357_v3  ;;  %v10547_v56 = vld [vmem:[#allocation13_spill] sm:$0xff]  ;;  %v9684_v3 = vld [vmem:[#allocation4 + $0xe18] sm:$0xff]  ;;  %v7394_v17 = vcombine.low %v9678_v0, %v9680_v4 }
 0x267   : > { %4907 = vmatprep.mubr.bf16.mxu0 %v9392_v48  ;;  %5359 = vmatprep.mubr.bf16.mxu1 %v9392_v48  ;;  %v1045_v48 = vld [vmem:[#allocation4 + $0xd90] sm:$0xff] }
 0x268   : > { %v7379_v42 = vcombine.high %v1045_v48, %v1049_v38  ;;  %v7378_v25 = vcombine.low %v1045_v48, %v1049_v38 }
 0x269   : > { %4975 = vmatpush1.bf16.msra.mxu0 %v7354_v2  ;;  %5427 = vmatpush1.bf16.msra.mxu1 %v7356_v37  ;;  %v7395_v2 = vcombine.high %v9678_v0, %v9680_v4 }
 0x26a   : > { %4976 = vmatprep.subr.bf16.mxu0 %v7363_v22  ;;  %5428 = vmatprep.subr.bf16.mxu1 %v7365_v58  ;;  %v10548_v22 = vld [vmem:[#allocation14_spill] sm:$0xff]  ;;  %v7397_v58 = vcombine.high %v9684_v3, %v9686_v62 }
 0x26c   : > { %4908 = vmatmul.mubr.bf16.gmra.mrb[40].mxu0 %v9400_v16  ;;  %5360 = vmatmul.mubr.bf16.gmra.mrb[40].mxu1 %v9400_v16  ;;  %v7381_v16 = vcombine.high %v1046_v7, %v1050_v28  ;;  %v7396_v28 = vcombine.low %v9684_v3, %v9686_v62 }
 0x26d   : > { %4977 = vmatpush1.bf16.msra.mxu0 %v7362_v30  ;;  %5429 = vmatpush1.bf16.msra.mxu1 %v7364_v24  ;;  %v9707_v24 = vld [vmem:[#allocation4 + $0xe58] sm:$0xff] }
 0x26e   : > { %4978 = vmatprep.subr.bf16.mxu0 %v7371_v13  ;;  %5430 = vmatprep.subr.bf16.mxu1 %v7373_v45  ;;  %v9709_v13 = vld [vmem:[#allocation4 + $0xe78] sm:$0xff] }
 0x26f   : > { %v4098_v33 = vpop.f32.mrb[0].mxu0  ;;  %4917 = vmatprep.mubr.bf16.mxu0 %v9404_v35  ;;  %v4550_v46 = vpop.f32.mrb[0].mxu1  ;;  %5369 = vmatprep.mubr.bf16.mxu1 %v9404_v35 }
 0x270   : > { %v7803_v34 = vadd.f32 %v4098_v33, %v9643_v26  ;;  %v4100_v11 = vpop.f32.mrb[1].mxu0  ;;  %v7835_v43 = vadd.f32 %v4550_v46, %v9648_v54  ;;  %v4552_v49 = vpop.f32.mrb[1].mxu1  ;;  %v9722_v46 = vld [vmem:[#allocation4 + $0xe90] sm:$0xff] }
 0x271   : > { %v7804_v18 = vadd.f32 %v4100_v11, %v9652_v39  ;;  %v4102_v55 = vpop.f32.mrb[2].mxu0  ;;  %4979 = vmatpush1.bf16.msra.mxu0 %v7370_v50  ;;  %v7836_v41 = vadd.f32 %v4552_v49, %v9656_v47  ;;  %v4554_v10 = vpop.f32.mrb[2].mxu1  ;;  %5431 = vmatpush1.bf16.msra.mxu1 %v7372_v15  ;;  %v9724_v11 = vld [vmem:[#allocation4 + $0xeb0] sm:$0xff]  ;;  %v9732_v49 = vld [vmem:[#allocation4 + $0xeb8] sm:$0xff] }
 0x272   : > { %8464 = vtanh.f32 %v7803_v34  ;;  %v7805_v23 = vadd.f32 %v4102_v55, %v9643_v26  ;;  %v4104_v35 = vpop.f32.mrb[3].mxu0  ;;  %4980 = vmatprep.subr.bf16.mxu0 %v7379_v42  ;;  %v7837_v51 = vadd.f32 %v4554_v10, %v9648_v54  ;;  %v4556_v52 = vpop.f32.mrb[3].mxu1  ;;  %5432 = vmatprep.subr.bf16.mxu1 %v7381_v16  ;;  %v7403_v16 = vcombine.high %v9699_v5, %v9701_v6 }
 0x273   : > { %8466 = vtanh.f32 %v7835_v43  ;;  %v7806_v53 = vadd.f32 %v4104_v35, %v9652_v39  ;;  %v7838_v57 = vadd.f32 %v4556_v52, %v9656_v47  ;;  %v7405_v34 = vcombine.high %v9707_v24, %v9709_v13  ;;  %v10549_v43 = vld [vmem:[#allocation15_spill] sm:$0xff] }
 0x274   : > { %8468 = vtanh.f32 %v7804_v18  ;;  %4918 = vmatmul.mubr.bf16.gmra.mrb[44].mxu0 %v10547_v56  ;;  %5370 = vmatmul.mubr.bf16.gmra.mrb[44].mxu1 %v10547_v56  ;;  %v9730_v18 = vld [vmem:[#allocation4 + $0xe98] sm:$0xff]  ;;  %v7404_v35 = vcombine.low %v9707_v24, %v9709_v13  ;;  %v7410_v0 = vcombine.low %v9722_v46, %v9724_v11 }
 0x275   : > { %8470 = vtanh.f32 %v7836_v41  ;;  %4981 = vmatpush1.bf16.msra.mxu0 %v7378_v25  ;;  %5433 = vmatpush1.bf16.msra.mxu1 %v7380_v21  ;;  %v7402_v21 = vcombine.low %v9699_v5, %v9701_v6  ;;  %v9740_v41 = vld [vmem:[#allocation4 + $0xed0] sm:$0xff]  ;;  %v7413_v4 = vcombine.high %v9730_v18, %v9732_v49 }
 0x276   : > { %8472 = vtanh.f32 %v7805_v23  ;;  %4982 = vmatprep.subr.bf16.mxu0 %v7387_v44  ;;  %5434 = vmatprep.subr.bf16.mxu1 %v7389_v36  ;;  %v9742_v23 = vld [vmem:[#allocation4 + $0xef0] sm:$0xff]  ;;  %v7411_v44 = vcombine.high %v9722_v46, %v9724_v11  ;;  %v10550_v36 = vld [vmem:[#allocation16_spill] sm:$0xff] }
 0x277   : > { %8474 = vtanh.f32 %v7837_v51  ;;  %v4108_v37 = vpop.f32.mrb[4].mxu0  ;;  %4927 = vmatprep.mubr.bf16.mxu0 %v10548_v22  ;;  %v4560_v19 = vpop.f32.mrb[4].mxu1  ;;  %5379 = vmatprep.mubr.bf16.mxu1 %v10548_v22 }
 0x278   : > { %8476 = vtanh.f32 %v7806_v53  ;;  %v7807_v9 = vadd.f32 %v4108_v37, %v9643_v26  ;;  %v4110_v30 = vpop.f32.mrb[5].mxu0  ;;  %v7839_v45 = vadd.f32 %v4560_v19, %v9648_v54  ;;  %v4562_v38 = vpop.f32.mrb[5].mxu1 }
 0x279   : > { %8478 = vtanh.f32 %v7838_v57  ;;  %v7808_v48 = vadd.f32 %v4110_v30, %v9652_v39  ;;  %v4112_v7 = vpop.f32.mrb[6].mxu0  ;;  %4983 = vmatpush1.bf16.msra.mxu0 %v7386_v14  ;;  %v7840_v50 = vadd.f32 %v4562_v38, %v9656_v47  ;;  %v4564_v42 = vpop.f32.mrb[6].mxu1  ;;  %5435 = vmatpush1.bf16.msra.mxu1 %v7388_v59  ;;  %v7412_v57 = vcombine.low %v9730_v18, %v9732_v49  ;;  %v9765_v59 = vld [vmem:[#allocation4 + $0xed8] sm:$0xff]  ;;  %v9808_v18 = vld [vmem:[#allocation4 + $0xf50] sm:$0xff] }
 0x27a   : > { %8480 = vtanh.f32 %v7807_v9  ;;  %v7809_v15 = vadd.f32 %v4112_v7, %v9643_v26  ;;  %v4114_v33 = vpop.f32.mrb[7].mxu0  ;;  %4984 = vmatprep.subr.bf16.mxu0 %v7395_v2  ;;  %v7841_v27 = vadd.f32 %v4564_v42, %v9648_v54  ;;  %v4566_v1 = vpop.f32.mrb[7].mxu1  ;;  %5436 = vmatprep.subr.bf16.mxu1 %v7397_v58  ;;  %v7419_v14 = vcombine.high %v9740_v41, %v9742_v23  ;;  %v9767_v2 = vld [vmem:[#allocation4 + $0xef8] sm:$0xff]  ;;  %v9810_v49 = vld [vmem:[#allocation4 + $0xf70] sm:$0xff] }
 0x27b   : > { %8482 = vtanh.f32 %v7839_v45  ;;  %v7810_v60 = vadd.f32 %v4114_v33, %v9652_v39  ;;  %v7842_v25 = vadd.f32 %v4566_v1, %v9656_v47  ;;  %v9796_v1 = vld [vmem:[#allocation4 + $0xf18] sm:$0xff] }
 0x27c   : > { %v9726_v12 = vpop.eup %8464  ;;  %8484 = vtanh.f32 %v7808_v48  ;;  %4928 = vmatmul.mubr.bf16.gmra.mrb[48].mxu0 %v10549_v43  ;;  %5380 = vmatmul.mubr.bf16.gmra.mrb[48].mxu1 %v10549_v43  ;;  %v7418_v43 = vcombine.low %v9740_v41, %v9742_v23  ;;  %v10552_v41 = vld [vmem:[#allocation18_spill] sm:$0xff] }
 0x27d   : > { %v9734_v55 = vpop.eup %8466  ;;  %8486 = vtanh.f32 %v7840_v50  ;;  %4985 = vmatpush1.bf16.msra.mxu0 %v7394_v17  ;;  %5437 = vmatpush1.bf16.msra.mxu1 %v7396_v28  ;;  %v7421_v28 = vcombine.high %v9765_v59, %v9767_v2  ;;  %v9786_v50 = vld [vmem:[#allocation4 + $0xf10] sm:$0xff] }
 0x27e   : > { %v9744_v10 = vpop.eup %8468  ;;  %8488 = vtanh.f32 %v7809_v15  ;;  %4986 = vmatprep.subr.bf16.mxu0 %v7403_v16  ;;  %5438 = vmatprep.subr.bf16.mxu1 %v7405_v34  ;;  %v9788_v15 = vld [vmem:[#allocation4 + $0xf30] sm:$0xff]  ;;  %v9798_v34 = vld [vmem:[#allocation4 + $0xf38] sm:$0xff] }
 0x27f   : > { %v9750_v51 = vpop.eup %8470  ;;  %8490 = vtanh.f32 %v7841_v27  ;;  %v4118_v52 = vpop.f32.mrb[8].mxu0  ;;  %4937 = vmatprep.mubr.bf16.mxu0 %v10550_v36  ;;  %5389 = vmatprep.mubr.bf16.mxu1 %v10550_v36  ;;  %v10551_v27 = vld [vmem:[#allocation17_spill] sm:$0xff]  ;;  %v7426_v23 = vcombine.low %v9786_v50, %v9788_v15  ;;  %v7429_v36 = vcombine.high %v9796_v1, %v9798_v34 }
 0x280   : > { %v9757_v53 = vpop.eup %8472  ;;  %8492 = vtanh.f32 %v7810_v60  ;;  %v7811_v56 = vadd.f32 %v4118_v52, %v9643_v26  ;;  %v4570_v3 = vpop.f32.mrb[8].mxu1 }
 0x281   : > { %v4120_v62 = vpop.f32.mrb[9].mxu0  ;;  %v9769_v37 = vpop.eup %8474  ;;  %8494 = vtanh.f32 %v7842_v25  ;;  %v7843_v22 = vadd.f32 %v4570_v3, %v9648_v54  ;;  %4987 = vmatpush1.bf16.msra.mxu0 %v7402_v21  ;;  %5439 = vmatpush1.bf16.msra.mxu1 %v7404_v35  ;;  %v7420_v21 = vcombine.low %v9765_v59, %v9767_v2  ;;  %v7427_v35 = vcombine.high %v9786_v50, %v9788_v15  ;;  %v9835_v59 = vld [vmem:[#allocation4 + $0xf78] sm:$0xff] }
 0x282   : > { %v7812_v58 = vadd.f32 %v4120_v62, %v9652_v39  ;;  %v4572_v5 = vpop.f32.mrb[9].mxu1  ;;  %v4122_v6 = vpop.f32.mrb[10].mxu0  ;;  %8496 = vtanh.f32 %v7811_v56  ;;  %4988 = vmatprep.subr.bf16.mxu0 %v7411_v44  ;;  %5440 = vmatprep.subr.bf16.mxu1 %v7413_v4  ;;  %v7428_v62 = vcombine.low %v9796_v1, %v9798_v34  ;;  %v9854_v1 = vld [vmem:[#allocation4 + $0xf90] sm:$0xff] }
 0x283   : > { %v9775_v19 = vpop.eup %8476  ;;  %v7844_v30 = vadd.f32 %v4572_v5, %v9656_v47  ;;  %v7813_v17 = vadd.f32 %v4122_v6, %v9643_v26  ;;  %v4574_v24 = vpop.f32.mrb[10].mxu1  ;;  %8498 = vtanh.f32 %v7843_v22  ;;  %v9856_v34 = vld [vmem:[#allocation4 + $0xfb0] sm:$0xff] }
 0x284   : > { %v4124_v13 = vpop.f32.mrb[11].mxu0  ;;  %v9781_v48 = vpop.eup %8478  ;;  %v7845_v38 = vadd.f32 %v4574_v24, %v9648_v54  ;;  %8500 = vtanh.f32 %v7812_v58  ;;  %4938 = vmatmul.mubr.bf16.gmra.mrb[52].mxu0 %v10551_v27  ;;  %5390 = vmatmul.mubr.bf16.gmra.mrb[52].mxu1 %v10551_v27 }
 0x285   : > { %v4576_v7 = vpop.f32.mrb[11].mxu1  ;;  %v9792_v33 = vpop.eup %8480  ;;  %v7814_v16 = vadd.f32 %v4124_v13, %v9652_v39  ;;  %8502 = vtanh.f32 %v7844_v30  ;;  %4989 = vmatpush1.bf16.msra.mxu0 %v7410_v0  ;;  %5441 = vmatpush1.bf16.msra.mxu1 %v7412_v57  ;;  %v7435_v57 = vcombine.high %v9808_v18, %v9810_v49 }
 0x286   : > { %v9802_v11 = vpop.eup %8482  ;;  %v7846_v60 = vadd.f32 %v4576_v7, %v9656_v47  ;;  %8504 = vtanh.f32 %v7813_v17  ;;  %4990 = vmatprep.subr.bf16.mxu0 %v7419_v14  ;;  %5442 = vmatprep.subr.bf16.mxu1 %v7421_v28  ;;  %v9833_v14 = vld [vmem:[#allocation4 + $0xf58] sm:$0xff]  ;;  %v8404_v28 = vld [vmem:[#allocation7 + $0x48] sm:$0xff]  }
 0x287   : > { %v9812_v25 = vpop.eup %8484  ;;  %8506 = vtanh.f32 %v7845_v38  ;;  %v4128_v52 = vpop.f32.mrb[12].mxu0  ;;  %4947 = vmatprep.mubr.bf16.mxu0 %v10552_v41  ;;  %5399 = vmatprep.mubr.bf16.mxu1 %v10552_v41  ;;  %v7437_v27 = vcombine.high %v9833_v14, %v9835_v59  ;;  %v9866_v41 = vld [vmem:[#allocation4 + $0xfb8] sm:$0xff] }
 0x288   : > { %v9818_v44 = vpop.eup %8486  ;;  %8508 = vtanh.f32 %v7814_v16  ;;  %v7815_v4 = vadd.f32 %v4128_v52, %v9643_v26  ;;  %v4580_v56 = vpop.f32.mrb[12].mxu1  ;;  %v9864_v52 = vld [vmem:[#allocation4 + $0xf98] sm:$0xff] }
 0x289   : > { %v9825_v0 = vpop.eup %8488  ;;  %v4130_v3 = vpop.f32.mrb[13].mxu0  ;;  %8510 = vtanh.f32 %v7846_v60  ;;  %v7847_v22 = vadd.f32 %v4580_v56, %v9648_v54  ;;  %4991 = vmatpush1.bf16.msra.mxu0 %v7418_v43  ;;  %5443 = vmatpush1.bf16.msra.mxu1 %v7420_v21 }
 0x28a   : > { %v9837_v2 = vpop.eup %8490  ;;  %v7816_v58 = vadd.f32 %v4130_v3, %v9652_v39  ;;  %v4582_v5 = vpop.f32.mrb[13].mxu1  ;;  %8512 = vtanh.f32 %v7815_v4  ;;  %4992 = vmatprep.subr.bf16.mxu0 %v7427_v35  ;;  %5444 = vmatprep.subr.bf16.mxu1 %v7429_v36  ;;  %v10553_v35 = vld [vmem:[#allocation19_spill] sm:$0xff]  ;;  %v7434_v3 = vcombine.low %v9808_v18, %v9810_v49  ;;  %v10554_v18 = vld [vmem:[#allocation20_spill] sm:$0xff]  ;;  %v7442_v49 = vcombine.low %v9854_v1, %v9856_v34 }
 0x28b   : > { %v4132_v6 = vpop.f32.mrb[14].mxu0  ;;  %v9843_v17 = vpop.eup %8492  ;;  %v7848_v24 = vadd.f32 %v4582_v5, %v9656_v47  ;;  %8514 = vtanh.f32 %v7847_v22  ;;  %v9876_v22 = vld [vmem:[#allocation4 + $0xfd0] sm:$0xff]  ;;  %v8408_v36 = vld [vmem:[#allocation7 + $0x50] sm:$0xff]  }
 0x28c   : > { %v7817_v13 = vadd.f32 %v4132_v6, %v9643_v26  ;;  %v4584_v38 = vpop.f32.mrb[14].mxu1  ;;  %v4134_v7 = vpop.f32.mrb[15].mxu0  ;;  %8516 = vtanh.f32 %v7816_v58  ;;  %4948 = vmatmul.mubr.bf16.gmra.mrb[56].mxu0 %v10553_v35  ;;  %5400 = vmatmul.mubr.bf16.gmra.mrb[56].mxu1 %v10553_v35  ;;  %v9878_v58 = vld [vmem:[#allocation4 + $0xff0] sm:$0xff]  ;;  %v7436_v6 = vcombine.low %v9833_v14, %v9835_v59 }
 0x28d   : > { %v9849_v50 = vpop.eup %8494  ;;  %v7849_v15 = vadd.f32 %v4584_v38, %v9648_v54  ;;  %v4586_v16 = vpop.f32.mrb[15].mxu1  ;;  %v7818_v21 = vadd.f32 %v4134_v7, %v9652_v39  ;;  %8518 = vtanh.f32 %v7848_v24  ;;  %4993 = vmatpush1.bf16.msra.mxu0 %v7426_v23  ;;  %5445 = vmatpush1.bf16.msra.mxu1 %v7428_v62  ;;  %v7443_v24 = vcombine.high %v9854_v1, %v9856_v34 }
 0x28e   : > { %v9860_v43 = vpop.eup %8496  ;;  %v7850_v56 = vadd.f32 %v4586_v16, %v9656_v47  ;;  %8520 = vtanh.f32 %v7817_v13  ;;  %4994 = vmatprep.subr.bf16.mxu0 %v7435_v57  ;;  %5446 = vmatprep.subr.bf16.mxu1 %v7437_v27  ;;  %v7445_v62 = vcombine.high %v9864_v52, %v9866_v41  ;;  %v7444_v7 = vcombine.low %v9864_v52, %v9866_v41  ;;  %v9901_v16 = vld [vmem:[#allocation4 + $0xfd8] sm:$0xff] }
 0x28f   : > { %v9870_v4 = vpop.eup %8498  ;;  %8522 = vtanh.f32 %v7849_v15  ;;  %v4138_v23 = vpop.f32.mrb[16].mxu0  ;;  %4957 = vmatprep.mubr.bf16.mxu0 %v10554_v18  ;;  %5409 = vmatprep.mubr.bf16.mxu1 %v10554_v18  ;;  %v7451_v15 = vcombine.high %v9876_v22, %v9878_v58  ;;  %v9903_v27 = vld [vmem:[#allocation4 + $0xff8] sm:$0xff] }
 0x290   : > { %v9880_v5 = vpop.eup %8500  ;;  %8524 = vtanh.f32 %v7818_v21  ;;  %v7819_v14 = vadd.f32 %v4138_v23, %v9643_v26  ;;  %v4590_v59 = vpop.f32.mrb[16].mxu1 }
 0x291   : > { %v9886_v38 = vpop.eup %8502  ;;  %v4140_v13 = vpop.f32.mrb[17].mxu0  ;;  %8526 = vtanh.f32 %v7850_v56  ;;  %v7851_v34 = vadd.f32 %v4590_v59, %v9648_v54  ;;  %4995 = vmatpush1.bf16.msra.mxu0 %v7434_v3  ;;  %5447 = vmatpush1.bf16.msra.mxu1 %v7436_v6 }
 0x292   : > { %v9893_v57 = vpop.eup %8504  ;;  %v7820_v21 = vadd.f32 %v4140_v13, %v9652_v39  ;;  %v4592_v35 = vpop.f32.mrb[17].mxu1  ;;  %8528 = vtanh.f32 %v7819_v14  ;;  %4996 = vmatprep.subr.bf16.mxu0 %v7443_v24  ;;  %5448 = vmatprep.subr.bf16.mxu1 %v7445_v62  ;;  %v7453_v14 = vcombine.high %v9901_v16, %v9903_v27  ;;  %v10555_v24 = vld [vmem:[#allocation21_spill] sm:$0xff]  ;;  %v7450_v62 = vcombine.low %v9876_v22, %v9878_v58 }
 0x293   : > { %v9905_v1 = vpop.eup %8506  ;;  %v4142_v23 = vpop.f32.mrb[18].mxu0  ;;  %v7852_v18 = vadd.f32 %v4592_v35, %v9656_v47  ;;  %8530 = vtanh.f32 %v7851_v34 }
 0x294   : > { %v9911_v41 = vpop.eup %8508  ;;  %v7821_v31 = vadd.f32 %v4142_v23, %v9643_v26  ;;  %v4594_v63 = vpop.f32.mrb[18].mxu1  ;;  %8532 = vtanh.f32 %v7820_v21  ;;  %4958 = vmatmul.mubr.bf16.gmra.mrb[60].mxu0 %v10555_v24  ;;  %5410 = vmatmul.mubr.bf16.gmra.mrb[60].mxu1 %v10555_v24  ;;  %v7452_v21 = vcombine.low %v9901_v16, %v9903_v27 }
 0x295   : > { %v4144_v56 = vpop.f32.mrb[19].mxu0  ;;  %v9917_v13 = vpop.eup %8510  ;;  %v7853_v3 = vadd.f32 %v4594_v63, %v9648_v54  ;;  %8534 = vtanh.f32 %v7852_v18  ;;  %4997 = vmatpush1.bf16.msra.mxu0 %v7442_v49  ;;  %5449 = vmatpush1.bf16.msra.mxu1 %v7444_v7  ;;  %v8401_v49 = vld [vmem:[#allocation7 + $0xc0] sm:$0xff]  }
 0x296   : > { %v4596_v29 = vpop.f32.mrb[19].mxu1  ;;  %v9924_v23 = vpop.eup %8512  ;;  %v7822_v6 = vadd.f32 %v4144_v56, %v9652_v39  ;;  %8536 = vtanh.f32 %v7821_v31  ;;  %4998 = vmatprep.subr.bf16.mxu0 %v7451_v15  ;;  %v8400_v56 = vld [vmem:[#allocation7 + $0x40] sm:$0xff]   ;;  %5450 = vmatprep.subr.bf16.mxu1 %v7453_v14 }
 0x297   : > { %v9930_v20 = vpop.eup %8514  ;;  %v7854_v63 = vadd.f32 %v4596_v29, %v9656_v47  ;;  %8538 = vtanh.f32 %v7853_v3  ;;  %v4148_v18 = vpop.f32.mrb[20].mxu0  ;;  %v10556_v29 = vld [vmem:[#allocation22_spill] sm:$0xff] }
 0x298   : > { %v9936_v59 = vpop.eup %8516  ;;  %5000 = vmatprep.mubr.bf16.mxu0 %v10556_v29  ;;  %8540 = vtanh.f32 %v7822_v6  ;;  %v7823_v22 = vadd.f32 %v4148_v18, %v9643_v26  ;;  %v4600_v31 = vpop.f32.mrb[20].mxu1  ;;  %5452 = vmatprep.mubr.bf16.mxu1 %v10556_v29 }
 0x299   : > { %v9940_v52 = vpop.eup %8518  ;;  %v4150_v58 = vpop.f32.mrb[21].mxu0  ;;  %8542 = vtanh.f32 %v7854_v63  ;;  %v7855_v15 = vadd.f32 %v4600_v31, %v9648_v54  ;;  %4999 = vmatpush1.bf16.msra.mxu0 %v7450_v62  ;;  %5451 = vmatpush1.bf16.msra.mxu1 %v7452_v21  ;;  %v8402_v31 = vld [vmem:[#allocation7] sm:$0xff]  }
 0x29a   : > { %v9943_v24 = vpop.eup %8520  ;;  %v7824_v16 = vadd.f32 %v4150_v58, %v9652_v39  ;;  %v4602_v27 = vpop.f32.mrb[21].mxu1  ;;  %8544 = vtanh.f32 %v7823_v22  ;;  %7523 = vmatprep.subr.bf16.mxu0 %v8400_v56  ;;  %7593 = vmatprep.subr.bf16.mxu1 %v8401_v49  ;;  %v8403_v22 = vld [vmem:[#allocation7 + $0x80] sm:$0xff]   ;;  %v10558_v56 = vld [vmem:[#allocation23_spill] sm:$0xff]  ;;  %v8405_v58 = vld [vmem:[#allocation7 + $0xc8] sm:$0xff]  }
 0x29b   : > { %v9947_v7 = vpop.eup %8522  ;;  %v4152_v3 = vpop.f32.mrb[22].mxu0  ;;  %v7856_v18 = vadd.f32 %v4602_v27, %v9656_v47  ;;  %8546 = vtanh.f32 %v7855_v15  ;;  %v10560_v49 = vld [vmem:[#allocation24_spill] sm:$0xff] }
 0x29c   : > { %v9953_v6 = vpop.eup %8524  ;;  %v7825_v29 = vadd.f32 %v4152_v3, %v9643_v26  ;;  %v4604_v34 = vpop.f32.mrb[22].mxu1  ;;  %8548 = vtanh.f32 %v7824_v16  ;;  %5001 = vmatmul.mubr.bf16.vlgmr.msra.gmra.mrb[32].mxu0 %v10558_v56  ;;  %5453 = vmatmul.mubr.bf16.vlgmr.msra.gmra.mrb[32].mxu1 %v10558_v56  ;;  %v8406_v16 = vld [vmem:[#allocation7 + $0x8] sm:$0xff]  }
 0x29d   : > { %v4154_v63 = vpop.f32.mrb[23].mxu0  ;;  %v9959_v35 = vpop.eup %8526  ;;  %v7857_v62 = vadd.f32 %v4604_v34, %v9648_v54  ;;  %8550 = vtanh.f32 %v7856_v18  ;;  %5010 = vmatprep.mubr.bf16.mxu0 %v10560_v49  ;;  %5462 = vmatprep.mubr.bf16.mxu1 %v10560_v49  ;;  %v8407_v18 = vld [vmem:[#allocation7 + $0x88] sm:$0xff]  }
 0x29e   : > { %v4606_v14 = vpop.f32.mrb[23].mxu1  ;;  %v9964_v3 = vpop.eup %8528  ;;  %v7826_v21 = vadd.f32 %v4154_v63, %v9652_v39  ;;  %8552 = vtanh.f32 %v7825_v29  ;;  %7524 = vmatpush3.bf16.msra.mxu0 %v8402_v31  ;;  %7594 = vmatpush3.bf16.msra.mxu1 %v8403_v22  ;;  %v8409_v29 = vld [vmem:[#allocation7 + $0xd0] sm:$0xff]  }
 0x29f   : > { %10557 = vst [vmem:[#allocation13_spill] sm:$0xff] %v9964_v3  ;;  %v9970_v30 = vpop.eup %8530  ;;  %v7858_v34 = vadd.f32 %v4606_v14, %v9656_v47  ;;  %8554 = vtanh.f32 %v7857_v62  ;;  %v4158_v15 = vpop.f32.mrb[24].mxu0  ;;  %7525 = vmatprep.subr.bf16.mxu0 %v8404_v28  ;;  %7595 = vmatprep.subr.bf16.mxu1 %v8405_v58  ;;  %v8412_v3 = vld [vmem:[#allocation7 + $0x58] sm:$0xff]  }
 0x2a0   : > { %10559 = vst [vmem:[#allocation14_spill] sm:$0xff] %v9970_v30  ;;  %v9975_v27 = vpop.eup %8532  ;;  %8556 = vtanh.f32 %v7826_v21  ;;  %v7827_v56 = vadd.f32 %v4158_v15, %v9643_v26  ;;  %v4610_v60 = vpop.f32.mrb[24].mxu1 }
 0x2a1   : > { %10561 = vst [vmem:[#allocation15_spill] sm:$0xff] %v9975_v27  ;;  %v9978_v63 = vpop.eup %8534  ;;  %v4160_v45 = vpop.f32.mrb[25].mxu0  ;;  %8558 = vtanh.f32 %v7858_v34  ;;  %v7859_v31 = vadd.f32 %v4610_v60, %v9648_v54  ;;  %v8410_v34 = vld [vmem:[#allocation7 + $0x10] sm:$0xff]   ;;  %v8413_v60 = vld [vmem:[#allocation7 + $0xd8] sm:$0xff]  }
 0x2a2   : > { %10562 = vst [vmem:[#allocation16_spill] sm:$0xff] %v9978_v63  ;;  %v9980_v14 = vpop.eup %8536  ;;  %v7828_v62 = vadd.f32 %v4160_v45, %v9652_v39  ;;  %v4612_v22 = vpop.f32.mrb[25].mxu1  ;;  %8560 = vtanh.f32 %v7827_v56  ;;  %7526 = vmatpush3.bf16.msra.mxu0 %v8406_v16  ;;  %7596 = vmatpush3.bf16.msra.mxu1 %v8407_v18  ;;  %v8411_v56 = vld [vmem:[#allocation7 + $0x90] sm:$0xff]  }
 0x2a3   : > { %10563 = vst [vmem:[#allocation17_spill] sm:$0xff] %v9980_v14  ;;  %v9983_v49 = vpop.eup %8538  ;;  %v4162_v28 = vpop.f32.mrb[26].mxu0  ;;  %v7860_v21 = vadd.f32 %v4612_v22, %v9656_v47  ;;  %8562 = vtanh.f32 %v7859_v31  ;;  %7527 = vmatprep.subr.bf16.mxu0 %v8408_v36  ;;  %v10568_v14 = vld [vmem:[#allocation25_spill] sm:$0xff]  ;;  %7597 = vmatprep.subr.bf16.mxu1 %v8409_v29  ;;  %v10569_v18 = vld [vmem:[#allocation26_spill] sm:$0xff] }
 0x2a4   : > { %10564 = vst [vmem:[#allocation18_spill] sm:$0xff] %v9983_v49  ;;  %v9989_v46 = vpop.eup %8540  ;;  %v7829_v58 = vadd.f32 %v4162_v28, %v9643_v26  ;;  %v4614_v15 = vpop.f32.mrb[26].mxu1  ;;  %8564 = vtanh.f32 %v7828_v62  ;;  %5011 = vmatmul.mubr.bf16.gmra.mrb[36].mxu0 %v10568_v14  ;;  %5463 = vmatmul.mubr.bf16.gmra.mrb[36].mxu1 %v10568_v14  ;;  %v8416_v31 = vld [vmem:[#allocation7 + $0x60] sm:$0xff]  }
 0x2a5   : > { %10565 = vst [vmem:[#allocation19_spill] sm:$0xff] %v9989_v46  ;;  %v4164_v42 = vpop.f32.mrb[27].mxu0  ;;  %v9995_v45 = vpop.eup %8542  ;;  %v7861_v61 = vadd.f32 %v4614_v15, %v9648_v54  ;;  %8566 = vtanh.f32 %v7860_v21  ;;  %5020 = vmatprep.mubr.bf16.mxu0 %v10569_v18  ;;  %5472 = vmatprep.mubr.bf16.mxu1 %v10569_v18  ;;  %v8415_v21 = vld [vmem:[#allocation7 + $0x98] sm:$0xff]  }
 0x2a6   : > { %10566 = vst [vmem:[#allocation20_spill] sm:$0xff] %v9995_v45  ;;  %v4616_v9 = vpop.f32.mrb[27].mxu1  ;;  %v10000_v28 = vpop.eup %8544  ;;  %v7830_v16 = vadd.f32 %v4164_v42, %v9652_v39  ;;  %8568 = vtanh.f32 %v7829_v58  ;;  %7528 = vmatpush3.bf16.msra.mxu0 %v8410_v34  ;;  %v8414_v42 = vld [vmem:[#allocation7 + $0x18] sm:$0xff]   ;;  %7598 = vmatpush3.bf16.msra.mxu1 %v8411_v56  ;;  %v8417_v58 = vld [vmem:[#allocation7 + $0xe0] sm:$0xff]  }
 0x2a7   : > { %10567 = vst [vmem:[#allocation21_spill] sm:$0xff] %v10000_v28  ;;  %v10006_v15 = vpop.eup %8546  ;;  %v7862_v36 = vadd.f32 %v4616_v9, %v9656_v47  ;;  %8570 = vtanh.f32 %v7861_v61  ;;  %v4168_v62 = vpop.f32.mrb[28].mxu0  ;;  %7529 = vmatprep.subr.bf16.mxu0 %v8412_v3  ;;  %7599 = vmatprep.subr.bf16.mxu1 %v8413_v60  ;;  %v8420_v28 = vld [vmem:[#allocation7 + $0x68] sm:$0xff]  }
 0x2a8   : > { %v10011_v22 = vpop.eup %8548  ;;  %8572 = vtanh.f32 %v7830_v16  ;;  %v7831_v14 = vadd.f32 %v4168_v62, %v9643_v26  ;;  %v4620_v30 = vpop.f32.mrb[28].mxu1 }
 0x2a9   : > { %v10014_v29 = vpop.eup %8550  ;;  %v4170_v49 = vpop.f32.mrb[29].mxu0  ;;  %8574 = vtanh.f32 %v7862_v36  ;;  %v7863_v34 = vadd.f32 %v4620_v30, %v9648_v54  ;;  %v8418_v36 = vld [vmem:[#allocation7 + $0x20] sm:$0xff]   ;;  %v8421_v30 = vld [vmem:[#allocation7 + $0xe8] sm:$0xff]  }
 0x2aa   : > { %v10016_v9 = vpop.eup %8552  ;;  %v7832_v61 = vadd.f32 %v4170_v49, %v9652_v39  ;;  %v4622_v56 = vpop.f32.mrb[29].mxu1  ;;  %8576 = vtanh.f32 %v7831_v14  ;;  %7530 = vmatpush3.bf16.msra.mxu0 %v8414_v42  ;;  %7600 = vmatpush3.bf16.msra.mxu1 %v8415_v21  ;;  %v8419_v14 = vld [vmem:[#allocation7 + $0xa0] sm:$0xff]  }
 0x2ab   : > { %v10019_v18 = vpop.eup %8554  ;;  %v4172_v3 = vpop.f32.mrb[30].mxu0  ;;  %v7864_v16 = vadd.f32 %v4622_v56, %v9656_v47  ;;  %8578 = vtanh.f32 %v7863_v34  ;;  %7531 = vmatprep.subr.bf16.mxu0 %v8416_v31  ;;  %7601 = vmatprep.subr.bf16.mxu1 %v8417_v58  ;;  %v10573_v21 = vld [vmem:[#allocation28_spill] sm:$0xff]  ;;  %v8423_v58 = vld [vmem:[#allocation7 + $0xa8] sm:$0xff]  }
 0x2ac   : > { %v10025_v45 = vpop.eup %8556  ;;  %v7833_v60 = vadd.f32 %v4172_v3, %v9643_v26  ;;  %v4624_v62 = vpop.f32.mrb[30].mxu1  ;;  %8580 = vtanh.f32 %v7832_v61  ;;  %v10571_v3 = vld [vmem:[#allocation27_spill] sm:$0xff]  ;;  %v8432_v26 = vld [vmem:[#allocation7 + $0x140] sm:$0xff]  }
 0x2ad   : > { %v4174_v27 = vpop.f32.mrb[31].mxu0  ;;  %v10031_v49 = vpop.eup %8558  ;;  %v7865_v46 = vadd.f32 %v4624_v62, %v9648_v54  ;;  %5021 = vmatmul.mubr.bf16.gmra.mrb[40].mxu0 %v10571_v3  ;;  %8582 = vtanh.f32 %v7864_v16  ;;  %5473 = vmatmul.mubr.bf16.gmra.mrb[40].mxu1 %v10571_v3  ;;  %v8424_v61 = vld [vmem:[#allocation7 + $0x70] sm:$0xff]  }
 0x2ae   : > { %v4626_v63 = vpop.f32.mrb[31].mxu1  ;;  %v10036_v56 = vpop.eup %8560  ;;  %v7834_v42 = vadd.f32 %v4174_v27, %v9652_v39  ;;  %5030 = vmatprep.mubr.bf16.mxu0 %v10573_v21  ;;  %8584 = vtanh.f32 %v7833_v60  ;;  %5482 = vmatprep.mubr.bf16.mxu1 %v10573_v21  ;;  %v8422_v39 = vld [vmem:[#allocation7 + $0x28] sm:$0xff]   ;;  %v8426_v3 = vld [vmem:[#allocation7 + $0x30] sm:$0xff]   ;;  %v8429_v60 = vld [vmem:[#allocation7 + $0xf8] sm:$0xff]  }
 0x2af   : > { %10570 = vst [vmem:[#allocation22_spill] sm:$0xff] %v10036_v56  ;;  %v10042_v34 = vpop.eup %8562  ;;  %v7866_v31 = vadd.f32 %v4626_v63, %v9656_v47  ;;  %7532 = vmatpush3.bf16.msra.mxu0 %v8418_v36  ;;  %8586 = vtanh.f32 %v7865_v46  ;;  %7602 = vmatpush3.bf16.msra.mxu1 %v8419_v14  ;;  %v8425_v47 = vld [vmem:[#allocation7 + $0xf0] sm:$0xff]   ;;  %v10575_v21 = vld [vmem:[#allocation29_spill] sm:$0xff]  ;;  %v8430_v46 = vld [vmem:[#allocation7 + $0x38] sm:$0xff]  }
 0x2b0   : > { %10572 = vst [vmem:[#allocation23_spill] sm:$0xff] %v10042_v34  ;;  %v10047_v62 = vpop.eup %8564  ;;  %7533 = vmatprep.subr.bf16.mxu0 %v8420_v28  ;;  %8588 = vtanh.f32 %v7834_v42  ;;  %7603 = vmatprep.subr.bf16.mxu1 %v8421_v30  ;;  %v8427_v14 = vld [vmem:[#allocation7 + $0xb0] sm:$0xff]   ;;  %v8428_v30 = vld [vmem:[#allocation7 + $0x78] sm:$0xff]  }
 0x2b1   : > { %v10050_v27 = vpop.eup %8566  ;;  %8590 = vtanh.f32 %v7866_v31 }
 0x2b2   : > { %v10052_v16 = vpop.eup %8568 }
 0x2b3   : > { %v10054_v63 = vpop.eup %8570  ;;  %7534 = vmatpush3.bf16.msra.mxu0 %v8422_v39  ;;  %7604 = vmatpush3.bf16.msra.mxu1 %v8423_v58  ;;  %v10576_v58 = vld [vmem:[#allocation30_spill] sm:$0xff]  ;;  %v8434_v39 = vld [vmem:[#allocation7 + $0x1c0] sm:$0xff]  }
 0x2b4   : > { %10574 = vst [vmem:[#allocation24_spill] sm:$0xff] %v10054_v63  ;;  %v10058_v36 = vpop.eup %8572  ;;  %7535 = vmatprep.subr.bf16.mxu0 %v8424_v61  ;;  %7605 = vmatprep.subr.bf16.mxu1 %v8425_v47  ;;  %v8431_v47 = vld [vmem:[#allocation7 + $0xb8] sm:$0xff]  }
 0x2b5   : > { %v10062_v28 = vpop.eup %8574  ;;  %5031 = vmatmul.mubr.bf16.gmra.mrb[44].mxu0 %v10575_v21  ;;  %5483 = vmatmul.mubr.bf16.gmra.mrb[44].mxu1 %v10575_v21  ;;  %v10578_v21 = vld [vmem:[#allocation32_spill] sm:$0xff] }
 0x2b6   : > { %v10066_v31 = vpop.eup %8576  ;;  %5040 = vmatprep.mubr.bf16.mxu0 %v10576_v58  ;;  %5492 = vmatprep.mubr.bf16.mxu1 %v10576_v58 }
 0x2b7   : > { %v10071_v54 = vpop.eup %8578  ;;  %7536 = vmatpush3.bf16.msra.mxu0 %v8426_v3  ;;  %7606 = vmatpush3.bf16.msra.mxu1 %v8427_v14 }
 0x2b8   : > { %v10075_v61 = vpop.eup %8580  ;;  %7537 = vmatprep.subr.bf16.mxu0 %v8428_v30  ;;  %7607 = vmatprep.subr.bf16.mxu1 %v8429_v60  ;;  %v10577_v60 = vld [vmem:[#allocation31_spill] sm:$0xff] }
 0x2b9   : > { %v10078_v42 = vpop.eup %8582 }
 0x2ba   : > { %v10080_v34 = vpop.eup %8584 }
 0x2bb   : > { %v10082_v63 = vpop.eup %8586  ;;  %7538 = vmatpush3.bf16.msra.mxu0 %v8430_v46  ;;  %7608 = vmatpush3.bf16.msra.mxu1 %v8431_v47  ;;  %v10579_v46 = vld [vmem:[#allocation33_spill] sm:$0xff]  ;;  %v10582_v47 = vpack.c.bf16 %v9781_v48, %v9750_v51  ;;  %v8441_v48 = vld [vmem:[#allocation7 + $0x110] sm:$0xff]  }
 0x2bc   : > { %v10086_v56 = vpop.eup %8588  ;;  %v5719_v3 = vpack.c.bf16 %v10082_v63, %v10071_v54  ;;  %7663 = vmatprep.subr.bf16.mxu0 %v8432_v26  ;;  %7733 = vmatprep.subr.bf16.mxu1 %v8434_v39  ;;  %v10580_v26 = vld [vmem:[#allocation34_spill] sm:$0xff]  ;;  %v10581_v39 = vpack.c.bf16 %v9775_v19, %v9744_v10  ;;  %v10586_v10 = vpack.c.bf16 %v9849_v50, %v9818_v44  ;;  %v8446_v44 = vld [vmem:[#allocation7 + $0x1d8] sm:$0xff]  }
 0x2bd   : > { %v10090_v58 = vpop.eup %8590  ;;  %v5718_v14 = vpack.c.bf16 %v10086_v56, %v10075_v61  ;;  %5041 = vmatmul.mubr.bf16.gmra.mrb[48].mxu0 %v10577_v60  ;;  %5493 = vmatmul.mubr.bf16.gmra.mrb[48].mxu1 %v10577_v60  ;;  %v8436_v60 = vld [vmem:[#allocation7 + $0x148] sm:$0xff]   ;;  %v10589_v50 = vpack.c.bf16 %v9911_v41, %v9880_v5  ;;  %v10591_v5 = vpack.c.bf16 %v9893_v57, %v9860_v43  ;;  %v8724_v63 = vld [vmem:[#allocation6] sm:$0xff] }
 0x2be   : > { %v5720_v30 = vpack.c.bf16 %v10090_v58, %v10078_v42  ;;  %5050 = vmatprep.mubr.bf16.mxu0 %v10578_v21  ;;  %5502 = vmatprep.mubr.bf16.mxu1 %v10578_v21  ;;  %v8435_v21 = vld [vmem:[#allocation7 + $0x180] sm:$0xff]   ;;  %v8437_v51 = vld [vmem:[#allocation7 + $0x108] sm:$0xff]   ;;  %v10592_v41 = vpack.c.bf16 %v9905_v1, %v9870_v4  ;;  %v10595_v4 = vpack.c.bf16 %v9943_v24, %v9924_v23  ;;  %v10597_v1 = vld [vmem:[#allocation19_spill] sm:$0xff] }
 0x2bf   : > { %v8439_v19 = vld [vmem:[#allocation7 + $0x188] sm:$0xff]   ;;  %v10596_v57 = vpack.c.bf16 %v9947_v7, %v9930_v20  ;;  %v10628_v58 = vpack.c.bf16 %v10080_v34, %v10066_v31 }
 0x2c0   : > { %v8455_v43 = vld [vmem:[#allocation7 + $0x1a8] sm:$0xff]  }
 0x2c1   : > { %v10603_v23 = vld [vmem:[#allocation17_spill] sm:$0xff]  ;;  %v10606_v7 = vld [vmem:[#allocation18_spill] sm:$0xff] }
 0x2c2   : > { %v10604_v20 = vld [vmem:[#allocation13_spill] sm:$0xff] }
 0x2c3   : > { %v10605_v24 = vpack.c.bf16 %v10603_v23, %v10604_v20 }
 0x2c5   : > { %5051 = vmatmul.mubr.bf16.gmra.mrb[52].mxu0 %v10579_v46  ;;  %5503 = vmatmul.mubr.bf16.gmra.mrb[52].mxu1 %v10579_v46  ;;  %v10583_v46 = vpack.c.bf16 %v9757_v53, %v9726_v12  ;;  %v8440_v12 = vld [vmem:[#allocation7 + $0x150] sm:$0xff]  }
 0x2c6   : > { %5060 = vmatprep.mubr.bf16.mxu0 %v9536_v32  ;;  %5512 = vmatprep.mubr.bf16.mxu1 %v9536_v32  ;;  %v8433_v32 = vld [vmem:[#allocation7 + $0x100] sm:$0xff]   ;;  %v8442_v53 = vld [vmem:[#allocation7 + $0x1d0] sm:$0xff]  }
 0x2cd   : > { %5061 = vmatmul.mubr.bf16.gmra.mrb[56].mxu0 %v10580_v26  ;;  %5513 = vmatmul.mubr.bf16.gmra.mrb[56].mxu1 %v10580_v26  ;;  %v10584_v26 = vpack.c.bf16 %v9769_v37, %v9734_v55  ;;  %v8443_v55 = vld [vmem:[#allocation7 + $0x190] sm:$0xff]   ;;  %v8444_v37 = vld [vmem:[#allocation7 + $0x158] sm:$0xff]  }
 0x2ce   : > { %5070 = vmatprep.mubr.bf16.mxu0 %v9548_v40  ;;  %5522 = vmatprep.mubr.bf16.mxu1 %v9548_v40  ;;  %v8438_v40 = vld [vmem:[#allocation7 + $0x1c8] sm:$0xff]  }
 0x2d5   : > { %5071 = vmatmul.mubr.bf16.gmra.mrb[60].mxu0 %v9556_v8  ;;  %5523 = vmatmul.mubr.bf16.gmra.mrb[60].mxu1 %v9556_v8  ;;  %v10585_v8 = vpack.c.bf16 %v9843_v17, %v9812_v25  ;;  %v10587_v25 = vpack.c.bf16 %v9825_v0, %v9792_v33  ;;  %v10588_v17 = vpack.c.bf16 %v9837_v2, %v9802_v11  ;;  %v8447_v33 = vld [vmem:[#allocation7 + $0x198] sm:$0xff]   ;;  %v8448_v0 = vld [vmem:[#allocation7 + $0x160] sm:$0xff]   ;;  %v8452_v2 = vld [vmem:[#allocation7 + $0x168] sm:$0xff]  }
 0x2d6   : > { %6337 = vmatprep.mubr.bf16.mxu0 %v10581_v39  ;;  %6441 = vmatprep.mubr.bf16.mxu1 %v10582_v47  ;;  %v10590_v39 = vpack.c.bf16 %v9917_v13, %v9886_v38  ;;  %v8445_v47 = vld [vmem:[#allocation7 + $0x118] sm:$0xff]   ;;  %v8451_v11 = vld [vmem:[#allocation7 + $0x1a0] sm:$0xff]   ;;  %v8454_v38 = vld [vmem:[#allocation7 + $0x1e8] sm:$0xff]   ;;  %v10593_v13 = vpack.c.bf16 %v9953_v6, %v9936_v59 }
 0x2d7   : > { %v10601_v6 = vld [vmem:[#allocation16_spill] sm:$0xff] }
 0x2dd   : > { %6338 = vmatmul.mubr.bf16.vlgmr.msra.gmra.mrb[64].mxu0 %v10583_v46  ;;  %6442 = vmatmul.mubr.bf16.vlgmr.msra.gmra.mrb[64].mxu1 %v10584_v26  ;;  %v8453_v46 = vld [vmem:[#allocation7 + $0x128] sm:$0xff]   ;;  %v8456_v26 = vld [vmem:[#allocation7 + $0x170] sm:$0xff]  }
 0x2de   : > { %6345 = vmatprep.mubr.bf16.mxu0 %v10585_v8  ;;  %6449 = vmatprep.mubr.bf16.mxu1 %v10586_v10  ;;  %v8457_v8 = vld [vmem:[#allocation7 + $0x130] sm:$0xff]  }
 0x2df   : > { %7664 = vmatpush3.bf16.msra.mxu0 %v8433_v32  ;;  %7734 = vmatpush3.bf16.msra.mxu1 %v8435_v21  ;;  %v8450_v32 = vld [vmem:[#allocation7 + $0x1e0] sm:$0xff]   ;;  %v8458_v10 = vld [vmem:[#allocation7 + $0x1f0] sm:$0xff]  }
 0x2e0   : > { %7665 = vmatprep.subr.bf16.mxu0 %v8436_v60  ;;  %7735 = vmatprep.subr.bf16.mxu1 %v8438_v40  ;;  %v8449_v21 = vld [vmem:[#allocation7 + $0x120] sm:$0xff]   ;;  %v10594_v60 = vpack.c.bf16 %v9959_v35, %v9940_v52  ;;  %v10598_v52 = vld [vmem:[#allocation15_spill] sm:$0xff] }
 0x2e1   : > { %v10599_v59 = vpack.c.bf16 %v10597_v1, %v10598_v52  ;;  %v10600_v35 = vld [vmem:[#allocation20_spill] sm:$0xff] }
 0x2e2   : > { %v10602_v40 = vpack.c.bf16 %v10600_v35, %v10601_v6 }
 0x2e3   : > { %7666 = vmatpush3.bf16.msra.mxu0 %v8437_v51  ;;  %7736 = vmatpush3.bf16.msra.mxu1 %v8439_v19  ;;  %v8459_v51 = vld [vmem:[#allocation7 + $0x1b0] sm:$0xff]  }
 0x2e4   : > { %7667 = vmatprep.subr.bf16.mxu0 %v8440_v12  ;;  %7737 = vmatprep.subr.bf16.mxu1 %v8442_v53  ;;  %v10607_v19 = vld [vmem:[#allocation14_spill] sm:$0xff]  ;;  %v10609_v53 = vpack.c.bf16 %v10025_v45, %v10011_v22  ;;  %v10613_v45 = vpack.c.bf16 %v10019_v18, %v10006_v15  ;;  %v10614_v22 = vpack.c.bf16 %v10058_v36, %v10047_v62  ;;  %v10621_v62 = vld [vmem:[#allocation24_spill] sm:$0xff] }
 0x2e5   : > { %6346 = vmatmul.mubr.bf16.gmra.mrb[68].mxu0 %v10587_v25  ;;  %6450 = vmatmul.mubr.bf16.gmra.mrb[68].mxu1 %v10588_v17  ;;  %v10608_v12 = vpack.c.bf16 %v10606_v7, %v10607_v19  ;;  %v8461_v25 = vld [vmem:[#allocation7 + $0x138] sm:$0xff]   ;;  %v10611_v17 = vld [vmem:[#allocation21_spill] sm:$0xff]  ;;  %v10619_v18 = vld [vmem:[#allocation22_spill] sm:$0xff] }
 0x2e6   : > { %6353 = vmatprep.mubr.bf16.mxu0 %v10589_v50  ;;  %6457 = vmatprep.mubr.bf16.mxu1 %v10590_v39  ;;  %v10612_v50 = vpack.c.bf16 %v10016_v9, %v10611_v17  ;;  %v10196_v9 = vld [vmem:[%s407_s27] sm:$0xff] }
 0x2e7   : > { %7668 = vmatpush3.bf16.msra.mxu0 %v8441_v48  ;;  %7738 = vmatpush3.bf16.msra.mxu1 %v8443_v55  ;;  %v10610_v48 = vpack.c.bf16 %v10031_v49, %v10014_v29  ;;  %v8460_v55 = vld [vmem:[#allocation7 + $0x178] sm:$0xff]   ;;  %v10615_v29 = vpack.c.bf16 %v10062_v28, %v10050_v27 }
 0x2e8   : > { %7669 = vmatprep.subr.bf16.mxu0 %v8444_v37  ;;  %7739 = vmatprep.subr.bf16.mxu1 %v8446_v44  ;;  %v8462_v37 = vld [vmem:[#allocation7 + $0x1f8] sm:$0xff]  }
 0x2e9   : > { %v8463_v44 = vld [vmem:[#allocation7 + $0x1b8] sm:$0xff]  }
 0x2ea   : > { %v10616_v49 = vld [vmem:[#allocation35_spill] sm:$0xff] }
 0x2eb   : > { %7670 = vmatpush3.bf16.msra.mxu0 %v8445_v47  ;;  %7740 = vmatpush3.bf16.msra.mxu1 %v8447_v33  ;;  %v10617_v39 = vsub.s32 1, %v10616_v49  ;;  %v10618_v33 = vsub.s32 3, %v10616_v49  ;;  %v10622_v27 = vld [vmem:[#allocation23_spill] sm:$0xff]  ;;  %v10627_v56 = vsub.s32 2, %v10616_v49  ;;  %v1151_v34 = vsub.s32 6, %v10616_v49 }
 0x2ec   : > { %7671 = vmatprep.subr.bf16.mxu0 %v8448_v0  ;;  %7741 = vmatprep.subr.bf16.mxu1 %v8450_v32  ;;  %v10620_v0 = vpack.c.bf16 %v10052_v16, %v10619_v18  ;;  %v10623_v36 = vpack.c.bf16 %v10621_v62, %v10622_v27  ;;  %v1147_v31 = vsub.s32 5, %v10616_v49  ;;  %v1155_v54 = vsub.s32 7, %v10616_v49 }
 0x2ed   : > { %6354 = vmatmul.mubr.bf16.gmra.mrb[72].mxu0 %v10591_v5  ;;  %6458 = vmatmul.mubr.bf16.gmra.mrb[72].mxu1 %v10592_v41  ;;  %v5734_v47 = vrot.slane %v10196_v9, %v10617_v39  ;;  %v5742_v15 = vrot.slane %v10196_v9, %v10618_v33  ;;  %v5738_v61 = vrot.slane %v10196_v9, %v10627_v56  ;;  %v1143_v41 = vsub.s32 4, %v10616_v49 }
 0x2ee   : > { %6361 = vmatprep.mubr.bf16.mxu0 %v10593_v13  ;;  %6465 = vmatprep.mubr.bf16.mxu1 %v10594_v60  ;;  %v10250_v13 = vrot.slane %v8724_v63, %v1151_v34  ;;  %v10254_v60 = vrot.slane %v8724_v63, %v1147_v31 }
 0x2ef   : > { %7672 = vmatpush3.bf16.msra.mxu0 %v8449_v21  ;;  %7742 = vmatpush3.bf16.msra.mxu1 %v8451_v11  ;;  %v5768_v28 = vpack.c.bf16 %v5734_v47, %v5734_v47  ;;  %v5770_v16 = vpack.c.bf16 %v5742_v15, %v5742_v15  ;;  %v10626_v21 = vsub.s32 0, %v10616_v49 }
 0x2f0   : > { %7673 = vmatprep.subr.bf16.mxu0 %v8452_v2  ;;  %7743 = vmatprep.subr.bf16.mxu1 %v8454_v38 }
 0x2f1   : > { %v5730_v11 = vrot.slane %v10196_v9, %v10626_v21  ;;  %v5779_v2 = vsel %vm10216_vm2, %v5768_v28, 0  ;;  %v5781_v42 = vsel %vm10216_vm2, %v5770_v16, 0 }
 0x2f3   : > { %7674 = vmatpush3.bf16.msra.mxu0 %v8453_v46  ;;  %7744 = vmatpush3.bf16.msra.mxu1 %v8455_v43  ;;  %v10258_v46 = vrot.slane %v8724_v63, %v1155_v54 }
 0x2f4   : > { %7675 = vmatprep.subr.bf16.mxu0 %v8456_v26  ;;  %7745 = vmatprep.subr.bf16.mxu1 %v8458_v10 }
 0x2f5   : > { %6362 = vmatmul.mubr.bf16.gmra.mrb[76].mxu0 %v10595_v4  ;;  %6466 = vmatmul.mubr.bf16.gmra.mrb[76].mxu1 %v10596_v57 }
 0x2f6   : > { %6369 = vmatprep.mubr.bf16.mxu0 %v10599_v59  ;;  %6473 = vmatprep.mubr.bf16.mxu1 %v10602_v40 }
 0x2f7   : > { %7676 = vmatpush3.bf16.msra.mxu0 %v8457_v8  ;;  %7746 = vmatpush3.bf16.msra.mxu1 %v8459_v51 }
 0x2f8   : > { %7677 = vmatprep.subr.bf16.mxu0 %v8460_v55  ;;  %7747 = vmatprep.subr.bf16.mxu1 %v8462_v37 }
 0x2fb   : > { %7748 = vmatpush3.bf16.msra.mxu1 %v8463_v44  ;;  %7678 = vmatpush3.bf16.msra.mxu0 %v8461_v25 }
 0x2fd   : > { %6370 = vmatmul.mubr.bf16.gmra.mrb[80].mxu0 %v10605_v24  ;;  %6474 = vmatmul.mubr.bf16.gmra.mrb[80].mxu1 %v10608_v12 }
 0x2fe   : > { %6377 = vmatprep.mubr.bf16.mxu0 %v10609_v53  ;;  %6481 = vmatprep.mubr.bf16.mxu1 %v10610_v48 }
 0x305   : > { %6378 = vmatmul.mubr.bf16.gmra.mrb[84].mxu0 %v10612_v50  ;;  %6482 = vmatmul.mubr.bf16.gmra.mrb[84].mxu1 %v10613_v45 }
 0x306   : > { %6385 = vmatprep.mubr.bf16.mxu0 %v10614_v22  ;;  %6489 = vmatprep.mubr.bf16.mxu1 %v10615_v29 }
 0x30d   : > { %6386 = vmatmul.mubr.bf16.gmra.mrb[88].mxu0 %v10620_v0  ;;  %6490 = vmatmul.mubr.bf16.gmra.mrb[88].mxu1 %v10623_v36 }
 0x30e   : > { %6393 = vmatprep.mubr.bf16.mxu0 %v5718_v14  ;;  %6497 = vmatprep.mubr.bf16.mxu1 %v5720_v30  ;;  %v5767_v14 = vpack.c.bf16 %v5730_v11, %v5730_v11  ;;  %v5769_v30 = vpack.c.bf16 %v5738_v61, %v5738_v61 }
 0x310   : > { %v5778_v5 = vsel %vm10216_vm2, %v5767_v14, 0  ;;  %v5780_v38 = vsel %vm10216_vm2, %v5769_v30, 0 }
 0x315   : > { %6394 = vmatmul.mubr.bf16.gmra.mrb[92].mxu0 %v10628_v58  ;;  %6498 = vmatmul.mubr.bf16.gmra.mrb[92].mxu1 %v5719_v3  ;;  %v10246_v3 = vrot.slane %v8724_v63, %v1143_v41 }
 0x316   : > { %6401 = vmatprep.mubr.bf16.mxu0 %v5779_v2  ;;  %6505 = vmatprep.mubr.bf16.mxu1 %v5781_v42 }
 0x31d   : > { %6402 = vmatmul.mubr.bf16.gmra.mrb[96].mxu0 %v5778_v5  ;;  %6506 = vmatmul.mubr.bf16.gmra.mrb[96].mxu1 %v5780_v38 }
 0x36f   : > { %v5002_v43 = vpop.f32.mrb[32].mxu0  ;;  %v5454_v57 = vpop.f32.mrb[32].mxu1 }
 0x370   : > { %v7867_v4 = vadd.f32 %v5002_v43, %v10246_v3  ;;  %v5004_v1 = vpop.f32.mrb[33].mxu0  ;;  %v7899_v52 = vadd.f32 %v5454_v57, %v10250_v13  ;;  %v5456_v35 = vpop.f32.mrb[33].mxu1 }
 0x371   : > { %v7868_v59 = vadd.f32 %v5004_v1, %v10254_v60  ;;  %v5006_v6 = vpop.f32.mrb[34].mxu0  ;;  %v7900_v40 = vadd.f32 %v5456_v35, %v10258_v46  ;;  %v5458_v8 = vpop.f32.mrb[34].mxu1 }
 0x372   : > { %8592 = vtanh.f32 %v7867_v4  ;;  %v7869_v26 = vadd.f32 %v5006_v6, %v10246_v3  ;;  %v5008_v10 = vpop.f32.mrb[35].mxu0  ;;  %v7901_v51 = vadd.f32 %v5458_v8, %v10250_v13  ;;  %v5460_v23 = vpop.f32.mrb[35].mxu1 }
 0x373   : > { %8594 = vtanh.f32 %v7899_v52  ;;  %v7870_v20 = vadd.f32 %v5008_v10, %v10254_v60  ;;  %v7902_v24 = vadd.f32 %v5460_v23, %v10258_v46 }
 0x374   : > { %8596 = vtanh.f32 %v7868_v59 }
 0x375   : > { %8598 = vtanh.f32 %v7900_v40 }
 0x376   : > { %8600 = vtanh.f32 %v7869_v26 }
 0x377   : > { %8602 = vtanh.f32 %v7901_v51  ;;  %v5012_v7 = vpop.f32.mrb[36].mxu0  ;;  %v5464_v12 = vpop.f32.mrb[36].mxu1 }
 0x378   : > { %8604 = vtanh.f32 %v7870_v20  ;;  %v7871_v19 = vadd.f32 %v5012_v7, %v10246_v3  ;;  %v5014_v53 = vpop.f32.mrb[37].mxu0  ;;  %v7903_v48 = vadd.f32 %v5464_v12, %v10250_v13  ;;  %v5466_v37 = vpop.f32.mrb[37].mxu1 }
 0x379   : > { %8606 = vtanh.f32 %v7902_v24  ;;  %v7872_v55 = vadd.f32 %v5014_v53, %v10254_v60  ;;  %v5016_v25 = vpop.f32.mrb[38].mxu0  ;;  %v7904_v44 = vadd.f32 %v5466_v37, %v10258_v46  ;;  %v5468_v50 = vpop.f32.mrb[38].mxu1 }
 0x37a   : > { %8608 = vtanh.f32 %v7871_v19  ;;  %v7873_v17 = vadd.f32 %v5016_v25, %v10246_v3  ;;  %v5018_v45 = vpop.f32.mrb[39].mxu0  ;;  %v7905_v22 = vadd.f32 %v5468_v50, %v10250_v13  ;;  %v5470_v29 = vpop.f32.mrb[39].mxu1 }
 0x37b   : > { %8610 = vtanh.f32 %v7903_v48  ;;  %v7874_v47 = vadd.f32 %v5018_v45, %v10254_v60  ;;  %v7906_v15 = vadd.f32 %v5470_v29, %v10258_v46 }
 0x37c   : > { %v8593_v39 = vpop.eup %8592  ;;  %8612 = vtanh.f32 %v7872_v55 }
 0x37d   : > { %v8595_v33 = vpop.eup %8594  ;;  %8614 = vtanh.f32 %v7904_v44 }
 0x37e   : > { %v8597_v18 = vpop.eup %8596  ;;  %8616 = vtanh.f32 %v7873_v17 }
 0x37f   : > { %v8599_v0 = vpop.eup %8598  ;;  %8618 = vtanh.f32 %v7905_v22 }
 0x380   : > { %v5022_v62 = vpop.f32.mrb[40].mxu0  ;;  %v8601_v27 = vpop.eup %8600  ;;  %8620 = vtanh.f32 %v7874_v47 }
 0x381   : > { %v7875_v36 = vadd.f32 %v5022_v62, %v10246_v3  ;;  %v5474_v28 = vpop.f32.mrb[40].mxu1  ;;  %v5024_v16 = vpop.f32.mrb[41].mxu0  ;;  %8622 = vtanh.f32 %v7906_v15  ;;  %v5665_v42 = vpack.c.bf16 %v8601_v27, %v8593_v39 }
 0x382   : > { %v8603_v21 = vpop.eup %8602  ;;  %v7907_v11 = vadd.f32 %v5474_v28, %v10250_v13  ;;  %v7876_v2 = vadd.f32 %v5024_v16, %v10254_v60  ;;  %v5476_v56 = vpop.f32.mrb[41].mxu1 }
 0x383   : > { %v5026_v61 = vpop.f32.mrb[42].mxu0  ;;  %v8605_v58 = vpop.eup %8604  ;;  %8624 = vtanh.f32 %v7875_v36  ;;  %v7908_v14 = vadd.f32 %v5476_v56, %v10258_v46  ;;  %v5667_v63 = vpack.c.bf16 %v8603_v21, %v8595_v33 }
 0x384   : > { %v7877_v30 = vadd.f32 %v5026_v61, %v10246_v3  ;;  %v5478_v5 = vpop.f32.mrb[42].mxu1  ;;  %v5028_v38 = vpop.f32.mrb[43].mxu0  ;;  %8626 = vtanh.f32 %v7907_v11  ;;  %v5666_v1 = vpack.c.bf16 %v8605_v58, %v8597_v18 }
 0x385   : > { %v8607_v43 = vpop.eup %8606  ;;  %v7909_v4 = vadd.f32 %v5478_v5, %v10250_v13  ;;  %v5480_v57 = vpop.f32.mrb[43].mxu1  ;;  %8628 = vtanh.f32 %v7876_v2  ;;  %v7878_v59 = vadd.f32 %v5028_v38, %v10254_v60 }
 0x386   : > { %v8609_v52 = vpop.eup %8608  ;;  %v5668_v35 = vpack.c.bf16 %v8607_v43, %v8599_v0  ;;  %8630 = vtanh.f32 %v7908_v14  ;;  %v7910_v40 = vadd.f32 %v5480_v57, %v10258_v46  ;;  %6545 = vmatprep.mubr.bf16.mxu0 %v5666_v1 }
 0x387   : > { %v8611_v6 = vpop.eup %8610  ;;  %8632 = vtanh.f32 %v7877_v30  ;;  %6546 = vmatmul.mubr.bf16.vlgmr.msra.gmra.mrb[100].mxu0 %v5665_v42 }
 0x388   : > { %v8613_v26 = vpop.eup %8612  ;;  %6649 = vmatprep.mubr.bf16.mxu1 %v5668_v35  ;;  %8634 = vtanh.f32 %v7909_v4  ;;  %v5032_v10 = vpop.f32.mrb[44].mxu0 }
 0x389   : > { %v8615_v8 = vpop.eup %8614  ;;  %6650 = vmatmul.mubr.bf16.vlgmr.msra.gmra.mrb[100].mxu1 %v5667_v63  ;;  %8636 = vtanh.f32 %v7878_v59  ;;  %v7879_v23 = vadd.f32 %v5032_v10, %v10246_v3  ;;  %v5484_v20 = vpop.f32.mrb[44].mxu1 }
 0x38a   : > { %v8617_v51 = vpop.eup %8616  ;;  %v5034_v24 = vpop.f32.mrb[45].mxu0  ;;  %8638 = vtanh.f32 %v7910_v40  ;;  %v7911_v19 = vadd.f32 %v5484_v20, %v10250_v13 }
 0x38b   : > { %v8619_v7 = vpop.eup %8618  ;;  %v7880_v12 = vadd.f32 %v5034_v24, %v10254_v60  ;;  %v5486_v53 = vpop.f32.mrb[45].mxu1  ;;  %v5673_v55 = vpack.c.bf16 %v8617_v51, %v8609_v52  ;;  %8640 = vtanh.f32 %v7879_v23 }
 0x38c   : > { %v5036_v48 = vpop.f32.mrb[46].mxu0  ;;  %v8621_v37 = vpop.eup %8620  ;;  %v7912_v25 = vadd.f32 %v5486_v53, %v10258_v46  ;;  %v5675_v45 = vpack.c.bf16 %v8619_v7, %v8611_v6  ;;  %8642 = vtanh.f32 %v7911_v19 }
 0x38d   : > { %v7881_v44 = vadd.f32 %v5036_v48, %v10246_v3  ;;  %v5488_v17 = vpop.f32.mrb[46].mxu1  ;;  %v5038_v50 = vpop.f32.mrb[47].mxu0  ;;  %v5674_v47 = vpack.c.bf16 %v8621_v37, %v8613_v26  ;;  %8644 = vtanh.f32 %v7880_v12 }
 0x38e   : > { %v8623_v22 = vpop.eup %8622  ;;  %v7913_v29 = vadd.f32 %v5488_v17, %v10250_v13  ;;  %v5490_v39 = vpop.f32.mrb[47].mxu1  ;;  %v7882_v15 = vadd.f32 %v5038_v50, %v10254_v60  ;;  %8646 = vtanh.f32 %v7912_v25 }
 0x38f   : > { %v8625_v33 = vpop.eup %8624  ;;  %v5676_v18 = vpack.c.bf16 %v8623_v22, %v8615_v8  ;;  %v7914_v62 = vadd.f32 %v5490_v39, %v10258_v46  ;;  %6553 = vmatprep.mubr.bf16.mxu0 %v5674_v47  ;;  %8648 = vtanh.f32 %v7881_v44 }
 0x390   : > { %v8627_v0 = vpop.eup %8626  ;;  %6554 = vmatmul.mubr.bf16.gmra.mrb[104].mxu0 %v5673_v55  ;;  %8650 = vtanh.f32 %v7913_v29  ;;  %v5042_v28 = vpop.f32.mrb[48].mxu0 }
 0x391   : > { %v8629_v27 = vpop.eup %8628  ;;  %6657 = vmatprep.mubr.bf16.mxu1 %v5676_v18  ;;  %8652 = vtanh.f32 %v7882_v15  ;;  %v7883_v21 = vadd.f32 %v5042_v28, %v10246_v3  ;;  %v5494_v11 = vpop.f32.mrb[48].mxu1 }
 0x392   : > { %v8631_v36 = vpop.eup %8630  ;;  %6658 = vmatmul.mubr.bf16.gmra.mrb[104].mxu1 %v5675_v45  ;;  %v5044_v2 = vpop.f32.mrb[49].mxu0  ;;  %8654 = vtanh.f32 %v7914_v62  ;;  %v7915_v61 = vadd.f32 %v5494_v11, %v10250_v13 }
 0x393   : > { %v8633_v16 = vpop.eup %8632  ;;  %v7884_v42 = vadd.f32 %v5044_v2, %v10254_v60  ;;  %v5496_v58 = vpop.f32.mrb[49].mxu1  ;;  %8656 = vtanh.f32 %v7883_v21 }
 0x394   : > { %v8635_v56 = vpop.eup %8634  ;;  %v5046_v14 = vpop.f32.mrb[50].mxu0  ;;  %v5681_v30 = vpack.c.bf16 %v8633_v16, %v8625_v33  ;;  %v7916_v38 = vadd.f32 %v5496_v58, %v10258_v46  ;;  %8658 = vtanh.f32 %v7915_v61 }
 0x395   : > { %v8637_v5 = vpop.eup %8636  ;;  %v7885_v63 = vadd.f32 %v5046_v14, %v10246_v3  ;;  %v5498_v43 = vpop.f32.mrb[50].mxu1  ;;  %v5683_v57 = vpack.c.bf16 %v8635_v56, %v8627_v0  ;;  %8660 = vtanh.f32 %v7884_v42 }
 0x396   : > { %v5048_v4 = vpop.f32.mrb[51].mxu0  ;;  %v8639_v1 = vpop.eup %8638  ;;  %v7917_v52 = vadd.f32 %v5498_v43, %v10250_v13  ;;  %v5682_v35 = vpack.c.bf16 %v8637_v5, %v8629_v27  ;;  %8662 = vtanh.f32 %v7916_v38 }
 0x397   : > { %v5500_v59 = vpop.f32.mrb[51].mxu1  ;;  %v8641_v6 = vpop.eup %8640  ;;  %v7886_v40 = vadd.f32 %v5048_v4, %v10254_v60  ;;  %v5684_v26 = vpack.c.bf16 %v8639_v1, %v8631_v36  ;;  %8664 = vtanh.f32 %v7885_v63 }
 0x398   : > { %v8643_v8 = vpop.eup %8642  ;;  %v7918_v10 = vadd.f32 %v5500_v59, %v10258_v46  ;;  %6561 = vmatprep.mubr.bf16.mxu0 %v5682_v35  ;;  %8666 = vtanh.f32 %v7917_v52  ;;  %v5052_v20 = vpop.f32.mrb[52].mxu0 }
 0x399   : > { %v8645_v51 = vpop.eup %8644  ;;  %6665 = vmatprep.mubr.bf16.mxu1 %v5684_v26  ;;  %6562 = vmatmul.mubr.bf16.gmra.mrb[108].mxu0 %v5681_v30  ;;  %8668 = vtanh.f32 %v7886_v40  ;;  %v7887_v7 = vadd.f32 %v5052_v20, %v10246_v3  ;;  %v5504_v19 = vpop.f32.mrb[52].mxu1 }
 0x39a   : > { %v8647_v23 = vpop.eup %8646  ;;  %6666 = vmatmul.mubr.bf16.gmra.mrb[108].mxu1 %v5683_v57  ;;  %v5054_v12 = vpop.f32.mrb[53].mxu0  ;;  %8670 = vtanh.f32 %v7918_v10  ;;  %v7919_v48 = vadd.f32 %v5504_v19, %v10250_v13 }
 0x39b   : > { %v8649_v24 = vpop.eup %8648  ;;  %v7888_v55 = vadd.f32 %v5054_v12, %v10254_v60  ;;  %v5506_v37 = vpop.f32.mrb[53].mxu1  ;;  %8672 = vtanh.f32 %v7887_v7 }
 0x39c   : > { %v8651_v53 = vpop.eup %8650  ;;  %v5056_v25 = vpop.f32.mrb[54].mxu0  ;;  %v5689_v44 = vpack.c.bf16 %v8649_v24, %v8641_v6  ;;  %v7920_v50 = vadd.f32 %v5506_v37, %v10258_v46  ;;  %8674 = vtanh.f32 %v7919_v48 }
 0x39d   : > { %v8653_v17 = vpop.eup %8652  ;;  %v7889_v45 = vadd.f32 %v5056_v25, %v10246_v3  ;;  %v5508_v22 = vpop.f32.mrb[54].mxu1  ;;  %v5691_v39 = vpack.c.bf16 %v8651_v53, %v8643_v8  ;;  %8676 = vtanh.f32 %v7888_v55 }
 0x39e   : > { %v5058_v29 = vpop.f32.mrb[55].mxu0  ;;  %v8655_v47 = vpop.eup %8654  ;;  %v7921_v33 = vadd.f32 %v5508_v22, %v10250_v13  ;;  %v5690_v18 = vpack.c.bf16 %v8653_v17, %v8645_v51  ;;  %8678 = vtanh.f32 %v7920_v50 }
 0x39f   : > { %v5510_v15 = vpop.f32.mrb[55].mxu1  ;;  %v8657_v0 = vpop.eup %8656  ;;  %v7890_v62 = vadd.f32 %v5058_v29, %v10254_v60  ;;  %v5692_v27 = vpack.c.bf16 %v8655_v47, %v8647_v23  ;;  %8680 = vtanh.f32 %v7889_v45 }
 0x3a0   : > { %v8659_v36 = vpop.eup %8658  ;;  %v7922_v28 = vadd.f32 %v5510_v15, %v10258_v46  ;;  %6569 = vmatprep.mubr.bf16.mxu0 %v5690_v18  ;;  %8682 = vtanh.f32 %v7921_v33  ;;  %v5062_v11 = vpop.f32.mrb[56].mxu0 }
 0x3a1   : > { %v8661_v16 = vpop.eup %8660  ;;  %6673 = vmatprep.mubr.bf16.mxu1 %v5692_v27  ;;  %6570 = vmatmul.mubr.bf16.gmra.mrb[112].mxu0 %v5689_v44  ;;  %8684 = vtanh.f32 %v7890_v62  ;;  %v7891_v56 = vadd.f32 %v5062_v11, %v10246_v3  ;;  %v5514_v61 = vpop.f32.mrb[56].mxu1 }
 0x3a2   : > { %v8663_v21 = vpop.eup %8662  ;;  %6674 = vmatmul.mubr.bf16.gmra.mrb[112].mxu1 %v5691_v39  ;;  %v5064_v42 = vpop.f32.mrb[57].mxu0  ;;  %8686 = vtanh.f32 %v7922_v28  ;;  %v7923_v14 = vadd.f32 %v5514_v61, %v10250_v13 }
 0x3a3   : > { %v8665_v2 = vpop.eup %8664  ;;  %v7892_v30 = vadd.f32 %v5064_v42, %v10254_v60  ;;  %v5516_v5 = vpop.f32.mrb[57].mxu1  ;;  %8688 = vtanh.f32 %v7891_v56  ;;  %v10324_v42 = vld [vmem:[#allocation9] ss:$0 sm:$0xff] }
 0x3a4   : > { %v8667_v58 = vpop.eup %8666  ;;  %v5066_v38 = vpop.f32.mrb[58].mxu0  ;;  %v5697_v63 = vpack.c.bf16 %v8665_v2, %v8657_v0  ;;  %v7924_v4 = vadd.f32 %v5516_v5, %v10258_v46  ;;  %8690 = vtanh.f32 %v7923_v14 }
 0x3a5   : > { %v8669_v43 = vpop.eup %8668  ;;  %v7893_v57 = vadd.f32 %v5066_v38, %v10246_v3  ;;  %v5518_v1 = vpop.f32.mrb[58].mxu1  ;;  %v5699_v59 = vpack.c.bf16 %v8667_v58, %v8659_v36  ;;  %8692 = vtanh.f32 %v7892_v30 }
 0x3a6   : > { %v5068_v52 = vpop.f32.mrb[59].mxu0  ;;  %v8671_v35 = vpop.eup %8670  ;;  %v7925_v6 = vadd.f32 %v5518_v1, %v10250_v13  ;;  %v5698_v26 = vpack.c.bf16 %v8669_v43, %v8661_v16  ;;  %8694 = vtanh.f32 %v7924_v4 }
 0x3a7   : > { %v5520_v40 = vpop.f32.mrb[59].mxu1  ;;  %v8673_v8 = vpop.eup %8672  ;;  %v7894_v10 = vadd.f32 %v5068_v52, %v10254_v60  ;;  %v5700_v51 = vpack.c.bf16 %v8671_v35, %v8663_v21  ;;  %8696 = vtanh.f32 %v7893_v57 }
 0x3a8   : > { %v8675_v23 = vpop.eup %8674  ;;  %v7926_v20 = vadd.f32 %v5520_v40, %v10258_v46  ;;  %6577 = vmatprep.mubr.bf16.mxu0 %v5698_v26  ;;  %8698 = vtanh.f32 %v7925_v6  ;;  %v5072_v19 = vpop.f32.mrb[60].mxu0 }
 0x3a9   : > { %v8677_v24 = vpop.eup %8676  ;;  %6681 = vmatprep.mubr.bf16.mxu1 %v5700_v51  ;;  %6578 = vmatmul.mubr.bf16.gmra.mrb[116].mxu0 %v5697_v63  ;;  %8700 = vtanh.f32 %v7894_v10  ;;  %v7895_v53 = vadd.f32 %v5072_v19, %v10246_v3  ;;  %v5524_v48 = vpop.f32.mrb[60].mxu1  ;;  %v5750_v10 = vrot.slane %v10196_v9, %v1147_v31 }
 0x3aa   : > { %v8679_v7 = vpop.eup %8678  ;;  %6682 = vmatmul.mubr.bf16.gmra.mrb[116].mxu1 %v5699_v59  ;;  %v5074_v55 = vpop.f32.mrb[61].mxu0  ;;  %8702 = vtanh.f32 %v7926_v20  ;;  %v7927_v25 = vadd.f32 %v5524_v48, %v10250_v13 }
 0x3ab   : > { %v8681_v12 = vpop.eup %8680  ;;  %v7896_v44 = vadd.f32 %v5074_v55, %v10254_v60  ;;  %v5526_v17 = vpop.f32.mrb[61].mxu1  ;;  %8704 = vtanh.f32 %v7895_v53 }
 0x3ac   : > { %v8683_v37 = vpop.eup %8682  ;;  %v5076_v50 = vpop.f32.mrb[62].mxu0  ;;  %v5705_v45 = vpack.c.bf16 %v8681_v12, %v8673_v8  ;;  %v7928_v29 = vadd.f32 %v5526_v17, %v10258_v46  ;;  %8706 = vtanh.f32 %v7927_v25 }
 0x3ad   : > { %v8685_v22 = vpop.eup %8684  ;;  %v7897_v39 = vadd.f32 %v5076_v50, %v10246_v3  ;;  %v5528_v47 = vpop.f32.mrb[62].mxu1  ;;  %v5707_v15 = vpack.c.bf16 %v8683_v37, %v8675_v23  ;;  %8708 = vtanh.f32 %v7896_v44  ;;  %v5772_v37 = vpack.c.bf16 %v5750_v10, %v5750_v10 }
 0x3ae   : > { %v5078_v33 = vpop.f32.mrb[63].mxu0  ;;  %v8687_v18 = vpop.eup %8686  ;;  %v7929_v0 = vadd.f32 %v5528_v47, %v10250_v13  ;;  %v5706_v27 = vpack.c.bf16 %v8685_v22, %v8677_v24  ;;  %8710 = vtanh.f32 %v7928_v29  ;;  %v5758_v24 = vrot.slane %v10196_v9, %v1155_v54 }
 0x3af   : > { %v5530_v62 = vpop.f32.mrb[63].mxu1  ;;  %v8689_v36 = vpop.eup %8688  ;;  %v7898_v28 = vadd.f32 %v5078_v33, %v10254_v60  ;;  %v5708_v16 = vpack.c.bf16 %v8687_v18, %v8679_v7  ;;  %8712 = vtanh.f32 %v7897_v39 }
 0x3b0   : > { %v8691_v21 = vpop.eup %8690  ;;  %v7930_v11 = vadd.f32 %v5530_v62, %v10258_v46  ;;  %6585 = vmatprep.mubr.bf16.mxu0 %v5706_v27  ;;  %8714 = vtanh.f32 %v7929_v0  ;;  %v7539_v13 = vpop.f32.mrb[64].mxu0  ;;  %v5774_v22 = vpack.c.bf16 %v5758_v24, %v5758_v24 }
 0x3b1   : > { %v8693_v3 = vpop.eup %8692  ;;  %6689 = vmatprep.mubr.bf16.mxu1 %v5708_v16  ;;  %6586 = vmatmul.mubr.bf16.gmra.mrb[120].mxu0 %v5705_v45  ;;  %8716 = vtanh.f32 %v7898_v28  ;;  %v7609_v61 = vpop.f32.mrb[64].mxu1 }
 0x3b2   : > { %v8695_v2 = vpop.eup %8694  ;;  %6690 = vmatmul.mubr.bf16.gmra.mrb[120].mxu1 %v5707_v15  ;;  %v7540_v60 = vpop.f32.mrb[65].mxu0  ;;  %8718 = vtanh.f32 %v7930_v11  ;;  %v5754_v11 = vrot.slane %v10196_v9, %v1151_v34 }
 0x3b3   : > { %v8697_v56 = vpop.eup %8696  ;;  %v7541_v14 = vadd.f32 %v7540_v60, %v7539_v13  ;;  %v7610_v30 = vpop.f32.mrb[65].mxu1  ;;  %v5785_v13 = vsel %vm10216_vm2, %v5774_v22, 0 }
 0x3b4   : > { %v8699_v58 = vpop.eup %8698  ;;  %v7542_v46 = vpop.f32.mrb[66].mxu0  ;;  %v5713_v5 = vpack.c.bf16 %v8697_v56, %v8689_v36  ;;  %v7611_v63 = vadd.f32 %v7610_v30, %v7609_v61  ;;  %v5746_v36 = vrot.slane %v10196_v9, %v1143_v41  ;;  %v5773_v9 = vpack.c.bf16 %v5754_v11, %v5754_v11 }
 0x3b5   : > { %v8701_v38 = vpop.eup %8700  ;;  %v7612_v43 = vpop.f32.mrb[66].mxu1  ;;  %v5715_v57 = vpack.c.bf16 %v8699_v58, %v8691_v21  ;;  %v6340_v52 = vadd.f32 %v7541_v14, %v10324_v42  ;;  %v5783_v21 = vsel %vm10216_vm2, %v5772_v37, 0 }
 0x3b6   : > { %v7543_v4 = vpop.f32.mrb[67].mxu0  ;;  %v8703_v1 = vpop.eup %8702  ;;  %v5714_v6 = vpack.c.bf16 %v8701_v38, %v8693_v3  ;;  %v5771_v61 = vpack.c.bf16 %v5746_v36, %v5746_v36 }
 0x3b7   : > { %v7544_v59 = vadd.f32 %v7543_v4, %v7542_v46  ;;  %v7613_v35 = vpop.f32.mrb[67].mxu1  ;;  %v8705_v40 = vpop.eup %8704  ;;  %v5716_v8 = vpack.c.bf16 %v8703_v1, %v8695_v2  ;;  %v10330_v23 = vadd.f32 %v7611_v63, %v6340_v52  ;;  %v5784_v1 = vsel %vm10216_vm2, %v5773_v9, 0 }
 0x3b8   : > { %v7614_v26 = vadd.f32 %v7613_v35, %v7612_v43  ;;  %v8707_v51 = vpop.eup %8706  ;;  %6593 = vmatprep.mubr.bf16.mxu0 %v5714_v6  ;;  %v7545_v53 = vpop.f32.mrb[68].mxu0  ;;  %v5782_v4 = vsel %vm10216_vm2, %v5771_v61, 0 }
 0x3b9   : > { %v6343_v20 = vadd.f32 %v7544_v59, %v10324_v42  ;;  %v8709_v7 = vpop.eup %8708  ;;  %6697 = vmatprep.mubr.bf16.mxu1 %v5716_v8  ;;  %6594 = vmatmul.mubr.bf16.gmra.mrb[124].mxu0 %v5713_v5  ;;  %v7615_v31 = vpop.f32.mrb[68].mxu1 }
 0x3ba   : > { %v8711_v19 = vpop.eup %8710  ;;  %6698 = vmatmul.mubr.bf16.gmra.mrb[124].mxu1 %v5715_v57  ;;  %v7546_v55 = vpop.f32.mrb[69].mxu0 }
 0x3bb   : > { %v10336_v12 = vadd.f32 %v7614_v26, %v6343_v20  ;;  %v8713_v48 = vpop.eup %8712  ;;  %v7547_v44 = vadd.f32 %v7546_v55, %v7545_v53  ;;  %v7616_v17 = vpop.f32.mrb[69].mxu1 }
 0x3bc   : > { %v8715_v25 = vpop.eup %8714  ;;  %v7548_v50 = vpop.f32.mrb[70].mxu0  ;;  %v5721_v45 = vpack.c.bf16 %v8713_v48, %v8705_v40  ;;  %v7617_v54 = vadd.f32 %v7616_v17, %v7615_v31 }
 0x3bd   : > { %v8717_v29 = vpop.eup %8716  ;;  %v7618_v39 = vpop.f32.mrb[70].mxu1  ;;  %v5723_v33 = vpack.c.bf16 %v8715_v25, %v8707_v51  ;;  %v6348_v18 = vadd.f32 %v7547_v44, %v10324_v42 }
 0x3be   : > { %v7549_v47 = vpop.f32.mrb[71].mxu0  ;;  %v8719_v15 = vpop.eup %8718  ;;  %v5722_v27 = vpack.c.bf16 %v8717_v29, %v8709_v7 }
 0x3bf   : > { %v7550_v0 = vadd.f32 %v7549_v47, %v7548_v50  ;;  %v7619_v62 = vpop.f32.mrb[71].mxu1  ;;  %v5724_v16 = vpack.c.bf16 %v8719_v15, %v8711_v19  ;;  %v10347_v3 = vadd.f32 %v7617_v54, %v6348_v18 }
 0x3c0   : > { %v7620_v28 = vadd.f32 %v7619_v62, %v7618_v39  ;;  %6601 = vmatprep.mubr.bf16.mxu0 %v5722_v27  ;;  %v7551_v56 = vpop.f32.mrb[72].mxu0  ;;  %v7621_v60 = vpop.f32.mrb[72].mxu1 }
 0x3c1   : > { %v6351_v2 = vadd.f32 %v7550_v0, %v10324_v42  ;;  %6705 = vmatprep.mubr.bf16.mxu1 %v5724_v16  ;;  %6602 = vmatmul.mubr.bf16.gmra.mrb[128].mxu0 %v5721_v45  ;;  %v7552_v49 = vpop.f32.mrb[73].mxu0  ;;  %v7622_v58 = vpop.f32.mrb[73].mxu1 }
 0x3c2   : > { %6706 = vmatmul.mubr.bf16.gmra.mrb[128].mxu1 %v5723_v33  ;;  %6609 = vmatprep.mubr.bf16.mxu0 %v5783_v21  ;;  %v7553_v34 = vadd.f32 %v7552_v49, %v7551_v56  ;;  %v7554_v14 = vpop.f32.mrb[74].mxu0  ;;  %v7623_v30 = vadd.f32 %v7622_v58, %v7621_v60  ;;  %v7624_v46 = vpop.f32.mrb[74].mxu1 }
 0x3c3   : > { %v10352_v41 = vadd.f32 %v7620_v28, %v6351_v2  ;;  %6713 = vmatprep.mubr.bf16.mxu1 %v5785_v13  ;;  %v7555_v5 = vpop.f32.mrb[75].mxu0  ;;  %v7625_v43 = vpop.f32.mrb[75].mxu1 }
 0x3c4   : > { %v6356_v38 = vadd.f32 %v7553_v34, %v10324_v42  ;;  %v7556_v63 = vadd.f32 %v7555_v5, %v7554_v14  ;;  %v7626_v57 = vadd.f32 %v7625_v43, %v7624_v46 }
 0x3c6   : > { %v10359_v52 = vadd.f32 %v7623_v30, %v6356_v38  ;;  %v6359_v59 = vadd.f32 %v7556_v63, %v10324_v42 }
 0x3c8   : > { %v10362_v35 = vadd.f32 %v7626_v57, %v6359_v59  ;;  %v7557_v6 = vpop.f32.mrb[76].mxu0  ;;  %v7627_v40 = vpop.f32.mrb[76].mxu1 }
 0x3c9   : > { %6610 = vmatmul.mubr.bf16.gmra.mrb[132].mxu0 %v5782_v4  ;;  %v7558_v26 = vpop.f32.mrb[77].mxu0  ;;  %v7628_v10 = vpop.f32.mrb[77].mxu1 }
 0x3ca   : > { %6714 = vmatmul.mubr.bf16.gmra.mrb[132].mxu1 %v5784_v1  ;;  %v7559_v8 = vadd.f32 %v7558_v26, %v7557_v6  ;;  %v7560_v51 = vpop.f32.mrb[78].mxu0  ;;  %v7629_v20 = vadd.f32 %v7628_v10, %v7627_v40  ;;  %v7630_v24 = vpop.f32.mrb[78].mxu1 }
 0x3cb   : > { %v7561_v7 = vpop.f32.mrb[79].mxu0  ;;  %v7631_v53 = vpop.f32.mrb[79].mxu1 }
 0x3cc   : > { %v6364_v32 = vadd.f32 %v7559_v8, %v10324_v42  ;;  %v7562_v19 = vadd.f32 %v7561_v7, %v7560_v51  ;;  %v7632_v48 = vadd.f32 %v7631_v53, %v7630_v24 }
 0x3ce   : > { %v10365_v31 = vadd.f32 %v7629_v20, %v6364_v32  ;;  %v6367_v55 = vadd.f32 %v7562_v19, %v10324_v42 }
 0x3d0   : > { %v10368_v37 = vadd.f32 %v7632_v48, %v6367_v55  ;;  %v7563_v25 = vpop.f32.mrb[80].mxu0  ;;  %v7633_v44 = vpop.f32.mrb[80].mxu1 }
 0x3d1   : > { %v7564_v17 = vpop.f32.mrb[81].mxu0  ;;  %v7634_v45 = vpop.f32.mrb[81].mxu1 }
 0x3d2   : > { %v7565_v50 = vadd.f32 %v7564_v17, %v7563_v25  ;;  %v7566_v22 = vpop.f32.mrb[82].mxu0  ;;  %v7635_v29 = vadd.f32 %v7634_v45, %v7633_v44  ;;  %v7636_v54 = vpop.f32.mrb[82].mxu1 }
 0x3d3   : > { %v7567_v39 = vpop.f32.mrb[83].mxu0  ;;  %v7637_v15 = vpop.f32.mrb[83].mxu1 }
 0x3d4   : > { %v6372_v47 = vadd.f32 %v7565_v50, %v10324_v42  ;;  %v7568_v33 = vadd.f32 %v7567_v39, %v7566_v22  ;;  %v7638_v18 = vadd.f32 %v7637_v15, %v7636_v54 }
 0x3d6   : > { %v10371_v0 = vadd.f32 %v7635_v29, %v6372_v47  ;;  %v6375_v62 = vadd.f32 %v7568_v33, %v10324_v42 }
 0x3d8   : > { %v10374_v27 = vadd.f32 %v7638_v18, %v6375_v62  ;;  %v7569_v36 = vpop.f32.mrb[84].mxu0  ;;  %v7639_v28 = vpop.f32.mrb[84].mxu1 }
 0x3d9   : > { %v7570_v16 = vpop.f32.mrb[85].mxu0  ;;  %v7640_v11 = vpop.f32.mrb[85].mxu1 }
 0x3da   : > { %v7571_v21 = vadd.f32 %v7570_v16, %v7569_v36  ;;  %v7572_v2 = vpop.f32.mrb[86].mxu0  ;;  %v7641_v13 = vadd.f32 %v7640_v11, %v7639_v28  ;;  %v7642_v56 = vpop.f32.mrb[86].mxu1 }
 0x3db   : > { %v7573_v61 = vpop.f32.mrb[87].mxu0  ;;  %v7643_v9 = vpop.f32.mrb[87].mxu1 }
 0x3dc   : > { %v6380_v60 = vadd.f32 %v7571_v21, %v10324_v42  ;;  %v7574_v49 = vadd.f32 %v7573_v61, %v7572_v2  ;;  %v7644_v34 = vadd.f32 %v7643_v9, %v7642_v56 }
 0x3de   : > { %v10377_v58 = vadd.f32 %v7641_v13, %v6380_v60  ;;  %v6383_v14 = vadd.f32 %v7574_v49, %v10324_v42 }
 0x3e0   : > { %v10380_v30 = vadd.f32 %v7644_v34, %v6383_v14  ;;  %v7575_v46 = vpop.f32.mrb[88].mxu0  ;;  %v7645_v5 = vpop.f32.mrb[88].mxu1 }
 0x3e1   : > { %v7576_v38 = vpop.f32.mrb[89].mxu0  ;;  %v7646_v43 = vpop.f32.mrb[89].mxu1 }
 0x3e2   : > { %v7577_v63 = vadd.f32 %v7576_v38, %v7575_v46  ;;  %v7578_v4 = vpop.f32.mrb[90].mxu0  ;;  %v7647_v57 = vadd.f32 %v7646_v43, %v7645_v5  ;;  %v7648_v1 = vpop.f32.mrb[90].mxu1 }
 0x3e3   : > { %v7579_v59 = vpop.f32.mrb[91].mxu0  ;;  %v7649_v26 = vpop.f32.mrb[91].mxu1 }
 0x3e4   : > { %v6388_v6 = vadd.f32 %v7577_v63, %v10324_v42  ;;  %v7580_v40 = vadd.f32 %v7579_v59, %v7578_v4  ;;  %v7650_v8 = vadd.f32 %v7649_v26, %v7648_v1 }
 0x3e6   : > { %v10383_v10 = vadd.f32 %v7647_v57, %v6388_v6  ;;  %v6391_v51 = vadd.f32 %v7580_v40, %v10324_v42 }
 0x3e8   : > { %v10386_v20 = vadd.f32 %v7650_v8, %v6391_v51  ;;  %v7581_v24 = vpop.f32.mrb[92].mxu0  ;;  %v7651_v7 = vpop.f32.mrb[92].mxu1 }
 0x3e9   : > { %v7582_v32 = vpop.f32.mrb[93].mxu0  ;;  %v7652_v53 = vpop.f32.mrb[93].mxu1 }
 0x3ea   : > { %v7583_v19 = vadd.f32 %v7582_v32, %v7581_v24  ;;  %v7584_v48 = vpop.f32.mrb[94].mxu0  ;;  %v7653_v55 = vadd.f32 %v7652_v53, %v7651_v7  ;;  %v7654_v25 = vpop.f32.mrb[94].mxu1 }
 0x3eb   : > { %v7585_v44 = vpop.f32.mrb[95].mxu0  ;;  %v7655_v45 = vpop.f32.mrb[95].mxu1 }
 0x3ec   : > { %v6396_v17 = vadd.f32 %v7583_v19, %v10324_v42  ;;  %v7586_v50 = vadd.f32 %v7585_v44, %v7584_v48  ;;  %v7656_v22 = vadd.f32 %v7655_v45, %v7654_v25 }
 0x3ee   : > { %v10389_v29 = vadd.f32 %v7653_v55, %v6396_v17  ;;  %v6399_v54 = vadd.f32 %v7586_v50, %v10324_v42 }
 0x3f0   : > { %v10392_v39 = vadd.f32 %v7656_v22, %v6399_v54  ;;  %v7587_v47 = vpop.f32.mrb[96].mxu0  ;;  %v7657_v15 = vpop.f32.mrb[96].mxu1 }
 0x3f1   : > { %v7588_v33 = vpop.f32.mrb[97].mxu0  ;;  %v7658_v36 = vpop.f32.mrb[97].mxu1 }
 0x3f2   : > { %v7589_v18 = vadd.f32 %v7588_v33, %v7587_v47  ;;  %v7590_v62 = vpop.f32.mrb[98].mxu0  ;;  %v7659_v16 = vadd.f32 %v7658_v36, %v7657_v15  ;;  %v7660_v21 = vpop.f32.mrb[98].mxu1 }
 0x3f3   : > { %v7591_v28 = vpop.f32.mrb[99].mxu0  ;;  %v7661_v2 = vpop.f32.mrb[99].mxu1 }
 0x3f4   : > { %v6404_v11 = vadd.f32 %v7589_v18, %v10324_v42 }
 0x3f6   : > { %v10395_v13 = vadd.f32 %v7659_v16, %v6404_v11 }
 0x45a   : > { %v7679_v56 = vpop.f32.mrb[100].mxu0 }
 0x45b   : > { %v7680_v60 = vpop.f32.mrb[101].mxu0 }
 0x45c   : > { %v7749_v61 = vpop.f32.mrb[100].mxu1  ;;  %v7681_v49 = vadd.f32 %v7680_v60, %v7679_v56  ;;  %v7682_v34 = vpop.f32.mrb[102].mxu0 }
 0x45d   : > { %v7750_v9 = vpop.f32.mrb[101].mxu1  ;;  %v7683_v5 = vpop.f32.mrb[103].mxu0 }
 0x45e   : > { %v7751_v14 = vadd.f32 %v7750_v9, %v7749_v61  ;;  %v7752_v46 = vpop.f32.mrb[102].mxu1  ;;  %v7684_v38 = vadd.f32 %v7683_v5, %v7682_v34  ;;  %v6548_v43 = vadd.f32 %v7681_v49, %v10330_v23 }
 0x45f   : > { %v7753_v63 = vpop.f32.mrb[103].mxu1 }
 0x460   : > { %v7754_v4 = vadd.f32 %v7753_v63, %v7752_v46  ;;  %v6551_v57 = vadd.f32 %v7684_v38, %v10336_v12  ;;  %v6652_v42 = vadd.f32 %v7751_v14, %v6548_v43 }
 0x462   : > { %6721 = vxpose.xlu0.b32.start [1/16] (narrow) %v6652_v42, 8  ;;  %v6655_v59 = vadd.f32 %v7754_v4, %v6551_v57 }
 0x463   : > { %v7685_v1 = vpop.f32.mrb[104].mxu0 }
 0x464   : > { %v7686_v40 = vpop.f32.mrb[105].mxu0 }
 0x465   : > { %v7755_v6 = vpop.f32.mrb[104].mxu1  ;;  %v7687_v26 = vadd.f32 %v7686_v40, %v7685_v1  ;;  %v7688_v51 = vpop.f32.mrb[106].mxu0 }
 0x466   : > { %v7756_v8 = vpop.f32.mrb[105].mxu1  ;;  %v7689_v32 = vpop.f32.mrb[107].mxu0  ;;  %6722 = vxpose.xlu0.b32.cont [2/16] (narrow) %v6655_v59, 8 }
 0x467   : > { %v7757_v24 = vadd.f32 %v7756_v8, %v7755_v6  ;;  %v7758_v7 = vpop.f32.mrb[106].mxu1  ;;  %v6556_v19 = vadd.f32 %v7687_v26, %v10347_v3  ;;  %v7690_v53 = vadd.f32 %v7689_v32, %v7688_v51 }
 0x468   : > { %v7759_v48 = vpop.f32.mrb[107].mxu1 }
 0x469   : > { %v7760_v23 = vadd.f32 %v7759_v48, %v7758_v7  ;;  %v6559_v12 = vadd.f32 %v7690_v53, %v10352_v41  ;;  %v6660_v55 = vadd.f32 %v7757_v24, %v6556_v19 }
 0x46b   : > { %6723 = vxpose.xlu0.b32.cont [3/16] (narrow) %v6660_v55, 8  ;;  %v6663_v44 = vadd.f32 %v7760_v23, %v6559_v12 }
 0x46c   : > { %v7691_v25 = vpop.f32.mrb[108].mxu0 }
 0x46d   : > { %v7761_v17 = vpop.f32.mrb[108].mxu1  ;;  %v7692_v50 = vpop.f32.mrb[109].mxu0 }
 0x46e   : > { %v7693_v45 = vadd.f32 %v7692_v50, %v7691_v25  ;;  %v7762_v22 = vpop.f32.mrb[109].mxu1  ;;  %v7694_v54 = vpop.f32.mrb[110].mxu0 }
 0x46f   : > { %v7763_v47 = vadd.f32 %v7762_v22, %v7761_v17  ;;  %v7764_v33 = vpop.f32.mrb[110].mxu1  ;;  %v7695_v15 = vpop.f32.mrb[111].mxu0  ;;  %6724 = vxpose.xlu0.b32.cont [4/16] (narrow) %v6663_v44, 8 }
 0x470   : > { %v6564_v3 = vadd.f32 %v7693_v45, %v10359_v52  ;;  %v7696_v18 = vadd.f32 %v7695_v15, %v7694_v54  ;;  %v7765_v62 = vpop.f32.mrb[111].mxu1 }
 0x471   : > { %v7766_v36 = vadd.f32 %v7765_v62, %v7764_v33 }
 0x472   : > { %v6567_v41 = vadd.f32 %v7696_v18, %v10362_v35  ;;  %v6668_v28 = vadd.f32 %v7763_v47, %v6564_v3 }
 0x474   : > { %v7697_v16 = vpop.f32.mrb[112].mxu0  ;;  %6725 = vxpose.xlu0.b32.cont [5/16] (narrow) %v6668_v28, 8  ;;  %v6671_v21 = vadd.f32 %v7766_v36, %v6567_v41 }
 0x475   : > { %v7767_v11 = vpop.f32.mrb[112].mxu1  ;;  %v7698_v2 = vpop.f32.mrb[113].mxu0 }
 0x476   : > { %v7699_v56 = vadd.f32 %v7698_v2, %v7697_v16  ;;  %v7768_v61 = vpop.f32.mrb[113].mxu1  ;;  %v7700_v60 = vpop.f32.mrb[114].mxu0 }
 0x477   : > { %v7769_v49 = vadd.f32 %v7768_v61, %v7767_v11  ;;  %v7770_v9 = vpop.f32.mrb[114].mxu1  ;;  %v7701_v34 = vpop.f32.mrb[115].mxu0 }
 0x478   : > { %v6572_v52 = vadd.f32 %v7699_v56, %v10365_v31  ;;  %v7702_v14 = vadd.f32 %v7701_v34, %v7700_v60  ;;  %v7771_v46 = vpop.f32.mrb[115].mxu1  ;;  %6726 = vxpose.xlu0.b32.cont [6/16] (narrow) %v6671_v21, 8 }
 0x479   : > { %v7772_v5 = vadd.f32 %v7771_v46, %v7770_v9 }
 0x47a   : > { %v6575_v35 = vadd.f32 %v7702_v14, %v10368_v37  ;;  %v6676_v38 = vadd.f32 %v7769_v49, %v6572_v52 }
 0x47c   : > { %v7703_v63 = vpop.f32.mrb[116].mxu0  ;;  %6727 = vxpose.xlu0.b32.cont [7/16] (narrow) %v6676_v38, 8  ;;  %v6679_v43 = vadd.f32 %v7772_v5, %v6575_v35 }
 0x47d   : > { %v7773_v4 = vpop.f32.mrb[116].mxu1  ;;  %v7704_v57 = vpop.f32.mrb[117].mxu0 }
 0x47e   : > { %v7705_v42 = vadd.f32 %v7704_v57, %v7703_v63  ;;  %v7774_v1 = vpop.f32.mrb[117].mxu1  ;;  %v7706_v59 = vpop.f32.mrb[118].mxu0 }
 0x47f   : > { %v7775_v6 = vadd.f32 %v7774_v1, %v7773_v4  ;;  %v7776_v40 = vpop.f32.mrb[118].mxu1  ;;  %v7707_v26 = vpop.f32.mrb[119].mxu0 }
 0x480   : > { %v6580_v31 = vadd.f32 %v7705_v42, %v10371_v0  ;;  %v7708_v8 = vadd.f32 %v7707_v26, %v7706_v59  ;;  %v7777_v51 = vpop.f32.mrb[119].mxu1  ;;  %6728 = vxpose.xlu0.b32.cont [8/16] (narrow) %v6679_v43, 8 }
 0x481   : > { %v7778_v24 = vadd.f32 %v7777_v51, %v7776_v40 }
 0x482   : > { %v6583_v37 = vadd.f32 %v7708_v8, %v10374_v27  ;;  %v6684_v7 = vadd.f32 %v7775_v6, %v6580_v31 }
 0x484   : > { %v7709_v32 = vpop.f32.mrb[120].mxu0  ;;  %6729 = vxpose.xlu0.b32.cont [9/16] (narrow) %v6684_v7, 8  ;;  %v6687_v19 = vadd.f32 %v7778_v24, %v6583_v37  ;;  %v7519_v37 = vld [vmem:[%s410_s24] ss:$0 sm:$0xff] }
 0x485   : > { %v7779_v53 = vpop.f32.mrb[120].mxu1  ;;  %v7710_v48 = vpop.f32.mrb[121].mxu0 }
 0x486   : > { %v7711_v23 = vadd.f32 %v7710_v48, %v7709_v32  ;;  %v7780_v12 = vpop.f32.mrb[121].mxu1  ;;  %v7712_v55 = vpop.f32.mrb[122].mxu0 }
 0x487   : > { %v7781_v25 = vadd.f32 %v7780_v12, %v7779_v53  ;;  %v7782_v44 = vpop.f32.mrb[122].mxu1  ;;  %v7713_v17 = vpop.f32.mrb[123].mxu0 }
 0x488   : > { %v6588_v0 = vadd.f32 %v7711_v23, %v10377_v58  ;;  %v7714_v50 = vadd.f32 %v7713_v17, %v7712_v55  ;;  %v7783_v45 = vpop.f32.mrb[123].mxu1  ;;  %6730 = vxpose.xlu0.b32.cont [10/16] (narrow) %v6687_v19, 8 }
 0x489   : > { %v7784_v22 = vadd.f32 %v7783_v45, %v7782_v44 }
 0x48a   : > { %v6591_v27 = vadd.f32 %v7714_v50, %v10380_v30  ;;  %v6692_v54 = vadd.f32 %v7781_v25, %v6588_v0 }
 0x48c   : > { %v7715_v47 = vpop.f32.mrb[124].mxu0  ;;  %6731 = vxpose.xlu0.b32.cont [11/16] (narrow) %v6692_v54, 8  ;;  %v6695_v33 = vadd.f32 %v7784_v22, %v6591_v27 }
 0x48d   : > { %v7785_v15 = vpop.f32.mrb[124].mxu1  ;;  %v7716_v3 = vpop.f32.mrb[125].mxu0 }
 0x48e   : > { %v7717_v18 = vadd.f32 %v7716_v3, %v7715_v47  ;;  %v7786_v62 = vpop.f32.mrb[125].mxu1  ;;  %v7718_v36 = vpop.f32.mrb[126].mxu0 }
 0x48f   : > { %v7787_v41 = vadd.f32 %v7786_v62, %v7785_v15  ;;  %v7788_v28 = vpop.f32.mrb[126].mxu1  ;;  %v7719_v16 = vpop.f32.mrb[127].mxu0 }
 0x490   : > { %v6596_v58 = vadd.f32 %v7717_v18, %v10383_v10  ;;  %v7720_v21 = vadd.f32 %v7719_v16, %v7718_v36  ;;  %v7789_v11 = vpop.f32.mrb[127].mxu1  ;;  %6732 = vxpose.xlu0.b32.cont [12/16] (narrow) %v6695_v33, 8 }
 0x491   : > { %v7790_v2 = vadd.f32 %v7789_v11, %v7788_v28 }
 0x492   : > { %v6599_v30 = vadd.f32 %v7720_v21, %v10386_v20  ;;  %v6700_v56 = vadd.f32 %v7787_v41, %v6596_v58 }
 0x494   : > { %v7721_v61 = vpop.f32.mrb[128].mxu0  ;;  %6733 = vxpose.xlu0.b32.cont [13/16] (narrow) %v6700_v56, 8  ;;  %v6703_v60 = vadd.f32 %v7790_v2, %v6599_v30 }
 0x495   : > { %v7791_v49 = vpop.f32.mrb[128].mxu1  ;;  %v7722_v9 = vpop.f32.mrb[129].mxu0 }
 0x496   : > { %v7723_v34 = vadd.f32 %v7722_v9, %v7721_v61  ;;  %v7792_v52 = vpop.f32.mrb[129].mxu1  ;;  %v7724_v14 = vpop.f32.mrb[130].mxu0 }
 0x497   : > { %v7793_v46 = vadd.f32 %v7792_v52, %v7791_v49  ;;  %v7794_v5 = vpop.f32.mrb[130].mxu1  ;;  %v7725_v35 = vpop.f32.mrb[131].mxu0 }
 0x498   : > { %v6604_v10 = vadd.f32 %v7723_v34, %v10389_v29  ;;  %v7726_v38 = vadd.f32 %v7725_v35, %v7724_v14  ;;  %v7795_v63 = vpop.f32.mrb[131].mxu1  ;;  %6734 = vxpose.xlu0.b32.cont [14/16] (narrow) %v6703_v60, 8 }
 0x499   : > { %v7796_v43 = vadd.f32 %v7795_v63, %v7794_v5 }
 0x49a   : > { %v6607_v20 = vadd.f32 %v7726_v38, %v10392_v39  ;;  %v6708_v4 = vadd.f32 %v7793_v46, %v6604_v10 }
 0x49c   : > { %v7727_v57 = vpop.f32.mrb[132].mxu0  ;;  %6735 = vxpose.xlu0.b32.cont [15/16] (narrow) %v6708_v4, 8  ;;  %v6711_v42 = vadd.f32 %v7796_v43, %v6607_v20 }
 0x49d   : > { %v7728_v1 = vpop.f32.mrb[133].mxu0  ;;  %v7797_v59 = vpop.f32.mrb[132].mxu1 }
 0x49e   : > { %v7729_v6 = vadd.f32 %v7728_v1, %v7727_v57  ;;  %v7798_v40 = vpop.f32.mrb[133].mxu1  ;;  %v7730_v26 = vpop.f32.mrb[134].mxu0 }
 0x49f   : > { %v7799_v31 = vadd.f32 %v7798_v40, %v7797_v59  ;;  %v7731_v8 = vpop.f32.mrb[135].mxu0  ;;  %v7800_v29 = vpop.f32.mrb[134].mxu1 }
 0x4a0   : > { %v6612_v51 = vadd.f32 %v7729_v6, %v10395_v13  ;;  %6736 = vxpose.xlu0.b32.end [16/16] (narrow) %v6711_v42, 8  ;;  %v7801_v24 = vpop.f32.mrb[135].mxu1 }
 0x4a2   : > { %v6716_v39 = vadd.f32 %v7799_v31, %v6612_v51 }
 0x4a4   : > { %6774 = vst [vmem:[%s417_s30] sm:$0x1] %v6716_v39 }
 0x4e4   : > { %v6737_v7 = vpop.trf.xlu0 }
 0x4e5   : > { %v6760_v32 = vadd.f32 %v7519_v37, %v6737_v7 }
 0x4e7   : > { %v6762_v19 = vsel %vm6761_vm3, %v6760_v32, -inf }
 0x4e8   : > { %6763 = vmax.xlane.f32.xlu1 %v6762_v19 }
 0x575   : > { %v6764_v13 = vpop.xlane.xlu1 %6763 }
 0x576   : > { %v6765_v53 = vsub.f32 %v6760_v32, %v6764_v13 }
 0x578   : > { %v6766_v48 = vmul.f32 1.442695, %v6765_v53 }
 0x57a   : > { %8720 = vpow2.f32 %v6766_v48 }
 0x584   : > { %v8721_v23 = vpop.eup %8720 }
 0x585   : > { %v6768_v12 = vsel %vm6761_vm3, %v8721_v23, 0.0 }
 0x586   : > { %6769 = vadd.xlane.f32.xlu1 %v6768_v12 }
 0x613   : > { %v6770_v55 = vpop.xlane.xlu1 %6769 }
 0x614   : > { %8722 = vrcp.f32 %v6770_v55 }
 0x61e   : > { %v8723_v25 = vpop.eup %8722 }
 0x61f   : > { %v6772_v44 = vmul.f32 %v8723_v25, %v8721_v23 }
 0x621   : > { %6773 = vst [vmem:[%s414_s12] sm:$0x3] %v6772_v44 }
 0x622 PF: > { %p21_p1 = scmp.ge.s32.totalorder %s9105_s22, 4   ;;  %s10629_s27 = smov %s8901_s28 }
 0x623   : > { %s10630_s28 = smov %s8905_s29  ;;  %s10631_s29 = smov %s9114_s18 }
 0x624   : > { %s10632_s30 = smov %s9105_s22  ;;  %23 = sbr.rel (!%p21_p1) target bundleno = 5 (0x5), region = 122 }
 0x62b   :  { %6806 = vsyncpa [#allocation3], 1 }
 0x62c   :  { %6808 = vsyncpa [#allocation3 + $0x1], 1 }
 0x62d   :  { %6809 = vsyncpa [#allocation5], 1 }
 0x62e   :  { %6810 = vsyncpa [#allocation8], 1 }

</bundles_post_ra>
